<compile_context>
chip_gen: v7x
topology: tpu7x:2x2x1
jax: 0.10.0
libtpu: 0.0.40
codegen_flags: <defaults>
</compile_context>

<pallas_src>
import math

import jax
import jax.numpy as jnp
from jax.experimental import pallas as pl
from jax.experimental.pallas import tpu as pltpu

# ----------------------------- config ---------------------------------------
VOCAB = 50            # len_of_token_embeddings
HIDDEN = 32
HEADS = 4
HEAD_DIM = HIDDEN // HEADS
INTERMEDIATE = 64
LAYERS = 2
MAX_POS = 16
TYPE_VOCAB = 2
LN_EPS = 1e-12
SQRT2_INV = 0.7071067811865476
ATTN_SCALE = 1.0 / math.sqrt(HEAD_DIM)


# ----------------------------- in-kernel helpers ----------------------------
def _layernorm(x, gamma, beta):
    mu = jnp.mean(x, axis=-1, keepdims=True)
    c = x - mu
    var = jnp.mean(c * c, axis=-1, keepdims=True)
    return c * jax.lax.rsqrt(var + LN_EPS) * gamma + beta


def _gelu(x):  # exact (erf) GELU, as in BERT
    return 0.5 * x * (1.0 + jax.lax.erf(x * SQRT2_INV))


# ----------------------------- fused encoder kernel -------------------------
def _encoder_kernel(
    tok_ref,                              # SMEM (B, S) int32 token ids (scalar prefetch)
    mask_ref,                             # VMEM (B, S) int32 attention mask
    word_ref,                             # (VOCAB, 1, H) word embedding table
    pos_ref, type_ref,                    # (MAX_POS, H), (TYPE_VOCAB, H)
    emb_ln_g_ref, emb_ln_b_ref,           # (1, H)
    qkv_w_ref, qkv_b_ref,                 # (L, H, 3H), (L, 1, 3H)   (Q cols pre-scaled)
    o_w_ref, o_b_ref,                     # (L, H, H), (L, 1, H)
    ln1_g_ref, ln1_b_ref,                 # (L, 1, H)
    ff1_w_ref, ff1_b_ref,                 # (L, H, I), (L, 1, I)
    ff2_w_ref, ff2_b_ref,                 # (L, I, H), (L, 1, H)
    ln2_g_ref, ln2_b_ref,                 # (L, 1, H)
    pool_w_ref, pool_b_ref,               # (H, H), (1, H)
    out_ref,                              # (B, H) pooler output
    emb_sc,                               # VMEM (B*S, H) gathered embeddings
    ctx_sc,                               # VMEM (B*S, H) per-head context assembly
    cls_sc,                               # VMEM (B, H)  CLS rows for pooler
):
    """Whole BERT encoder for the full batch, one grid step, VMEM-resident."""
    B, S = tok_ref.shape

    # --- fused embeddings: word gather + position + token-type (=0) ---
    # TODO(synk): token_type_ids are assumed all-zero (HF default when not given).
    type_row = type_ref[0:1, :]                                           # (1, H)
    for b in range(B):
        for s in range(S):
            tok = tok_ref[b, s]                                           # SMEM scalar
            r = b * S + s
            emb_sc[r:r + 1, :] = word_ref[tok] + pos_ref[s:s + 1, :] + type_row

    h = _layernorm(emb_sc[...], emb_ln_g_ref[...], emb_ln_b_ref[...])     # (B*S, H)

    # --- additive attention mask built in-kernel (HF convention) ---
    add_mask = (1.0 - mask_ref[...].astype(jnp.float32)) * (-10000.0)     # (B, S)

    for l in range(LAYERS):
        # fused QKV over the whole flattened batch: (B*S, H) @ (H, 3H)
        qkv = jnp.dot(h, qkv_w_ref[l],
                      preferred_element_type=jnp.float32) + qkv_b_ref[l]  # (B*S, 3H)

        for b in range(B):
            qkv_b = qkv[b * S:(b + 1) * S, :]                             # (S, 3H)
            mask_b = add_mask[b:b + 1, :]                                 # (1, S)
            for hd in range(HEADS):
                lo = hd * HEAD_DIM
                q = qkv_b[:, lo:lo + HEAD_DIM]                            # (S, dh) pre-scaled
                k = qkv_b[:, HIDDEN + lo:HIDDEN + lo + HEAD_DIM]
                v = qkv_b[:, 2 * HIDDEN + lo:2 * HIDDEN + lo + HEAD_DIM]

                s_mat = jax.lax.dot_general(                              # q @ k.T
                    q, k, (((1,), (1,)), ((), ())),
                    preferred_element_type=jnp.float32) + mask_b          # (S, S)
                s_mat = s_mat - jnp.max(s_mat, axis=-1, keepdims=True)
                p = jnp.exp(s_mat)
                p = p / jnp.sum(p, axis=-1, keepdims=True)                # exact softmax

                ctx = jnp.dot(p, v, preferred_element_type=jnp.float32)   # (S, dh)
                # assemble heads in VMEM, single o_w matmul afterwards
                ctx_sc[b * S:(b + 1) * S, lo:lo + HEAD_DIM] = ctx

        attn = jnp.dot(ctx_sc[...], o_w_ref[l],
                       preferred_element_type=jnp.float32) + o_b_ref[l]   # (B*S, H)
        h = _layernorm(attn + h, ln1_g_ref[l], ln1_b_ref[l])

        # --- feed forward ---
        ff = jnp.dot(h, ff1_w_ref[l],
                     preferred_element_type=jnp.float32) + ff1_b_ref[l]
        ff = _gelu(ff)
        ff = jnp.dot(ff, ff2_w_ref[l],
                     preferred_element_type=jnp.float32) + ff2_b_ref[l]
        h = _layernorm(ff + h, ln2_g_ref[l], ln2_b_ref[l])

    # --- pooler: tanh(W * h[CLS] + b); CLS = first token of each sequence ---
    for b in range(B):
        cls_sc[b:b + 1, :] = h[b * S:b * S + 1, :]
    out_ref[...] = jnp.tanh(
        jnp.dot(cls_sc[...], pool_w_ref[...],
                preferred_element_type=jnp.float32) + pool_b_ref[...])


# ----------------------------- wrapper ---------------------------------------
def _full_spec(arr):
    """Full-array VMEM block, same block for the single grid step."""
    zeros = (0,) * arr.ndim
    return pl.BlockSpec(arr.shape, lambda i, tok, z=zeros: z)


@jax.jit
def encoder_forward(kparams, token_ids, attention_mask):
    """token_ids: (B, S) int32; attention_mask: (B, S) {0,1}.
    Returns pooler_output: (B, HIDDEN) float32."""
    B, S = token_ids.shape
    token_ids = token_ids.astype(jnp.int32)
    attention_mask = attention_mask.astype(jnp.int32)

    weights = (
        kparams["word_emb"], kparams["pos_emb"], kparams["type_emb"],
        kparams["emb_ln_g"], kparams["emb_ln_b"],
        kparams["qkv_w"], kparams["qkv_b"],
        kparams["o_w"], kparams["o_b"],
        kparams["ln1_g"], kparams["ln1_b"],
        kparams["ff1_w"], kparams["ff1_b"],
        kparams["ff2_w"], kparams["ff2_b"],
        kparams["ln2_g"], kparams["ln2_b"],
        kparams["pool_w"], kparams["pool_b"],
    )

    grid_spec = pltpu.PrefetchScalarGridSpec(
        num_scalar_prefetch=1,                 # token_ids -> SMEM, read as scalars
        grid=(1,),                             # single step: batch folded into rows
        in_specs=[_full_spec(attention_mask)] + [_full_spec(w) for w in weights],
        out_specs=pl.BlockSpec((B, HIDDEN), lambda i, tok: (0, 0)),
        scratch_shapes=[
            pltpu.VMEM((B * S, HIDDEN), jnp.float32),   # gathered embeddings
            pltpu.VMEM((B * S, HIDDEN), jnp.float32),   # head-context assembly
            pltpu.VMEM((B, HIDDEN), jnp.float32),       # CLS rows
        ],
    )

    return pl.pallas_call(
        _encoder_kernel,
        out_shape=jax.ShapeDtypeStruct((B, HIDDEN), jnp.float32),
        grid_spec=grid_spec,
        compiler_params=pltpu.CompilerParams(
            dimension_semantics=("arbitrary",)),   # one TC; no megacore split needed
    )(token_ids, attention_mask, *weights)


# ----------------------------- parameter init / prep -------------------------
def init_params(key):
    def normal(k, shape, std=0.02):
        return (std * jax.random.normal(k, shape)).astype(jnp.float32)

    ks = jax.random.split(key, 8)
    return {
        "word_emb": normal(ks[0], (VOCAB, HIDDEN)),
        "pos_emb": normal(ks[1], (MAX_POS, HIDDEN)),
        "type_emb": normal(ks[2], (TYPE_VOCAB, HIDDEN)),
        "emb_ln_g": jnp.ones((1, HIDDEN), jnp.float32),
        "emb_ln_b": jnp.zeros((1, HIDDEN), jnp.float32),
        "qkv_w": normal(ks[3], (LAYERS, HIDDEN, 3 * HIDDEN)),
        "qkv_b": jnp.zeros((LAYERS, 1, 3 * HIDDEN), jnp.float32),
        "o_w": normal(ks[4], (LAYERS, HIDDEN, HIDDEN)),
        "o_b": jnp.zeros((LAYERS, 1, HIDDEN), jnp.float32),
        "ln1_g": jnp.ones((LAYERS, 1, HIDDEN), jnp.float32),
        "ln1_b": jnp.zeros((LAYERS, 1, HIDDEN), jnp.float32),
        "ff1_w": normal(ks[5], (LAYERS, HIDDEN, INTERMEDIATE)),
        "ff1_b": jnp.zeros((LAYERS, 1, INTERMEDIATE), jnp.float32),
        "ff2_w": normal(ks[6], (LAYERS, INTERMEDIATE, HIDDEN)),
        "ff2_b": jnp.zeros((LAYERS, 1, HIDDEN), jnp.float32),
        "ln2_g": jnp.ones((LAYERS, 1, HIDDEN), jnp.float32),
        "ln2_b": jnp.zeros((LAYERS, 1, HIDDEN), jnp.float32),
        "pool_w": normal(ks[7], (HIDDEN, HIDDEN)),
        "pool_b": jnp.zeros((1, HIDDEN), jnp.float32),
    }


def prepare_kernel_params(params):
    """One-time (host-side) param prep for the kernel:
      * fold 1/sqrt(head_dim) into the Q columns of the fused QKV weight/bias;
      * reshape the word-embedding table to (VOCAB, 1, H) so the in-kernel
        gather indexes a leading (non-tiled) axis."""
    kp = dict(params)
    kp["qkv_w"] = params["qkv_w"].at[:, :, :HIDDEN].multiply(ATTN_SCALE)
    kp["qkv_b"] = params["qkv_b"].at[:, :, :HIDDEN].multiply(ATTN_SCALE)
    kp["word_emb"] = params["word_emb"].reshape(VOCAB, 1, HIDDEN)
    return kp


# ----------------------------- pure-JAX reference ----------------------------
def encoder_reference(params, token_ids, attention_mask):
    B, S = token_ids.shape
    word = jnp.take(params["word_emb"], token_ids, axis=0)
    pos = params["pos_emb"][:S][None, :, :]
    typ = params["type_emb"][0][None, None, :]
    h = (word + pos + typ).astype(jnp.float32)                            # (B,S,H)

    def ln(x, g, b):
        mu = jnp.mean(x, axis=-1, keepdims=True)
        var = jnp.mean((x - mu) ** 2, axis=-1, keepdims=True)
        return (x - mu) * jax.lax.rsqrt(var + LN_EPS) * g + b

    h = ln(h, params["emb_ln_g"][0], params["emb_ln_b"][0])
    mask = ((1.0 - attention_mask.astype(jnp.float32)) * -10000.0)[:, None, None, :]

    for l in range(LAYERS):
        qkv = h @ params["qkv_w"][l] + params["qkv_b"][l]                 # (B,S,3H)
        q, k, v = jnp.split(qkv, 3, axis=-1)

        def heads(x):
            return x.reshape(B, S, HEADS, HEAD_DIM).transpose(0, 2, 1, 3)

        q, k, v = heads(q), heads(k), heads(v)
        s = jnp.einsum("bhqd,bhkd->bhqk", q, k) * ATTN_SCALE + mask
        p = jax.nn.softmax(s, axis=-1)
        ctx = jnp.einsum("bhqk,bhkd->bhqd", p, v)
        ctx = ctx.transpose(0, 2, 1, 3).reshape(B, S, HIDDEN)
        attn = ctx @ params["o_w"][l] + params["o_b"][l]
        h = ln(attn + h, params["ln1_g"][l][0], params["ln1_b"][l][0])

        ff = h @ params["ff1_w"][l] + params["ff1_b"][l]
        ff = 0.5 * ff * (1.0 + jax.lax.erf(ff * SQRT2_INV))
        ff = ff @ params["ff2_w"][l] + params["ff2_b"][l]
        h = ln(ff + h, params["ln2_g"][l][0], params["ln2_b"][l][0])

    cls = h[:, 0, :]
    return jnp.tanh(cls @ params["pool_w"] + params["pool_b"])


# ----------------------------- main -------------------------------------------
if __name__ == "__main__":
    key = jax.random.PRNGKey(0)
    k_param, k_tok = jax.random.split(key)

    params = init_params(k_param)
    kparams = prepare_kernel_params(params)   # one-time host-side prep

    B, S = 2, 8
    token_ids = jax.random.randint(k_tok, (B, S), 0, VOCAB, dtype=jnp.int32)
    attention_mask = jnp.array(
        [[1, 1, 1, 1, 1, 1, 1, 1],
         [1, 1, 1, 1, 1, 1, 0, 0]], dtype=jnp.int32)

    out = encoder_forward(kparams, token_ids, attention_mask)
    out = jax.block_until_ready(out)

    assert out.shape == (B, HIDDEN)
    assert jnp.all(jnp.isfinite(out))

    ref = encoder_reference(params, token_ids, attention_mask)
    max_err = float(jnp.max(jnp.abs(out - ref)))
    assert max_err < 1e-2, f"max abs err vs reference: {max_err}"

    print("KERNEL_OK")
</pallas_src>

<mosaic_0001>
module attributes {stable_mosaic.version = 11 : i64} {
  func.func @_encoder_kernel(%arg0: i32, %arg1: memref<2x8xi32, #tpu.memory_space<smem>>, %arg2: memref<2x8xi32, #tpu.memory_space<vmem>>, %arg3: memref<50x1x32xf32, #tpu.memory_space<vmem>>, %arg4: memref<16x32xf32, #tpu.memory_space<vmem>>, %arg5: memref<2x32xf32, #tpu.memory_space<vmem>>, %arg6: memref<1x32xf32, #tpu.memory_space<vmem>>, %arg7: memref<1x32xf32, #tpu.memory_space<vmem>>, %arg8: memref<2x32x96xf32, #tpu.memory_space<vmem>>, %arg9: memref<2x1x96xf32, #tpu.memory_space<vmem>>, %arg10: memref<2x32x32xf32, #tpu.memory_space<vmem>>, %arg11: memref<2x1x32xf32, #tpu.memory_space<vmem>>, %arg12: memref<2x1x32xf32, #tpu.memory_space<vmem>>, %arg13: memref<2x1x32xf32, #tpu.memory_space<vmem>>, %arg14: memref<2x32x64xf32, #tpu.memory_space<vmem>>, %arg15: memref<2x1x64xf32, #tpu.memory_space<vmem>>, %arg16: memref<2x64x32xf32, #tpu.memory_space<vmem>>, %arg17: memref<2x1x32xf32, #tpu.memory_space<vmem>>, %arg18: memref<2x1x32xf32, #tpu.memory_space<vmem>>, %arg19: memref<2x1x32xf32, #tpu.memory_space<vmem>>, %arg20: memref<32x32xf32, #tpu.memory_space<vmem>>, %arg21: memref<1x32xf32, #tpu.memory_space<vmem>>, %arg22: memref<2x32xf32, #tpu.memory_space<vmem>>, %arg23: memref<16x32xf32, #tpu.memory_space<vmem>>, %arg24: memref<16x32xf32, #tpu.memory_space<vmem>>, %arg25: memref<2x32xf32, #tpu.memory_space<vmem>>) attributes {dimension_semantics = [#tpu.dimension_semantics<arbitrary>], iteration_bounds = array<i64: 1>, scalar_prefetch = 1 : i64, scratch_operands = 3 : i64, tpu.core_type = #tpu.core_type<tc>, window_params = [{pipeline_mode = #tpu.pipeline_mode<synchronous>, transform_indices = @transform_0, window_bounds = array<i64: 2, 8>}, {pipeline_mode = #tpu.pipeline_mode<synchronous>, transform_indices = @transform_1, window_bounds = array<i64: 50, 1, 32>}, {pipeline_mode = #tpu.pipeline_mode<synchronous>, transform_indices = @transform_2, window_bounds = array<i64: 16, 32>}, {pipeline_mode = #tpu.pipeline_mode<synchronous>, transform_indices = @transform_3, window_bounds = array<i64: 2, 32>}, {pipeline_mode = #tpu.pipeline_mode<synchronous>, transform_indices = @transform_4, window_bounds = array<i64: 1, 32>}, {pipeline_mode = #tpu.pipeline_mode<synchronous>, transform_indices = @transform_5, window_bounds = array<i64: 1, 32>}, {pipeline_mode = #tpu.pipeline_mode<synchronous>, transform_indices = @transform_6, window_bounds = array<i64: 2, 32, 96>}, {pipeline_mode = #tpu.pipeline_mode<synchronous>, transform_indices = @transform_7, window_bounds = array<i64: 2, 1, 96>}, {pipeline_mode = #tpu.pipeline_mode<synchronous>, transform_indices = @transform_8, window_bounds = array<i64: 2, 32, 32>}, {pipeline_mode = #tpu.pipeline_mode<synchronous>, transform_indices = @transform_9, window_bounds = array<i64: 2, 1, 32>}, {pipeline_mode = #tpu.pipeline_mode<synchronous>, transform_indices = @transform_10, window_bounds = array<i64: 2, 1, 32>}, {pipeline_mode = #tpu.pipeline_mode<synchronous>, transform_indices = @transform_11, window_bounds = array<i64: 2, 1, 32>}, {pipeline_mode = #tpu.pipeline_mode<synchronous>, transform_indices = @transform_12, window_bounds = array<i64: 2, 32, 64>}, {pipeline_mode = #tpu.pipeline_mode<synchronous>, transform_indices = @transform_13, window_bounds = array<i64: 2, 1, 64>}, {pipeline_mode = #tpu.pipeline_mode<synchronous>, transform_indices = @transform_14, window_bounds = array<i64: 2, 64, 32>}, {pipeline_mode = #tpu.pipeline_mode<synchronous>, transform_indices = @transform_15, window_bounds = array<i64: 2, 1, 32>}, {pipeline_mode = #tpu.pipeline_mode<synchronous>, transform_indices = @transform_16, window_bounds = array<i64: 2, 1, 32>}, {pipeline_mode = #tpu.pipeline_mode<synchronous>, transform_indices = @transform_17, window_bounds = array<i64: 2, 1, 32>}, {pipeline_mode = #tpu.pipeline_mode<synchronous>, transform_indices = @transform_18, window_bounds = array<i64: 32, 32>}, {pipeline_mode = #tpu.pipeline_mode<synchronous>, transform_indices = @transform_19, window_bounds = array<i64: 1, 32>}, {pipeline_mode = #tpu.pipeline_mode<synchronous>, transform_indices = @transform_20, window_bounds = array<i64: 2, 32>}]} {
    %c0 = arith.constant 0 : index
    %c0_0 = arith.constant 0 : index
    %0 = vector.load %arg5[%c0, %c0_0] : memref<2x32xf32, #tpu.memory_space<vmem>>, vector<1x32xf32>
    %c0_1 = arith.constant 0 : index
    %c0_2 = arith.constant 0 : index
    %1 = memref.load %arg1[%c0_1, %c0_2] : memref<2x8xi32, #tpu.memory_space<smem>>
    %2 = arith.index_cast %1 : i32 to index
    %c0_3 = arith.constant 0 : index
    %c0_4 = arith.constant 0 : index
    %3 = vector.load %arg3[%2, %c0_3, %c0_4] : memref<50x1x32xf32, #tpu.memory_space<vmem>>, vector<1x1x32xf32>
    %4 = vector.shape_cast %3 : vector<1x1x32xf32> to vector<1x32xf32>
    %c0_5 = arith.constant 0 : index
    %c0_6 = arith.constant 0 : index
    %5 = vector.load %arg4[%c0_5, %c0_6] : memref<16x32xf32, #tpu.memory_space<vmem>>, vector<1x32xf32>
    %6 = arith.addf %4, %5 : vector<1x32xf32>
    %7 = arith.addf %6, %0 : vector<1x32xf32>
    %c0_7 = arith.constant 0 : index
    %c0_8 = arith.constant 0 : index
    %8 = vector.load %arg23[%c0_7, %c0_8] : memref<16x32xf32, #tpu.memory_space<vmem>>, vector<1x32xf32>
    tpu.vector_store %arg23[%c0_7, %c0_8], %7 {strides = array<i32>} : memref<16x32xf32, #tpu.memory_space<vmem>>, vector<1x32xf32>,
    %c0_9 = arith.constant 0 : index
    %c1 = arith.constant 1 : index
    %9 = memref.load %arg1[%c0_9, %c1] : memref<2x8xi32, #tpu.memory_space<smem>>
    %10 = arith.index_cast %9 : i32 to index
    %c0_10 = arith.constant 0 : index
    %c0_11 = arith.constant 0 : index
    %11 = vector.load %arg3[%10, %c0_10, %c0_11] : memref<50x1x32xf32, #tpu.memory_space<vmem>>, vector<1x1x32xf32>
    %12 = vector.shape_cast %11 : vector<1x1x32xf32> to vector<1x32xf32>
    %c1_12 = arith.constant 1 : index
    %c0_13 = arith.constant 0 : index
    %13 = vector.load %arg4[%c1_12, %c0_13] : memref<16x32xf32, #tpu.memory_space<vmem>>, vector<1x32xf32>
    %14 = arith.addf %12, %13 : vector<1x32xf32>
    %15 = arith.addf %14, %0 : vector<1x32xf32>
    %c1_14 = arith.constant 1 : index
    %c0_15 = arith.constant 0 : index
    %16 = vector.load %arg23[%c1_14, %c0_15] : memref<16x32xf32, #tpu.memory_space<vmem>>, vector<1x32xf32>
    tpu.vector_store %arg23[%c1_14, %c0_15], %15 {strides = array<i32>} : memref<16x32xf32, #tpu.memory_space<vmem>>, vector<1x32xf32>,
    %c0_16 = arith.constant 0 : index
    %c2 = arith.constant 2 : index
    %17 = memref.load %arg1[%c0_16, %c2] : memref<2x8xi32, #tpu.memory_space<smem>>
    %18 = arith.index_cast %17 : i32 to index
    %c0_17 = arith.constant 0 : index
    %c0_18 = arith.constant 0 : index
    %19 = vector.load %arg3[%18, %c0_17, %c0_18] : memref<50x1x32xf32, #tpu.memory_space<vmem>>, vector<1x1x32xf32>
    %20 = vector.shape_cast %19 : vector<1x1x32xf32> to vector<1x32xf32>
    %c2_19 = arith.constant 2 : index
    %c0_20 = arith.constant 0 : index
    %21 = vector.load %arg4[%c2_19, %c0_20] : memref<16x32xf32, #tpu.memory_space<vmem>>, vector<1x32xf32>
    %22 = arith.addf %20, %21 : vector<1x32xf32>
    %23 = arith.addf %22, %0 : vector<1x32xf32>
    %c2_21 = arith.constant 2 : index
    %c0_22 = arith.constant 0 : index
    %24 = vector.load %arg23[%c2_21, %c0_22] : memref<16x32xf32, #tpu.memory_space<vmem>>, vector<1x32xf32>
    tpu.vector_store %arg23[%c2_21, %c0_22], %23 {strides = array<i32>} : memref<16x32xf32, #tpu.memory_space<vmem>>, vector<1x32xf32>,
    %c0_23 = arith.constant 0 : index
    %c3 = arith.constant 3 : index
    %25 = memref.load %arg1[%c0_23, %c3] : memref<2x8xi32, #tpu.memory_space<smem>>
    %26 = arith.index_cast %25 : i32 to index
    %c0_24 = arith.constant 0 : index
    %c0_25 = arith.constant 0 : index
    %27 = vector.load %arg3[%26, %c0_24, %c0_25] : memref<50x1x32xf32, #tpu.memory_space<vmem>>, vector<1x1x32xf32>
    %28 = vector.shape_cast %27 : vector<1x1x32xf32> to vector<1x32xf32>
    %c3_26 = arith.constant 3 : index
    %c0_27 = arith.constant 0 : index
    %29 = vector.load %arg4[%c3_26, %c0_27] : memref<16x32xf32, #tpu.memory_space<vmem>>, vector<1x32xf32>
    %30 = arith.addf %28, %29 : vector<1x32xf32>
    %31 = arith.addf %30, %0 : vector<1x32xf32>
    %c3_28 = arith.constant 3 : index
    %c0_29 = arith.constant 0 : index
    %32 = vector.load %arg23[%c3_28, %c0_29] : memref<16x32xf32, #tpu.memory_space<vmem>>, vector<1x32xf32>
    tpu.vector_store %arg23[%c3_28, %c0_29], %31 {strides = array<i32>} : memref<16x32xf32, #tpu.memory_space<vmem>>, vector<1x32xf32>,
    %c0_30 = arith.constant 0 : index
    %c4 = arith.constant 4 : index
    %33 = memref.load %arg1[%c0_30, %c4] : memref<2x8xi32, #tpu.memory_space<smem>>
    %34 = arith.index_cast %33 : i32 to index
    %c0_31 = arith.constant 0 : index
    %c0_32 = arith.constant 0 : index
    %35 = vector.load %arg3[%34, %c0_31, %c0_32] : memref<50x1x32xf32, #tpu.memory_space<vmem>>, vector<1x1x32xf32>
    %36 = vector.shape_cast %35 : vector<1x1x32xf32> to vector<1x32xf32>
    %c4_33 = arith.constant 4 : index
    %c0_34 = arith.constant 0 : index
    %37 = vector.load %arg4[%c4_33, %c0_34] : memref<16x32xf32, #tpu.memory_space<vmem>>, vector<1x32xf32>
    %38 = arith.addf %36, %37 : vector<1x32xf32>
    %39 = arith.addf %38, %0 : vector<1x32xf32>
    %c4_35 = arith.constant 4 : index
    %c0_36 = arith.constant 0 : index
    %40 = vector.load %arg23[%c4_35, %c0_36] : memref<16x32xf32, #tpu.memory_space<vmem>>, vector<1x32xf32>
    tpu.vector_store %arg23[%c4_35, %c0_36], %39 {strides = array<i32>} : memref<16x32xf32, #tpu.memory_space<vmem>>, vector<1x32xf32>,
    %c0_37 = arith.constant 0 : index
    %c5 = arith.constant 5 : index
    %41 = memref.load %arg1[%c0_37, %c5] : memref<2x8xi32, #tpu.memory_space<smem>>
    %42 = arith.index_cast %41 : i32 to index
    %c0_38 = arith.constant 0 : index
    %c0_39 = arith.constant 0 : index
    %43 = vector.load %arg3[%42, %c0_38, %c0_39] : memref<50x1x32xf32, #tpu.memory_space<vmem>>, vector<1x1x32xf32>
    %44 = vector.shape_cast %43 : vector<1x1x32xf32> to vector<1x32xf32>
    %c5_40 = arith.constant 5 : index
    %c0_41 = arith.constant 0 : index
    %45 = vector.load %arg4[%c5_40, %c0_41] : memref<16x32xf32, #tpu.memory_space<vmem>>, vector<1x32xf32>
    %46 = arith.addf %44, %45 : vector<1x32xf32>
    %47 = arith.addf %46, %0 : vector<1x32xf32>
    %c5_42 = arith.constant 5 : index
    %c0_43 = arith.constant 0 : index
    %48 = vector.load %arg23[%c5_42, %c0_43] : memref<16x32xf32, #tpu.memory_space<vmem>>, vector<1x32xf32>
    tpu.vector_store %arg23[%c5_42, %c0_43], %47 {strides = array<i32>} : memref<16x32xf32, #tpu.memory_space<vmem>>, vector<1x32xf32>,
    %c0_44 = arith.constant 0 : index
    %c6 = arith.constant 6 : index
    %49 = memref.load %arg1[%c0_44, %c6] : memref<2x8xi32, #tpu.memory_space<smem>>
    %50 = arith.index_cast %49 : i32 to index
    %c0_45 = arith.constant 0 : index
    %c0_46 = arith.constant 0 : index
    %51 = vector.load %arg3[%50, %c0_45, %c0_46] : memref<50x1x32xf32, #tpu.memory_space<vmem>>, vector<1x1x32xf32>
    %52 = vector.shape_cast %51 : vector<1x1x32xf32> to vector<1x32xf32>
    %c6_47 = arith.constant 6 : index
    %c0_48 = arith.constant 0 : index
    %53 = vector.load %arg4[%c6_47, %c0_48] : memref<16x32xf32, #tpu.memory_space<vmem>>, vector<1x32xf32>
    %54 = arith.addf %52, %53 : vector<1x32xf32>
    %55 = arith.addf %54, %0 : vector<1x32xf32>
    %c6_49 = arith.constant 6 : index
    %c0_50 = arith.constant 0 : index
    %56 = vector.load %arg23[%c6_49, %c0_50] : memref<16x32xf32, #tpu.memory_space<vmem>>, vector<1x32xf32>
    tpu.vector_store %arg23[%c6_49, %c0_50], %55 {strides = array<i32>} : memref<16x32xf32, #tpu.memory_space<vmem>>, vector<1x32xf32>,
    %c0_51 = arith.constant 0 : index
    %c7 = arith.constant 7 : index
    %57 = memref.load %arg1[%c0_51, %c7] : memref<2x8xi32, #tpu.memory_space<smem>>
    %58 = arith.index_cast %57 : i32 to index
    %c0_52 = arith.constant 0 : index
    %c0_53 = arith.constant 0 : index
    %59 = vector.load %arg3[%58, %c0_52, %c0_53] : memref<50x1x32xf32, #tpu.memory_space<vmem>>, vector<1x1x32xf32>
    %60 = vector.shape_cast %59 : vector<1x1x32xf32> to vector<1x32xf32>
    %c7_54 = arith.constant 7 : index
    %c0_55 = arith.constant 0 : index
    %61 = vector.load %arg4[%c7_54, %c0_55] : memref<16x32xf32, #tpu.memory_space<vmem>>, vector<1x32xf32>
    %62 = arith.addf %60, %61 : vector<1x32xf32>
    %63 = arith.addf %62, %0 : vector<1x32xf32>
    %c7_56 = arith.constant 7 : index
    %c0_57 = arith.constant 0 : index
    %64 = vector.load %arg23[%c7_56, %c0_57] : memref<16x32xf32, #tpu.memory_space<vmem>>, vector<1x32xf32>
    tpu.vector_store %arg23[%c7_56, %c0_57], %63 {strides = array<i32>} : memref<16x32xf32, #tpu.memory_space<vmem>>, vector<1x32xf32>,
    %c1_58 = arith.constant 1 : index
    %c0_59 = arith.constant 0 : index
    %65 = memref.load %arg1[%c1_58, %c0_59] : memref<2x8xi32, #tpu.memory_space<smem>>
    %66 = arith.index_cast %65 : i32 to index
    %c0_60 = arith.constant 0 : index
    %c0_61 = arith.constant 0 : index
    %67 = vector.load %arg3[%66, %c0_60, %c0_61] : memref<50x1x32xf32, #tpu.memory_space<vmem>>, vector<1x1x32xf32>
    %68 = vector.shape_cast %67 : vector<1x1x32xf32> to vector<1x32xf32>
    %c0_62 = arith.constant 0 : index
    %c0_63 = arith.constant 0 : index
    %69 = vector.load %arg4[%c0_62, %c0_63] : memref<16x32xf32, #tpu.memory_space<vmem>>, vector<1x32xf32>
    %70 = arith.addf %68, %69 : vector<1x32xf32>
    %71 = arith.addf %70, %0 : vector<1x32xf32>
    %c8 = arith.constant 8 : index
    %c0_64 = arith.constant 0 : index
    %72 = vector.load %arg23[%c8, %c0_64] : memref<16x32xf32, #tpu.memory_space<vmem>>, vector<1x32xf32>
    tpu.vector_store %arg23[%c8, %c0_64], %71 {strides = array<i32>} : memref<16x32xf32, #tpu.memory_space<vmem>>, vector<1x32xf32>,
    %c1_65 = arith.constant 1 : index
    %c1_66 = arith.constant 1 : index
    %73 = memref.load %arg1[%c1_65, %c1_66] : memref<2x8xi32, #tpu.memory_space<smem>>
    %74 = arith.index_cast %73 : i32 to index
    %c0_67 = arith.constant 0 : index
    %c0_68 = arith.constant 0 : index
    %75 = vector.load %arg3[%74, %c0_67, %c0_68] : memref<50x1x32xf32, #tpu.memory_space<vmem>>, vector<1x1x32xf32>
    %76 = vector.shape_cast %75 : vector<1x1x32xf32> to vector<1x32xf32>
    %c1_69 = arith.constant 1 : index
    %c0_70 = arith.constant 0 : index
    %77 = vector.load %arg4[%c1_69, %c0_70] : memref<16x32xf32, #tpu.memory_space<vmem>>, vector<1x32xf32>
    %78 = arith.addf %76, %77 : vector<1x32xf32>
    %79 = arith.addf %78, %0 : vector<1x32xf32>
    %c9 = arith.constant 9 : index
    %c0_71 = arith.constant 0 : index
    %80 = vector.load %arg23[%c9, %c0_71] : memref<16x32xf32, #tpu.memory_space<vmem>>, vector<1x32xf32>
    tpu.vector_store %arg23[%c9, %c0_71], %79 {strides = array<i32>} : memref<16x32xf32, #tpu.memory_space<vmem>>, vector<1x32xf32>,
    %c1_72 = arith.constant 1 : index
    %c2_73 = arith.constant 2 : index
    %81 = memref.load %arg1[%c1_72, %c2_73] : memref<2x8xi32, #tpu.memory_space<smem>>
    %82 = arith.index_cast %81 : i32 to index
    %c0_74 = arith.constant 0 : index
    %c0_75 = arith.constant 0 : index
    %83 = vector.load %arg3[%82, %c0_74, %c0_75] : memref<50x1x32xf32, #tpu.memory_space<vmem>>, vector<1x1x32xf32>
    %84 = vector.shape_cast %83 : vector<1x1x32xf32> to vector<1x32xf32>
    %c2_76 = arith.constant 2 : index
    %c0_77 = arith.constant 0 : index
    %85 = vector.load %arg4[%c2_76, %c0_77] : memref<16x32xf32, #tpu.memory_space<vmem>>, vector<1x32xf32>
    %86 = arith.addf %84, %85 : vector<1x32xf32>
    %87 = arith.addf %86, %0 : vector<1x32xf32>
    %c10 = arith.constant 10 : index
    %c0_78 = arith.constant 0 : index
    %88 = vector.load %arg23[%c10, %c0_78] : memref<16x32xf32, #tpu.memory_space<vmem>>, vector<1x32xf32>
    tpu.vector_store %arg23[%c10, %c0_78], %87 {strides = array<i32>} : memref<16x32xf32, #tpu.memory_space<vmem>>, vector<1x32xf32>,
    %c1_79 = arith.constant 1 : index
    %c3_80 = arith.constant 3 : index
    %89 = memref.load %arg1[%c1_79, %c3_80] : memref<2x8xi32, #tpu.memory_space<smem>>
    %90 = arith.index_cast %89 : i32 to index
    %c0_81 = arith.constant 0 : index
    %c0_82 = arith.constant 0 : index
    %91 = vector.load %arg3[%90, %c0_81, %c0_82] : memref<50x1x32xf32, #tpu.memory_space<vmem>>, vector<1x1x32xf32>
    %92 = vector.shape_cast %91 : vector<1x1x32xf32> to vector<1x32xf32>
    %c3_83 = arith.constant 3 : index
    %c0_84 = arith.constant 0 : index
    %93 = vector.load %arg4[%c3_83, %c0_84] : memref<16x32xf32, #tpu.memory_space<vmem>>, vector<1x32xf32>
    %94 = arith.addf %92, %93 : vector<1x32xf32>
    %95 = arith.addf %94, %0 : vector<1x32xf32>
    %c11 = arith.constant 11 : index
    %c0_85 = arith.constant 0 : index
    %96 = vector.load %arg23[%c11, %c0_85] : memref<16x32xf32, #tpu.memory_space<vmem>>, vector<1x32xf32>
    tpu.vector_store %arg23[%c11, %c0_85], %95 {strides = array<i32>} : memref<16x32xf32, #tpu.memory_space<vmem>>, vector<1x32xf32>,
    %c1_86 = arith.constant 1 : index
    %c4_87 = arith.constant 4 : index
    %97 = memref.load %arg1[%c1_86, %c4_87] : memref<2x8xi32, #tpu.memory_space<smem>>
    %98 = arith.index_cast %97 : i32 to index
    %c0_88 = arith.constant 0 : index
    %c0_89 = arith.constant 0 : index
    %99 = vector.load %arg3[%98, %c0_88, %c0_89] : memref<50x1x32xf32, #tpu.memory_space<vmem>>, vector<1x1x32xf32>
    %100 = vector.shape_cast %99 : vector<1x1x32xf32> to vector<1x32xf32>
    %c4_90 = arith.constant 4 : index
    %c0_91 = arith.constant 0 : index
    %101 = vector.load %arg4[%c4_90, %c0_91] : memref<16x32xf32, #tpu.memory_space<vmem>>, vector<1x32xf32>
    %102 = arith.addf %100, %101 : vector<1x32xf32>
    %103 = arith.addf %102, %0 : vector<1x32xf32>
    %c12 = arith.constant 12 : index
    %c0_92 = arith.constant 0 : index
    %104 = vector.load %arg23[%c12, %c0_92] : memref<16x32xf32, #tpu.memory_space<vmem>>, vector<1x32xf32>
    tpu.vector_store %arg23[%c12, %c0_92], %103 {strides = array<i32>} : memref<16x32xf32, #tpu.memory_space<vmem>>, vector<1x32xf32>,
    %c1_93 = arith.constant 1 : index
    %c5_94 = arith.constant 5 : index
    %105 = memref.load %arg1[%c1_93, %c5_94] : memref<2x8xi32, #tpu.memory_space<smem>>
    %106 = arith.index_cast %105 : i32 to index
    %c0_95 = arith.constant 0 : index
    %c0_96 = arith.constant 0 : index
    %107 = vector.load %arg3[%106, %c0_95, %c0_96] : memref<50x1x32xf32, #tpu.memory_space<vmem>>, vector<1x1x32xf32>
    %108 = vector.shape_cast %107 : vector<1x1x32xf32> to vector<1x32xf32>
    %c5_97 = arith.constant 5 : index
    %c0_98 = arith.constant 0 : index
    %109 = vector.load %arg4[%c5_97, %c0_98] : memref<16x32xf32, #tpu.memory_space<vmem>>, vector<1x32xf32>
    %110 = arith.addf %108, %109 : vector<1x32xf32>
    %111 = arith.addf %110, %0 : vector<1x32xf32>
    %c13 = arith.constant 13 : index
    %c0_99 = arith.constant 0 : index
    %112 = vector.load %arg23[%c13, %c0_99] : memref<16x32xf32, #tpu.memory_space<vmem>>, vector<1x32xf32>
    tpu.vector_store %arg23[%c13, %c0_99], %111 {strides = array<i32>} : memref<16x32xf32, #tpu.memory_space<vmem>>, vector<1x32xf32>,
    %c1_100 = arith.constant 1 : index
    %c6_101 = arith.constant 6 : index
    %113 = memref.load %arg1[%c1_100, %c6_101] : memref<2x8xi32, #tpu.memory_space<smem>>
    %114 = arith.index_cast %113 : i32 to index
    %c0_102 = arith.constant 0 : index
    %c0_103 = arith.constant 0 : index
    %115 = vector.load %arg3[%114, %c0_102, %c0_103] : memref<50x1x32xf32, #tpu.memory_space<vmem>>, vector<1x1x32xf32>
    %116 = vector.shape_cast %115 : vector<1x1x32xf32> to vector<1x32xf32>
    %c6_104 = arith.constant 6 : index
    %c0_105 = arith.constant 0 : index
    %117 = vector.load %arg4[%c6_104, %c0_105] : memref<16x32xf32, #tpu.memory_space<vmem>>, vector<1x32xf32>
    %118 = arith.addf %116, %117 : vector<1x32xf32>
    %119 = arith.addf %118, %0 : vector<1x32xf32>
    %c14 = arith.constant 14 : index
    %c0_106 = arith.constant 0 : index
    %120 = vector.load %arg23[%c14, %c0_106] : memref<16x32xf32, #tpu.memory_space<vmem>>, vector<1x32xf32>
    tpu.vector_store %arg23[%c14, %c0_106], %119 {strides = array<i32>} : memref<16x32xf32, #tpu.memory_space<vmem>>, vector<1x32xf32>,
    %c1_107 = arith.constant 1 : index
    %c7_108 = arith.constant 7 : index
    %121 = memref.load %arg1[%c1_107, %c7_108] : memref<2x8xi32, #tpu.memory_space<smem>>
    %122 = arith.index_cast %121 : i32 to index
    %c0_109 = arith.constant 0 : index
    %c0_110 = arith.constant 0 : index
    %123 = vector.load %arg3[%122, %c0_109, %c0_110] : memref<50x1x32xf32, #tpu.memory_space<vmem>>, vector<1x1x32xf32>
    %124 = vector.shape_cast %123 : vector<1x1x32xf32> to vector<1x32xf32>
    %c7_111 = arith.constant 7 : index
    %c0_112 = arith.constant 0 : index
    %125 = vector.load %arg4[%c7_111, %c0_112] : memref<16x32xf32, #tpu.memory_space<vmem>>, vector<1x32xf32>
    %126 = arith.addf %124, %125 : vector<1x32xf32>
    %127 = arith.addf %126, %0 : vector<1x32xf32>
    %c15 = arith.constant 15 : index
    %c0_113 = arith.constant 0 : index
    %128 = vector.load %arg23[%c15, %c0_113] : memref<16x32xf32, #tpu.memory_space<vmem>>, vector<1x32xf32>
    tpu.vector_store %arg23[%c15, %c0_113], %127 {strides = array<i32>} : memref<16x32xf32, #tpu.memory_space<vmem>>, vector<1x32xf32>,
    %c0_114 = arith.constant 0 : index
    %c0_115 = arith.constant 0 : index
    %129 = vector.load %arg23[%c0_114, %c0_115] : memref<16x32xf32, #tpu.memory_space<vmem>>, vector<16x32xf32>
    %c0_116 = arith.constant 0 : index
    %c0_117 = arith.constant 0 : index
    %130 = vector.load %arg6[%c0_116, %c0_117] : memref<1x32xf32, #tpu.memory_space<vmem>>, vector<1x32xf32>
    %c0_118 = arith.constant 0 : index
    %c0_119 = arith.constant 0 : index
    %131 = vector.load %arg7[%c0_118, %c0_119] : memref<1x32xf32, #tpu.memory_space<vmem>>, vector<1x32xf32>
    %cst = arith.constant dense<0.000000e+00> : vector<16xf32>
    %132 = vector.multi_reduction <add>, %129, %cst [1] : vector<16x32xf32> to vector<16xf32>
    %133 = vector.shape_cast %132 : vector<16xf32> to vector<16x1xf32>
    %cst_120 = arith.constant 3.200000e+01 : f32
    %134 = vector.broadcast %cst_120 : f32 to vector<16x1xf32>
    %135 = arith.divf %133, %134 : vector<16x1xf32>
    %136 = vector.broadcast %135 : vector<16x1xf32> to vector<16x32xf32>
    %137 = arith.subf %129, %136 : vector<16x32xf32>
    %138 = arith.mulf %137, %137 : vector<16x32xf32>
    %cst_121 = arith.constant dense<0.000000e+00> : vector<16xf32>
    %139 = vector.multi_reduction <add>, %138, %cst_121 [1] : vector<16x32xf32> to vector<16xf32>
    %140 = vector.shape_cast %139 : vector<16xf32> to vector<16x1xf32>
    %cst_122 = arith.constant 3.200000e+01 : f32
    %141 = vector.broadcast %cst_122 : f32 to vector<16x1xf32>
    %142 = arith.divf %140, %141 : vector<16x1xf32>
    %cst_123 = arith.constant 9.99999996E-13 : f32
    %143 = vector.broadcast %cst_123 : f32 to vector<16x1xf32>
    %144 = arith.addf %142, %143 : vector<16x1xf32>
    %145 = math.rsqrt %144 : vector<16x1xf32>
    %146 = vector.broadcast %145 : vector<16x1xf32> to vector<16x32xf32>
    %147 = arith.mulf %137, %146 : vector<16x32xf32>
    %148 = vector.broadcast %130 : vector<1x32xf32> to vector<16x32xf32>
    %149 = arith.mulf %147, %148 : vector<16x32xf32>
    %150 = vector.broadcast %131 : vector<1x32xf32> to vector<16x32xf32>
    %151 = arith.addf %149, %150 : vector<16x32xf32>
    %c0_124 = arith.constant 0 : index
    %c0_125 = arith.constant 0 : index
    %152 = vector.load %arg2[%c0_124, %c0_125] : memref<2x8xi32, #tpu.memory_space<vmem>>, vector<2x8xi32>
    %153 = arith.sitofp %152 : vector<2x8xi32> to vector<2x8xf32>
    %cst_126 = arith.constant 1.000000e+00 : f32
    %154 = vector.broadcast %cst_126 : f32 to vector<2x8xf32>
    %155 = arith.subf %154, %153 : vector<2x8xf32>
    %cst_127 = arith.constant -1.000000e+04 : f32
    %156 = vector.broadcast %cst_127 : f32 to vector<2x8xf32>
    %157 = arith.mulf %155, %156 : vector<2x8xf32>
    %c0_128 = arith.constant 0 : index
    %c0_129 = arith.constant 0 : index
    %c0_130 = arith.constant 0 : index
    %158 = vector.load %arg8[%c0_128, %c0_129, %c0_130] : memref<2x32x96xf32, #tpu.memory_space<vmem>>, vector<1x32x96xf32>
    %159 = vector.shape_cast %158 : vector<1x32x96xf32> to vector<32x96xf32>
    %cst_131 = arith.constant dense<0.000000e+00> : vector<16x96xf32>
    %160 = tpu.matmul %151, %159, %cst_131 {dimension_numbers = #tpu.dot_dimension_numbers<[1], [0], [0], [1], [0, 0, 1, 1], [], []>} : vector<16x32xf32>, vector<32x96xf32>, vector<16x96xf32> -> vector<16x96xf32>
    %c0_132 = arith.constant 0 : index
    %c0_133 = arith.constant 0 : index
    %c0_134 = arith.constant 0 : index
    %161 = vector.load %arg9[%c0_132, %c0_133, %c0_134] : memref<2x1x96xf32, #tpu.memory_space<vmem>>, vector<1x1x96xf32>
    %162 = vector.shape_cast %161 : vector<1x1x96xf32> to vector<1x96xf32>
    %163 = vector.broadcast %162 : vector<1x96xf32> to vector<16x96xf32>
    %164 = arith.addf %160, %163 : vector<16x96xf32>
    %165 = vector.extract_strided_slice %164 {offsets = [0, 0], sizes = [8, 96], strides = [1, 1]} : vector<16x96xf32> to vector<8x96xf32>
    %166 = vector.extract_strided_slice %157 {offsets = [0, 0], sizes = [1, 8], strides = [1, 1]} : vector<2x8xf32> to vector<1x8xf32>
    %167 = vector.extract_strided_slice %165 {offsets = [0, 0], sizes = [8, 8], strides = [1, 1]} : vector<8x96xf32> to vector<8x8xf32>
    %168 = vector.extract_strided_slice %165 {offsets = [0, 32], sizes = [8, 8], strides = [1, 1]} : vector<8x96xf32> to vector<8x8xf32>
    %169 = vector.extract_strided_slice %165 {offsets = [0, 64], sizes = [8, 8], strides = [1, 1]} : vector<8x96xf32> to vector<8x8xf32>
    %cst_135 = arith.constant dense<0.000000e+00> : vector<8x8xf32>
    %170 = tpu.matmul %167, %168, %cst_135 {dimension_numbers = #tpu.dot_dimension_numbers<[1], [1], [0], [0], [0, 0, 1, 0], [], []>} : vector<8x8xf32>, vector<8x8xf32>, vector<8x8xf32> -> vector<8x8xf32>
    %171 = vector.broadcast %166 : vector<1x8xf32> to vector<8x8xf32>
    %172 = arith.addf %170, %171 : vector<8x8xf32>
    %cst_136 = arith.constant dense<0xFF800000> : vector<8xf32>
    %173 = vector.multi_reduction <maximumf>, %172, %cst_136 [1] : vector<8x8xf32> to vector<8xf32>
    %174 = vector.shape_cast %173 : vector<8xf32> to vector<8x1xf32>
    %175 = vector.broadcast %174 : vector<8x1xf32> to vector<8x8xf32>
    %176 = arith.subf %172, %175 : vector<8x8xf32>
    %177 = math.exp %176 : vector<8x8xf32>
    %cst_137 = arith.constant dense<0.000000e+00> : vector<8xf32>
    %178 = vector.multi_reduction <add>, %177, %cst_137 [1] : vector<8x8xf32> to vector<8xf32>
    %179 = vector.shape_cast %178 : vector<8xf32> to vector<8x1xf32>
    %180 = vector.broadcast %179 : vector<8x1xf32> to vector<8x8xf32>
    %181 = arith.divf %177, %180 : vector<8x8xf32>
    %cst_138 = arith.constant dense<0.000000e+00> : vector<8x8xf32>
    %182 = tpu.matmul %181, %169, %cst_138 {dimension_numbers = #tpu.dot_dimension_numbers<[1], [0], [0], [1], [0, 0, 1, 1], [], []>} : vector<8x8xf32>, vector<8x8xf32>, vector<8x8xf32> -> vector<8x8xf32>
    %c0_139 = arith.constant 0 : index
    %c0_140 = arith.constant 0 : index
    %183 = vector.load %arg24[%c0_139, %c0_140] : memref<16x32xf32, #tpu.memory_space<vmem>>, vector<8x8xf32>
    tpu.vector_store %arg24[%c0_139, %c0_140], %182 {strides = array<i32>} : memref<16x32xf32, #tpu.memory_space<vmem>>, vector<8x8xf32>,
    %184 = vector.extract_strided_slice %165 {offsets = [0, 8], sizes = [8, 8], strides = [1, 1]} : vector<8x96xf32> to vector<8x8xf32>
    %185 = vector.extract_strided_slice %165 {offsets = [0, 40], sizes = [8, 8], strides = [1, 1]} : vector<8x96xf32> to vector<8x8xf32>
    %186 = vector.extract_strided_slice %165 {offsets = [0, 72], sizes = [8, 8], strides = [1, 1]} : vector<8x96xf32> to vector<8x8xf32>
    %cst_141 = arith.constant dense<0.000000e+00> : vector<8x8xf32>
    %187 = tpu.matmul %184, %185, %cst_141 {dimension_numbers = #tpu.dot_dimension_numbers<[1], [1], [0], [0], [0, 0, 1, 0], [], []>} : vector<8x8xf32>, vector<8x8xf32>, vector<8x8xf32> -> vector<8x8xf32>
    %188 = vector.broadcast %166 : vector<1x8xf32> to vector<8x8xf32>
    %189 = arith.addf %187, %188 : vector<8x8xf32>
    %cst_142 = arith.constant dense<0xFF800000> : vector<8xf32>
    %190 = vector.multi_reduction <maximumf>, %189, %cst_142 [1] : vector<8x8xf32> to vector<8xf32>
    %191 = vector.shape_cast %190 : vector<8xf32> to vector<8x1xf32>
    %192 = vector.broadcast %191 : vector<8x1xf32> to vector<8x8xf32>
    %193 = arith.subf %189, %192 : vector<8x8xf32>
    %194 = math.exp %193 : vector<8x8xf32>
    %cst_143 = arith.constant dense<0.000000e+00> : vector<8xf32>
    %195 = vector.multi_reduction <add>, %194, %cst_143 [1] : vector<8x8xf32> to vector<8xf32>
    %196 = vector.shape_cast %195 : vector<8xf32> to vector<8x1xf32>
    %197 = vector.broadcast %196 : vector<8x1xf32> to vector<8x8xf32>
    %198 = arith.divf %194, %197 : vector<8x8xf32>
    %cst_144 = arith.constant dense<0.000000e+00> : vector<8x8xf32>
    %199 = tpu.matmul %198, %186, %cst_144 {dimension_numbers = #tpu.dot_dimension_numbers<[1], [0], [0], [1], [0, 0, 1, 1], [], []>} : vector<8x8xf32>, vector<8x8xf32>, vector<8x8xf32> -> vector<8x8xf32>
    %c0_145 = arith.constant 0 : index
    %c8_146 = arith.constant 8 : index
    %200 = vector.load %arg24[%c0_145, %c8_146] : memref<16x32xf32, #tpu.memory_space<vmem>>, vector<8x8xf32>
    tpu.vector_store %arg24[%c0_145, %c8_146], %199 {strides = array<i32>} : memref<16x32xf32, #tpu.memory_space<vmem>>, vector<8x8xf32>,
    %201 = vector.extract_strided_slice %165 {offsets = [0, 16], sizes = [8, 8], strides = [1, 1]} : vector<8x96xf32> to vector<8x8xf32>
    %202 = vector.extract_strided_slice %165 {offsets = [0, 48], sizes = [8, 8], strides = [1, 1]} : vector<8x96xf32> to vector<8x8xf32>
    %203 = vector.extract_strided_slice %165 {offsets = [0, 80], sizes = [8, 8], strides = [1, 1]} : vector<8x96xf32> to vector<8x8xf32>
    %cst_147 = arith.constant dense<0.000000e+00> : vector<8x8xf32>
    %204 = tpu.matmul %201, %202, %cst_147 {dimension_numbers = #tpu.dot_dimension_numbers<[1], [1], [0], [0], [0, 0, 1, 0], [], []>} : vector<8x8xf32>, vector<8x8xf32>, vector<8x8xf32> -> vector<8x8xf32>
    %205 = vector.broadcast %166 : vector<1x8xf32> to vector<8x8xf32>
    %206 = arith.addf %204, %205 : vector<8x8xf32>
    %cst_148 = arith.constant dense<0xFF800000> : vector<8xf32>
    %207 = vector.multi_reduction <maximumf>, %206, %cst_148 [1] : vector<8x8xf32> to vector<8xf32>
    %208 = vector.shape_cast %207 : vector<8xf32> to vector<8x1xf32>
    %209 = vector.broadcast %208 : vector<8x1xf32> to vector<8x8xf32>
    %210 = arith.subf %206, %209 : vector<8x8xf32>
    %211 = math.exp %210 : vector<8x8xf32>
    %cst_149 = arith.constant dense<0.000000e+00> : vector<8xf32>
    %212 = vector.multi_reduction <add>, %211, %cst_149 [1] : vector<8x8xf32> to vector<8xf32>
    %213 = vector.shape_cast %212 : vector<8xf32> to vector<8x1xf32>
    %214 = vector.broadcast %213 : vector<8x1xf32> to vector<8x8xf32>
    %215 = arith.divf %211, %214 : vector<8x8xf32>
    %cst_150 = arith.constant dense<0.000000e+00> : vector<8x8xf32>
    %216 = tpu.matmul %215, %203, %cst_150 {dimension_numbers = #tpu.dot_dimension_numbers<[1], [0], [0], [1], [0, 0, 1, 1], [], []>} : vector<8x8xf32>, vector<8x8xf32>, vector<8x8xf32> -> vector<8x8xf32>
    %c0_151 = arith.constant 0 : index
    %c16 = arith.constant 16 : index
    %217 = vector.load %arg24[%c0_151, %c16] : memref<16x32xf32, #tpu.memory_space<vmem>>, vector<8x8xf32>
    tpu.vector_store %arg24[%c0_151, %c16], %216 {strides = array<i32>} : memref<16x32xf32, #tpu.memory_space<vmem>>, vector<8x8xf32>,
    %218 = vector.extract_strided_slice %165 {offsets = [0, 24], sizes = [8, 8], strides = [1, 1]} : vector<8x96xf32> to vector<8x8xf32>
    %219 = vector.extract_strided_slice %165 {offsets = [0, 56], sizes = [8, 8], strides = [1, 1]} : vector<8x96xf32> to vector<8x8xf32>
    %220 = vector.extract_strided_slice %165 {offsets = [0, 88], sizes = [8, 8], strides = [1, 1]} : vector<8x96xf32> to vector<8x8xf32>
    %cst_152 = arith.constant dense<0.000000e+00> : vector<8x8xf32>
    %221 = tpu.matmul %218, %219, %cst_152 {dimension_numbers = #tpu.dot_dimension_numbers<[1], [1], [0], [0], [0, 0, 1, 0], [], []>} : vector<8x8xf32>, vector<8x8xf32>, vector<8x8xf32> -> vector<8x8xf32>
    %222 = vector.broadcast %166 : vector<1x8xf32> to vector<8x8xf32>
    %223 = arith.addf %221, %222 : vector<8x8xf32>
    %cst_153 = arith.constant dense<0xFF800000> : vector<8xf32>
    %224 = vector.multi_reduction <maximumf>, %223, %cst_153 [1] : vector<8x8xf32> to vector<8xf32>
    %225 = vector.shape_cast %224 : vector<8xf32> to vector<8x1xf32>
    %226 = vector.broadcast %225 : vector<8x1xf32> to vector<8x8xf32>
    %227 = arith.subf %223, %226 : vector<8x8xf32>
    %228 = math.exp %227 : vector<8x8xf32>
    %cst_154 = arith.constant dense<0.000000e+00> : vector<8xf32>
    %229 = vector.multi_reduction <add>, %228, %cst_154 [1] : vector<8x8xf32> to vector<8xf32>
    %230 = vector.shape_cast %229 : vector<8xf32> to vector<8x1xf32>
    %231 = vector.broadcast %230 : vector<8x1xf32> to vector<8x8xf32>
    %232 = arith.divf %228, %231 : vector<8x8xf32>
    %cst_155 = arith.constant dense<0.000000e+00> : vector<8x8xf32>
    %233 = tpu.matmul %232, %220, %cst_155 {dimension_numbers = #tpu.dot_dimension_numbers<[1], [0], [0], [1], [0, 0, 1, 1], [], []>} : vector<8x8xf32>, vector<8x8xf32>, vector<8x8xf32> -> vector<8x8xf32>
    %c0_156 = arith.constant 0 : index
    %c24 = arith.constant 24 : index
    %234 = vector.load %arg24[%c0_156, %c24] : memref<16x32xf32, #tpu.memory_space<vmem>>, vector<8x8xf32>
    tpu.vector_store %arg24[%c0_156, %c24], %233 {strides = array<i32>} : memref<16x32xf32, #tpu.memory_space<vmem>>, vector<8x8xf32>,
    %235 = vector.extract_strided_slice %164 {offsets = [8, 0], sizes = [8, 96], strides = [1, 1]} : vector<16x96xf32> to vector<8x96xf32>
    %236 = vector.extract_strided_slice %157 {offsets = [1, 0], sizes = [1, 8], strides = [1, 1]} : vector<2x8xf32> to vector<1x8xf32>
    %237 = vector.extract_strided_slice %235 {offsets = [0, 0], sizes = [8, 8], strides = [1, 1]} : vector<8x96xf32> to vector<8x8xf32>
    %238 = vector.extract_strided_slice %235 {offsets = [0, 32], sizes = [8, 8], strides = [1, 1]} : vector<8x96xf32> to vector<8x8xf32>
    %239 = vector.extract_strided_slice %235 {offsets = [0, 64], sizes = [8, 8], strides = [1, 1]} : vector<8x96xf32> to vector<8x8xf32>
    %cst_157 = arith.constant dense<0.000000e+00> : vector<8x8xf32>
    %240 = tpu.matmul %237, %238, %cst_157 {dimension_numbers = #tpu.dot_dimension_numbers<[1], [1], [0], [0], [0, 0, 1, 0], [], []>} : vector<8x8xf32>, vector<8x8xf32>, vector<8x8xf32> -> vector<8x8xf32>
    %241 = vector.broadcast %236 : vector<1x8xf32> to vector<8x8xf32>
    %242 = arith.addf %240, %241 : vector<8x8xf32>
    %cst_158 = arith.constant dense<0xFF800000> : vector<8xf32>
    %243 = vector.multi_reduction <maximumf>, %242, %cst_158 [1] : vector<8x8xf32> to vector<8xf32>
    %244 = vector.shape_cast %243 : vector<8xf32> to vector<8x1xf32>
    %245 = vector.broadcast %244 : vector<8x1xf32> to vector<8x8xf32>
    %246 = arith.subf %242, %245 : vector<8x8xf32>
    %247 = math.exp %246 : vector<8x8xf32>
    %cst_159 = arith.constant dense<0.000000e+00> : vector<8xf32>
    %248 = vector.multi_reduction <add>, %247, %cst_159 [1] : vector<8x8xf32> to vector<8xf32>
    %249 = vector.shape_cast %248 : vector<8xf32> to vector<8x1xf32>
    %250 = vector.broadcast %249 : vector<8x1xf32> to vector<8x8xf32>
    %251 = arith.divf %247, %250 : vector<8x8xf32>
    %cst_160 = arith.constant dense<0.000000e+00> : vector<8x8xf32>
    %252 = tpu.matmul %251, %239, %cst_160 {dimension_numbers = #tpu.dot_dimension_numbers<[1], [0], [0], [1], [0, 0, 1, 1], [], []>} : vector<8x8xf32>, vector<8x8xf32>, vector<8x8xf32> -> vector<8x8xf32>
    %c8_161 = arith.constant 8 : index
    %c0_162 = arith.constant 0 : index
    %253 = vector.load %arg24[%c8_161, %c0_162] : memref<16x32xf32, #tpu.memory_space<vmem>>, vector<8x8xf32>
    tpu.vector_store %arg24[%c8_161, %c0_162], %252 {strides = array<i32>} : memref<16x32xf32, #tpu.memory_space<vmem>>, vector<8x8xf32>,
    %254 = vector.extract_strided_slice %235 {offsets = [0, 8], sizes = [8, 8], strides = [1, 1]} : vector<8x96xf32> to vector<8x8xf32>
    %255 = vector.extract_strided_slice %235 {offsets = [0, 40], sizes = [8, 8], strides = [1, 1]} : vector<8x96xf32> to vector<8x8xf32>
    %256 = vector.extract_strided_slice %235 {offsets = [0, 72], sizes = [8, 8], strides = [1, 1]} : vector<8x96xf32> to vector<8x8xf32>
    %cst_163 = arith.constant dense<0.000000e+00> : vector<8x8xf32>
    %257 = tpu.matmul %254, %255, %cst_163 {dimension_numbers = #tpu.dot_dimension_numbers<[1], [1], [0], [0], [0, 0, 1, 0], [], []>} : vector<8x8xf32>, vector<8x8xf32>, vector<8x8xf32> -> vector<8x8xf32>
    %258 = vector.broadcast %236 : vector<1x8xf32> to vector<8x8xf32>
    %259 = arith.addf %257, %258 : vector<8x8xf32>
    %cst_164 = arith.constant dense<0xFF800000> : vector<8xf32>
    %260 = vector.multi_reduction <maximumf>, %259, %cst_164 [1] : vector<8x8xf32> to vector<8xf32>
    %261 = vector.shape_cast %260 : vector<8xf32> to vector<8x1xf32>
    %262 = vector.broadcast %261 : vector<8x1xf32> to vector<8x8xf32>
    %263 = arith.subf %259, %262 : vector<8x8xf32>
    %264 = math.exp %263 : vector<8x8xf32>
    %cst_165 = arith.constant dense<0.000000e+00> : vector<8xf32>
    %265 = vector.multi_reduction <add>, %264, %cst_165 [1] : vector<8x8xf32> to vector<8xf32>
    %266 = vector.shape_cast %265 : vector<8xf32> to vector<8x1xf32>
    %267 = vector.broadcast %266 : vector<8x1xf32> to vector<8x8xf32>
    %268 = arith.divf %264, %267 : vector<8x8xf32>
    %cst_166 = arith.constant dense<0.000000e+00> : vector<8x8xf32>
    %269 = tpu.matmul %268, %256, %cst_166 {dimension_numbers = #tpu.dot_dimension_numbers<[1], [0], [0], [1], [0, 0, 1, 1], [], []>} : vector<8x8xf32>, vector<8x8xf32>, vector<8x8xf32> -> vector<8x8xf32>
    %c8_167 = arith.constant 8 : index
    %c8_168 = arith.constant 8 : index
    %270 = vector.load %arg24[%c8_167, %c8_168] : memref<16x32xf32, #tpu.memory_space<vmem>>, vector<8x8xf32>
    tpu.vector_store %arg24[%c8_167, %c8_168], %269 {strides = array<i32>} : memref<16x32xf32, #tpu.memory_space<vmem>>, vector<8x8xf32>,
    %271 = vector.extract_strided_slice %235 {offsets = [0, 16], sizes = [8, 8], strides = [1, 1]} : vector<8x96xf32> to vector<8x8xf32>
    %272 = vector.extract_strided_slice %235 {offsets = [0, 48], sizes = [8, 8], strides = [1, 1]} : vector<8x96xf32> to vector<8x8xf32>
    %273 = vector.extract_strided_slice %235 {offsets = [0, 80], sizes = [8, 8], strides = [1, 1]} : vector<8x96xf32> to vector<8x8xf32>
    %cst_169 = arith.constant dense<0.000000e+00> : vector<8x8xf32>
    %274 = tpu.matmul %271, %272, %cst_169 {dimension_numbers = #tpu.dot_dimension_numbers<[1], [1], [0], [0], [0, 0, 1, 0], [], []>} : vector<8x8xf32>, vector<8x8xf32>, vector<8x8xf32> -> vector<8x8xf32>
    %275 = vector.broadcast %236 : vector<1x8xf32> to vector<8x8xf32>
    %276 = arith.addf %274, %275 : vector<8x8xf32>
    %cst_170 = arith.constant dense<0xFF800000> : vector<8xf32>
    %277 = vector.multi_reduction <maximumf>, %276, %cst_170 [1] : vector<8x8xf32> to vector<8xf32>
    %278 = vector.shape_cast %277 : vector<8xf32> to vector<8x1xf32>
    %279 = vector.broadcast %278 : vector<8x1xf32> to vector<8x8xf32>
    %280 = arith.subf %276, %279 : vector<8x8xf32>
    %281 = math.exp %280 : vector<8x8xf32>
    %cst_171 = arith.constant dense<0.000000e+00> : vector<8xf32>
    %282 = vector.multi_reduction <add>, %281, %cst_171 [1] : vector<8x8xf32> to vector<8xf32>
    %283 = vector.shape_cast %282 : vector<8xf32> to vector<8x1xf32>
    %284 = vector.broadcast %283 : vector<8x1xf32> to vector<8x8xf32>
    %285 = arith.divf %281, %284 : vector<8x8xf32>
    %cst_172 = arith.constant dense<0.000000e+00> : vector<8x8xf32>
    %286 = tpu.matmul %285, %273, %cst_172 {dimension_numbers = #tpu.dot_dimension_numbers<[1], [0], [0], [1], [0, 0, 1, 1], [], []>} : vector<8x8xf32>, vector<8x8xf32>, vector<8x8xf32> -> vector<8x8xf32>
    %c8_173 = arith.constant 8 : index
    %c16_174 = arith.constant 16 : index
    %287 = vector.load %arg24[%c8_173, %c16_174] : memref<16x32xf32, #tpu.memory_space<vmem>>, vector<8x8xf32>
    tpu.vector_store %arg24[%c8_173, %c16_174], %286 {strides = array<i32>} : memref<16x32xf32, #tpu.memory_space<vmem>>, vector<8x8xf32>,
    %288 = vector.extract_strided_slice %235 {offsets = [0, 24], sizes = [8, 8], strides = [1, 1]} : vector<8x96xf32> to vector<8x8xf32>
    %289 = vector.extract_strided_slice %235 {offsets = [0, 56], sizes = [8, 8], strides = [1, 1]} : vector<8x96xf32> to vector<8x8xf32>
    %290 = vector.extract_strided_slice %235 {offsets = [0, 88], sizes = [8, 8], strides = [1, 1]} : vector<8x96xf32> to vector<8x8xf32>
    %cst_175 = arith.constant dense<0.000000e+00> : vector<8x8xf32>
    %291 = tpu.matmul %288, %289, %cst_175 {dimension_numbers = #tpu.dot_dimension_numbers<[1], [1], [0], [0], [0, 0, 1, 0], [], []>} : vector<8x8xf32>, vector<8x8xf32>, vector<8x8xf32> -> vector<8x8xf32>
    %292 = vector.broadcast %236 : vector<1x8xf32> to vector<8x8xf32>
    %293 = arith.addf %291, %292 : vector<8x8xf32>
    %cst_176 = arith.constant dense<0xFF800000> : vector<8xf32>
    %294 = vector.multi_reduction <maximumf>, %293, %cst_176 [1] : vector<8x8xf32> to vector<8xf32>
    %295 = vector.shape_cast %294 : vector<8xf32> to vector<8x1xf32>
    %296 = vector.broadcast %295 : vector<8x1xf32> to vector<8x8xf32>
    %297 = arith.subf %293, %296 : vector<8x8xf32>
    %298 = math.exp %297 : vector<8x8xf32>
    %cst_177 = arith.constant dense<0.000000e+00> : vector<8xf32>
    %299 = vector.multi_reduction <add>, %298, %cst_177 [1] : vector<8x8xf32> to vector<8xf32>
    %300 = vector.shape_cast %299 : vector<8xf32> to vector<8x1xf32>
    %301 = vector.broadcast %300 : vector<8x1xf32> to vector<8x8xf32>
    %302 = arith.divf %298, %301 : vector<8x8xf32>
    %cst_178 = arith.constant dense<0.000000e+00> : vector<8x8xf32>
    %303 = tpu.matmul %302, %290, %cst_178 {dimension_numbers = #tpu.dot_dimension_numbers<[1], [0], [0], [1], [0, 0, 1, 1], [], []>} : vector<8x8xf32>, vector<8x8xf32>, vector<8x8xf32> -> vector<8x8xf32>
    %c8_179 = arith.constant 8 : index
    %c24_180 = arith.constant 24 : index
    %304 = vector.load %arg24[%c8_179, %c24_180] : memref<16x32xf32, #tpu.memory_space<vmem>>, vector<8x8xf32>
    tpu.vector_store %arg24[%c8_179, %c24_180], %303 {strides = array<i32>} : memref<16x32xf32, #tpu.memory_space<vmem>>, vector<8x8xf32>,
    %c0_181 = arith.constant 0 : index
    %c0_182 = arith.constant 0 : index
    %305 = vector.load %arg24[%c0_181, %c0_182] : memref<16x32xf32, #tpu.memory_space<vmem>>, vector<16x32xf32>
    %c0_183 = arith.constant 0 : index
    %c0_184 = arith.constant 0 : index
    %c0_185 = arith.constant 0 : index
    %306 = vector.load %arg10[%c0_183, %c0_184, %c0_185] : memref<2x32x32xf32, #tpu.memory_space<vmem>>, vector<1x32x32xf32>
    %307 = vector.shape_cast %306 : vector<1x32x32xf32> to vector<32x32xf32>
    %cst_186 = arith.constant dense<0.000000e+00> : vector<16x32xf32>
    %308 = tpu.matmul %305, %307, %cst_186 {dimension_numbers = #tpu.dot_dimension_numbers<[1], [0], [0], [1], [0, 0, 1, 1], [], []>} : vector<16x32xf32>, vector<32x32xf32>, vector<16x32xf32> -> vector<16x32xf32>
    %c0_187 = arith.constant 0 : index
    %c0_188 = arith.constant 0 : index
    %c0_189 = arith.constant 0 : index
    %309 = vector.load %arg11[%c0_187, %c0_188, %c0_189] : memref<2x1x32xf32, #tpu.memory_space<vmem>>, vector<1x1x32xf32>
    %310 = vector.shape_cast %309 : vector<1x1x32xf32> to vector<1x32xf32>
    %311 = vector.broadcast %310 : vector<1x32xf32> to vector<16x32xf32>
    %312 = arith.addf %308, %311 : vector<16x32xf32>
    %313 = arith.addf %312, %151 : vector<16x32xf32>
    %c0_190 = arith.constant 0 : index
    %c0_191 = arith.constant 0 : index
    %c0_192 = arith.constant 0 : index
    %314 = vector.load %arg12[%c0_190, %c0_191, %c0_192] : memref<2x1x32xf32, #tpu.memory_space<vmem>>, vector<1x1x32xf32>
    %315 = vector.shape_cast %314 : vector<1x1x32xf32> to vector<1x32xf32>
    %c0_193 = arith.constant 0 : index
    %c0_194 = arith.constant 0 : index
    %c0_195 = arith.constant 0 : index
    %316 = vector.load %arg13[%c0_193, %c0_194, %c0_195] : memref<2x1x32xf32, #tpu.memory_space<vmem>>, vector<1x1x32xf32>
    %317 = vector.shape_cast %316 : vector<1x1x32xf32> to vector<1x32xf32>
    %cst_196 = arith.constant dense<0.000000e+00> : vector<16xf32>
    %318 = vector.multi_reduction <add>, %313, %cst_196 [1] : vector<16x32xf32> to vector<16xf32>
    %319 = vector.shape_cast %318 : vector<16xf32> to vector<16x1xf32>
    %cst_197 = arith.constant 3.200000e+01 : f32
    %320 = vector.broadcast %cst_197 : f32 to vector<16x1xf32>
    %321 = arith.divf %319, %320 : vector<16x1xf32>
    %322 = vector.broadcast %321 : vector<16x1xf32> to vector<16x32xf32>
    %323 = arith.subf %313, %322 : vector<16x32xf32>
    %324 = arith.mulf %323, %323 : vector<16x32xf32>
    %cst_198 = arith.constant dense<0.000000e+00> : vector<16xf32>
    %325 = vector.multi_reduction <add>, %324, %cst_198 [1] : vector<16x32xf32> to vector<16xf32>
    %326 = vector.shape_cast %325 : vector<16xf32> to vector<16x1xf32>
    %cst_199 = arith.constant 3.200000e+01 : f32
    %327 = vector.broadcast %cst_199 : f32 to vector<16x1xf32>
    %328 = arith.divf %326, %327 : vector<16x1xf32>
    %cst_200 = arith.constant 9.99999996E-13 : f32
    %329 = vector.broadcast %cst_200 : f32 to vector<16x1xf32>
    %330 = arith.addf %328, %329 : vector<16x1xf32>
    %331 = math.rsqrt %330 : vector<16x1xf32>
    %332 = vector.broadcast %331 : vector<16x1xf32> to vector<16x32xf32>
    %333 = arith.mulf %323, %332 : vector<16x32xf32>
    %334 = vector.broadcast %315 : vector<1x32xf32> to vector<16x32xf32>
    %335 = arith.mulf %333, %334 : vector<16x32xf32>
    %336 = vector.broadcast %317 : vector<1x32xf32> to vector<16x32xf32>
    %337 = arith.addf %335, %336 : vector<16x32xf32>
    %c0_201 = arith.constant 0 : index
    %c0_202 = arith.constant 0 : index
    %c0_203 = arith.constant 0 : index
    %338 = vector.load %arg14[%c0_201, %c0_202, %c0_203] : memref<2x32x64xf32, #tpu.memory_space<vmem>>, vector<1x32x64xf32>
    %339 = vector.shape_cast %338 : vector<1x32x64xf32> to vector<32x64xf32>
    %cst_204 = arith.constant dense<0.000000e+00> : vector<16x64xf32>
    %340 = tpu.matmul %337, %339, %cst_204 {dimension_numbers = #tpu.dot_dimension_numbers<[1], [0], [0], [1], [0, 0, 1, 1], [], []>} : vector<16x32xf32>, vector<32x64xf32>, vector<16x64xf32> -> vector<16x64xf32>
    %c0_205 = arith.constant 0 : index
    %c0_206 = arith.constant 0 : index
    %c0_207 = arith.constant 0 : index
    %341 = vector.load %arg15[%c0_205, %c0_206, %c0_207] : memref<2x1x64xf32, #tpu.memory_space<vmem>>, vector<1x1x64xf32>
    %342 = vector.shape_cast %341 : vector<1x1x64xf32> to vector<1x64xf32>
    %343 = vector.broadcast %342 : vector<1x64xf32> to vector<16x64xf32>
    %344 = arith.addf %340, %343 : vector<16x64xf32>
    %cst_208 = arith.constant 5.000000e-01 : f32
    %345 = vector.broadcast %cst_208 : f32 to vector<16x64xf32>
    %346 = arith.mulf %345, %344 : vector<16x64xf32>
    %cst_209 = arith.constant 0.707106769 : f32
    %347 = vector.broadcast %cst_209 : f32 to vector<16x64xf32>
    %348 = arith.mulf %344, %347 : vector<16x64xf32>
    %349 = math.erf %348 : vector<16x64xf32>
    %cst_210 = arith.constant 1.000000e+00 : f32
    %350 = vector.broadcast %cst_210 : f32 to vector<16x64xf32>
    %351 = arith.addf %350, %349 : vector<16x64xf32>
    %352 = arith.mulf %346, %351 : vector<16x64xf32>
    %c0_211 = arith.constant 0 : index
    %c0_212 = arith.constant 0 : index
    %c0_213 = arith.constant 0 : index
    %353 = vector.load %arg16[%c0_211, %c0_212, %c0_213] : memref<2x64x32xf32, #tpu.memory_space<vmem>>, vector<1x64x32xf32>
    %354 = vector.shape_cast %353 : vector<1x64x32xf32> to vector<64x32xf32>
    %cst_214 = arith.constant dense<0.000000e+00> : vector<16x32xf32>
    %355 = tpu.matmul %352, %354, %cst_214 {dimension_numbers = #tpu.dot_dimension_numbers<[1], [0], [0], [1], [0, 0, 1, 1], [], []>} : vector<16x64xf32>, vector<64x32xf32>, vector<16x32xf32> -> vector<16x32xf32>
    %c0_215 = arith.constant 0 : index
    %c0_216 = arith.constant 0 : index
    %c0_217 = arith.constant 0 : index
    %356 = vector.load %arg17[%c0_215, %c0_216, %c0_217] : memref<2x1x32xf32, #tpu.memory_space<vmem>>, vector<1x1x32xf32>
    %357 = vector.shape_cast %356 : vector<1x1x32xf32> to vector<1x32xf32>
    %358 = vector.broadcast %357 : vector<1x32xf32> to vector<16x32xf32>
    %359 = arith.addf %355, %358 : vector<16x32xf32>
    %360 = arith.addf %359, %337 : vector<16x32xf32>
    %c0_218 = arith.constant 0 : index
    %c0_219 = arith.constant 0 : index
    %c0_220 = arith.constant 0 : index
    %361 = vector.load %arg18[%c0_218, %c0_219, %c0_220] : memref<2x1x32xf32, #tpu.memory_space<vmem>>, vector<1x1x32xf32>
    %362 = vector.shape_cast %361 : vector<1x1x32xf32> to vector<1x32xf32>
    %c0_221 = arith.constant 0 : index
    %c0_222 = arith.constant 0 : index
    %c0_223 = arith.constant 0 : index
    %363 = vector.load %arg19[%c0_221, %c0_222, %c0_223] : memref<2x1x32xf32, #tpu.memory_space<vmem>>, vector<1x1x32xf32>
    %364 = vector.shape_cast %363 : vector<1x1x32xf32> to vector<1x32xf32>
    %cst_224 = arith.constant dense<0.000000e+00> : vector<16xf32>
    %365 = vector.multi_reduction <add>, %360, %cst_224 [1] : vector<16x32xf32> to vector<16xf32>
    %366 = vector.shape_cast %365 : vector<16xf32> to vector<16x1xf32>
    %cst_225 = arith.constant 3.200000e+01 : f32
    %367 = vector.broadcast %cst_225 : f32 to vector<16x1xf32>
    %368 = arith.divf %366, %367 : vector<16x1xf32>
    %369 = vector.broadcast %368 : vector<16x1xf32> to vector<16x32xf32>
    %370 = arith.subf %360, %369 : vector<16x32xf32>
    %371 = arith.mulf %370, %370 : vector<16x32xf32>
    %cst_226 = arith.constant dense<0.000000e+00> : vector<16xf32>
    %372 = vector.multi_reduction <add>, %371, %cst_226 [1] : vector<16x32xf32> to vector<16xf32>
    %373 = vector.shape_cast %372 : vector<16xf32> to vector<16x1xf32>
    %cst_227 = arith.constant 3.200000e+01 : f32
    %374 = vector.broadcast %cst_227 : f32 to vector<16x1xf32>
    %375 = arith.divf %373, %374 : vector<16x1xf32>
    %cst_228 = arith.constant 9.99999996E-13 : f32
    %376 = vector.broadcast %cst_228 : f32 to vector<16x1xf32>
    %377 = arith.addf %375, %376 : vector<16x1xf32>
    %378 = math.rsqrt %377 : vector<16x1xf32>
    %379 = vector.broadcast %378 : vector<16x1xf32> to vector<16x32xf32>
    %380 = arith.mulf %370, %379 : vector<16x32xf32>
    %381 = vector.broadcast %362 : vector<1x32xf32> to vector<16x32xf32>
    %382 = arith.mulf %380, %381 : vector<16x32xf32>
    %383 = vector.broadcast %364 : vector<1x32xf32> to vector<16x32xf32>
    %384 = arith.addf %382, %383 : vector<16x32xf32>
    %c1_229 = arith.constant 1 : index
    %c0_230 = arith.constant 0 : index
    %c0_231 = arith.constant 0 : index
    %385 = vector.load %arg8[%c1_229, %c0_230, %c0_231] : memref<2x32x96xf32, #tpu.memory_space<vmem>>, vector<1x32x96xf32>
    %386 = vector.shape_cast %385 : vector<1x32x96xf32> to vector<32x96xf32>
    %cst_232 = arith.constant dense<0.000000e+00> : vector<16x96xf32>
    %387 = tpu.matmul %384, %386, %cst_232 {dimension_numbers = #tpu.dot_dimension_numbers<[1], [0], [0], [1], [0, 0, 1, 1], [], []>} : vector<16x32xf32>, vector<32x96xf32>, vector<16x96xf32> -> vector<16x96xf32>
    %c1_233 = arith.constant 1 : index
    %c0_234 = arith.constant 0 : index
    %c0_235 = arith.constant 0 : index
    %388 = vector.load %arg9[%c1_233, %c0_234, %c0_235] : memref<2x1x96xf32, #tpu.memory_space<vmem>>, vector<1x1x96xf32>
    %389 = vector.shape_cast %388 : vector<1x1x96xf32> to vector<1x96xf32>
    %390 = vector.broadcast %389 : vector<1x96xf32> to vector<16x96xf32>
    %391 = arith.addf %387, %390 : vector<16x96xf32>
    %392 = vector.extract_strided_slice %391 {offsets = [0, 0], sizes = [8, 96], strides = [1, 1]} : vector<16x96xf32> to vector<8x96xf32>
    %393 = vector.extract_strided_slice %157 {offsets = [0, 0], sizes = [1, 8], strides = [1, 1]} : vector<2x8xf32> to vector<1x8xf32>
    %394 = vector.extract_strided_slice %392 {offsets = [0, 0], sizes = [8, 8], strides = [1, 1]} : vector<8x96xf32> to vector<8x8xf32>
    %395 = vector.extract_strided_slice %392 {offsets = [0, 32], sizes = [8, 8], strides = [1, 1]} : vector<8x96xf32> to vector<8x8xf32>
    %396 = vector.extract_strided_slice %392 {offsets = [0, 64], sizes = [8, 8], strides = [1, 1]} : vector<8x96xf32> to vector<8x8xf32>
    %cst_236 = arith.constant dense<0.000000e+00> : vector<8x8xf32>
    %397 = tpu.matmul %394, %395, %cst_236 {dimension_numbers = #tpu.dot_dimension_numbers<[1], [1], [0], [0], [0, 0, 1, 0], [], []>} : vector<8x8xf32>, vector<8x8xf32>, vector<8x8xf32> -> vector<8x8xf32>
    %398 = vector.broadcast %393 : vector<1x8xf32> to vector<8x8xf32>
    %399 = arith.addf %397, %398 : vector<8x8xf32>
    %cst_237 = arith.constant dense<0xFF800000> : vector<8xf32>
    %400 = vector.multi_reduction <maximumf>, %399, %cst_237 [1] : vector<8x8xf32> to vector<8xf32>
    %401 = vector.shape_cast %400 : vector<8xf32> to vector<8x1xf32>
    %402 = vector.broadcast %401 : vector<8x1xf32> to vector<8x8xf32>
    %403 = arith.subf %399, %402 : vector<8x8xf32>
    %404 = math.exp %403 : vector<8x8xf32>
    %cst_238 = arith.constant dense<0.000000e+00> : vector<8xf32>
    %405 = vector.multi_reduction <add>, %404, %cst_238 [1] : vector<8x8xf32> to vector<8xf32>
    %406 = vector.shape_cast %405 : vector<8xf32> to vector<8x1xf32>
    %407 = vector.broadcast %406 : vector<8x1xf32> to vector<8x8xf32>
    %408 = arith.divf %404, %407 : vector<8x8xf32>
    %cst_239 = arith.constant dense<0.000000e+00> : vector<8x8xf32>
    %409 = tpu.matmul %408, %396, %cst_239 {dimension_numbers = #tpu.dot_dimension_numbers<[1], [0], [0], [1], [0, 0, 1, 1], [], []>} : vector<8x8xf32>, vector<8x8xf32>, vector<8x8xf32> -> vector<8x8xf32>
    %c0_240 = arith.constant 0 : index
    %c0_241 = arith.constant 0 : index
    %410 = vector.load %arg24[%c0_240, %c0_241] : memref<16x32xf32, #tpu.memory_space<vmem>>, vector<8x8xf32>
    tpu.vector_store %arg24[%c0_240, %c0_241], %409 {strides = array<i32>} : memref<16x32xf32, #tpu.memory_space<vmem>>, vector<8x8xf32>,
    %411 = vector.extract_strided_slice %392 {offsets = [0, 8], sizes = [8, 8], strides = [1, 1]} : vector<8x96xf32> to vector<8x8xf32>
    %412 = vector.extract_strided_slice %392 {offsets = [0, 40], sizes = [8, 8], strides = [1, 1]} : vector<8x96xf32> to vector<8x8xf32>
    %413 = vector.extract_strided_slice %392 {offsets = [0, 72], sizes = [8, 8], strides = [1, 1]} : vector<8x96xf32> to vector<8x8xf32>
    %cst_242 = arith.constant dense<0.000000e+00> : vector<8x8xf32>
    %414 = tpu.matmul %411, %412, %cst_242 {dimension_numbers = #tpu.dot_dimension_numbers<[1], [1], [0], [0], [0, 0, 1, 0], [], []>} : vector<8x8xf32>, vector<8x8xf32>, vector<8x8xf32> -> vector<8x8xf32>
    %415 = vector.broadcast %393 : vector<1x8xf32> to vector<8x8xf32>
    %416 = arith.addf %414, %415 : vector<8x8xf32>
    %cst_243 = arith.constant dense<0xFF800000> : vector<8xf32>
    %417 = vector.multi_reduction <maximumf>, %416, %cst_243 [1] : vector<8x8xf32> to vector<8xf32>
    %418 = vector.shape_cast %417 : vector<8xf32> to vector<8x1xf32>
    %419 = vector.broadcast %418 : vector<8x1xf32> to vector<8x8xf32>
    %420 = arith.subf %416, %419 : vector<8x8xf32>
    %421 = math.exp %420 : vector<8x8xf32>
    %cst_244 = arith.constant dense<0.000000e+00> : vector<8xf32>
    %422 = vector.multi_reduction <add>, %421, %cst_244 [1] : vector<8x8xf32> to vector<8xf32>
    %423 = vector.shape_cast %422 : vector<8xf32> to vector<8x1xf32>
    %424 = vector.broadcast %423 : vector<8x1xf32> to vector<8x8xf32>
    %425 = arith.divf %421, %424 : vector<8x8xf32>
    %cst_245 = arith.constant dense<0.000000e+00> : vector<8x8xf32>
    %426 = tpu.matmul %425, %413, %cst_245 {dimension_numbers = #tpu.dot_dimension_numbers<[1], [0], [0], [1], [0, 0, 1, 1], [], []>} : vector<8x8xf32>, vector<8x8xf32>, vector<8x8xf32> -> vector<8x8xf32>
    %c0_246 = arith.constant 0 : index
    %c8_247 = arith.constant 8 : index
    %427 = vector.load %arg24[%c0_246, %c8_247] : memref<16x32xf32, #tpu.memory_space<vmem>>, vector<8x8xf32>
    tpu.vector_store %arg24[%c0_246, %c8_247], %426 {strides = array<i32>} : memref<16x32xf32, #tpu.memory_space<vmem>>, vector<8x8xf32>,
    %428 = vector.extract_strided_slice %392 {offsets = [0, 16], sizes = [8, 8], strides = [1, 1]} : vector<8x96xf32> to vector<8x8xf32>
    %429 = vector.extract_strided_slice %392 {offsets = [0, 48], sizes = [8, 8], strides = [1, 1]} : vector<8x96xf32> to vector<8x8xf32>
    %430 = vector.extract_strided_slice %392 {offsets = [0, 80], sizes = [8, 8], strides = [1, 1]} : vector<8x96xf32> to vector<8x8xf32>
    %cst_248 = arith.constant dense<0.000000e+00> : vector<8x8xf32>
    %431 = tpu.matmul %428, %429, %cst_248 {dimension_numbers = #tpu.dot_dimension_numbers<[1], [1], [0], [0], [0, 0, 1, 0], [], []>} : vector<8x8xf32>, vector<8x8xf32>, vector<8x8xf32> -> vector<8x8xf32>
    %432 = vector.broadcast %393 : vector<1x8xf32> to vector<8x8xf32>
    %433 = arith.addf %431, %432 : vector<8x8xf32>
    %cst_249 = arith.constant dense<0xFF800000> : vector<8xf32>
    %434 = vector.multi_reduction <maximumf>, %433, %cst_249 [1] : vector<8x8xf32> to vector<8xf32>
    %435 = vector.shape_cast %434 : vector<8xf32> to vector<8x1xf32>
    %436 = vector.broadcast %435 : vector<8x1xf32> to vector<8x8xf32>
    %437 = arith.subf %433, %436 : vector<8x8xf32>
    %438 = math.exp %437 : vector<8x8xf32>
    %cst_250 = arith.constant dense<0.000000e+00> : vector<8xf32>
    %439 = vector.multi_reduction <add>, %438, %cst_250 [1] : vector<8x8xf32> to vector<8xf32>
    %440 = vector.shape_cast %439 : vector<8xf32> to vector<8x1xf32>
    %441 = vector.broadcast %440 : vector<8x1xf32> to vector<8x8xf32>
    %442 = arith.divf %438, %441 : vector<8x8xf32>
    %cst_251 = arith.constant dense<0.000000e+00> : vector<8x8xf32>
    %443 = tpu.matmul %442, %430, %cst_251 {dimension_numbers = #tpu.dot_dimension_numbers<[1], [0], [0], [1], [0, 0, 1, 1], [], []>} : vector<8x8xf32>, vector<8x8xf32>, vector<8x8xf32> -> vector<8x8xf32>
    %c0_252 = arith.constant 0 : index
    %c16_253 = arith.constant 16 : index
    %444 = vector.load %arg24[%c0_252, %c16_253] : memref<16x32xf32, #tpu.memory_space<vmem>>, vector<8x8xf32>
    tpu.vector_store %arg24[%c0_252, %c16_253], %443 {strides = array<i32>} : memref<16x32xf32, #tpu.memory_space<vmem>>, vector<8x8xf32>,
    %445 = vector.extract_strided_slice %392 {offsets = [0, 24], sizes = [8, 8], strides = [1, 1]} : vector<8x96xf32> to vector<8x8xf32>
    %446 = vector.extract_strided_slice %392 {offsets = [0, 56], sizes = [8, 8], strides = [1, 1]} : vector<8x96xf32> to vector<8x8xf32>
    %447 = vector.extract_strided_slice %392 {offsets = [0, 88], sizes = [8, 8], strides = [1, 1]} : vector<8x96xf32> to vector<8x8xf32>
    %cst_254 = arith.constant dense<0.000000e+00> : vector<8x8xf32>
    %448 = tpu.matmul %445, %446, %cst_254 {dimension_numbers = #tpu.dot_dimension_numbers<[1], [1], [0], [0], [0, 0, 1, 0], [], []>} : vector<8x8xf32>, vector<8x8xf32>, vector<8x8xf32> -> vector<8x8xf32>
    %449 = vector.broadcast %393 : vector<1x8xf32> to vector<8x8xf32>
    %450 = arith.addf %448, %449 : vector<8x8xf32>
    %cst_255 = arith.constant dense<0xFF800000> : vector<8xf32>
    %451 = vector.multi_reduction <maximumf>, %450, %cst_255 [1] : vector<8x8xf32> to vector<8xf32>
    %452 = vector.shape_cast %451 : vector<8xf32> to vector<8x1xf32>
    %453 = vector.broadcast %452 : vector<8x1xf32> to vector<8x8xf32>
    %454 = arith.subf %450, %453 : vector<8x8xf32>
    %455 = math.exp %454 : vector<8x8xf32>
    %cst_256 = arith.constant dense<0.000000e+00> : vector<8xf32>
    %456 = vector.multi_reduction <add>, %455, %cst_256 [1] : vector<8x8xf32> to vector<8xf32>
    %457 = vector.shape_cast %456 : vector<8xf32> to vector<8x1xf32>
    %458 = vector.broadcast %457 : vector<8x1xf32> to vector<8x8xf32>
    %459 = arith.divf %455, %458 : vector<8x8xf32>
    %cst_257 = arith.constant dense<0.000000e+00> : vector<8x8xf32>
    %460 = tpu.matmul %459, %447, %cst_257 {dimension_numbers = #tpu.dot_dimension_numbers<[1], [0], [0], [1], [0, 0, 1, 1], [], []>} : vector<8x8xf32>, vector<8x8xf32>, vector<8x8xf32> -> vector<8x8xf32>
    %c0_258 = arith.constant 0 : index
    %c24_259 = arith.constant 24 : index
    %461 = vector.load %arg24[%c0_258, %c24_259] : memref<16x32xf32, #tpu.memory_space<vmem>>, vector<8x8xf32>
    tpu.vector_store %arg24[%c0_258, %c24_259], %460 {strides = array<i32>} : memref<16x32xf32, #tpu.memory_space<vmem>>, vector<8x8xf32>,
    %462 = vector.extract_strided_slice %391 {offsets = [8, 0], sizes = [8, 96], strides = [1, 1]} : vector<16x96xf32> to vector<8x96xf32>
    %463 = vector.extract_strided_slice %157 {offsets = [1, 0], sizes = [1, 8], strides = [1, 1]} : vector<2x8xf32> to vector<1x8xf32>
    %464 = vector.extract_strided_slice %462 {offsets = [0, 0], sizes = [8, 8], strides = [1, 1]} : vector<8x96xf32> to vector<8x8xf32>
    %465 = vector.extract_strided_slice %462 {offsets = [0, 32], sizes = [8, 8], strides = [1, 1]} : vector<8x96xf32> to vector<8x8xf32>
    %466 = vector.extract_strided_slice %462 {offsets = [0, 64], sizes = [8, 8], strides = [1, 1]} : vector<8x96xf32> to vector<8x8xf32>
    %cst_260 = arith.constant dense<0.000000e+00> : vector<8x8xf32>
    %467 = tpu.matmul %464, %465, %cst_260 {dimension_numbers = #tpu.dot_dimension_numbers<[1], [1], [0], [0], [0, 0, 1, 0], [], []>} : vector<8x8xf32>, vector<8x8xf32>, vector<8x8xf32> -> vector<8x8xf32>
    %468 = vector.broadcast %463 : vector<1x8xf32> to vector<8x8xf32>
    %469 = arith.addf %467, %468 : vector<8x8xf32>
    %cst_261 = arith.constant dense<0xFF800000> : vector<8xf32>
    %470 = vector.multi_reduction <maximumf>, %469, %cst_261 [1] : vector<8x8xf32> to vector<8xf32>
    %471 = vector.shape_cast %470 : vector<8xf32> to vector<8x1xf32>
    %472 = vector.broadcast %471 : vector<8x1xf32> to vector<8x8xf32>
    %473 = arith.subf %469, %472 : vector<8x8xf32>
    %474 = math.exp %473 : vector<8x8xf32>
    %cst_262 = arith.constant dense<0.000000e+00> : vector<8xf32>
    %475 = vector.multi_reduction <add>, %474, %cst_262 [1] : vector<8x8xf32> to vector<8xf32>
    %476 = vector.shape_cast %475 : vector<8xf32> to vector<8x1xf32>
    %477 = vector.broadcast %476 : vector<8x1xf32> to vector<8x8xf32>
    %478 = arith.divf %474, %477 : vector<8x8xf32>
    %cst_263 = arith.constant dense<0.000000e+00> : vector<8x8xf32>
    %479 = tpu.matmul %478, %466, %cst_263 {dimension_numbers = #tpu.dot_dimension_numbers<[1], [0], [0], [1], [0, 0, 1, 1], [], []>} : vector<8x8xf32>, vector<8x8xf32>, vector<8x8xf32> -> vector<8x8xf32>
    %c8_264 = arith.constant 8 : index
    %c0_265 = arith.constant 0 : index
    %480 = vector.load %arg24[%c8_264, %c0_265] : memref<16x32xf32, #tpu.memory_space<vmem>>, vector<8x8xf32>
    tpu.vector_store %arg24[%c8_264, %c0_265], %479 {strides = array<i32>} : memref<16x32xf32, #tpu.memory_space<vmem>>, vector<8x8xf32>,
    %481 = vector.extract_strided_slice %462 {offsets = [0, 8], sizes = [8, 8], strides = [1, 1]} : vector<8x96xf32> to vector<8x8xf32>
    %482 = vector.extract_strided_slice %462 {offsets = [0, 40], sizes = [8, 8], strides = [1, 1]} : vector<8x96xf32> to vector<8x8xf32>
    %483 = vector.extract_strided_slice %462 {offsets = [0, 72], sizes = [8, 8], strides = [1, 1]} : vector<8x96xf32> to vector<8x8xf32>
    %cst_266 = arith.constant dense<0.000000e+00> : vector<8x8xf32>
    %484 = tpu.matmul %481, %482, %cst_266 {dimension_numbers = #tpu.dot_dimension_numbers<[1], [1], [0], [0], [0, 0, 1, 0], [], []>} : vector<8x8xf32>, vector<8x8xf32>, vector<8x8xf32> -> vector<8x8xf32>
    %485 = vector.broadcast %463 : vector<1x8xf32> to vector<8x8xf32>
    %486 = arith.addf %484, %485 : vector<8x8xf32>
    %cst_267 = arith.constant dense<0xFF800000> : vector<8xf32>
    %487 = vector.multi_reduction <maximumf>, %486, %cst_267 [1] : vector<8x8xf32> to vector<8xf32>
    %488 = vector.shape_cast %487 : vector<8xf32> to vector<8x1xf32>
    %489 = vector.broadcast %488 : vector<8x1xf32> to vector<8x8xf32>
    %490 = arith.subf %486, %489 : vector<8x8xf32>
    %491 = math.exp %490 : vector<8x8xf32>
    %cst_268 = arith.constant dense<0.000000e+00> : vector<8xf32>
    %492 = vector.multi_reduction <add>, %491, %cst_268 [1] : vector<8x8xf32> to vector<8xf32>
    %493 = vector.shape_cast %492 : vector<8xf32> to vector<8x1xf32>
    %494 = vector.broadcast %493 : vector<8x1xf32> to vector<8x8xf32>
    %495 = arith.divf %491, %494 : vector<8x8xf32>
    %cst_269 = arith.constant dense<0.000000e+00> : vector<8x8xf32>
    %496 = tpu.matmul %495, %483, %cst_269 {dimension_numbers = #tpu.dot_dimension_numbers<[1], [0], [0], [1], [0, 0, 1, 1], [], []>} : vector<8x8xf32>, vector<8x8xf32>, vector<8x8xf32> -> vector<8x8xf32>
    %c8_270 = arith.constant 8 : index
    %c8_271 = arith.constant 8 : index
    %497 = vector.load %arg24[%c8_270, %c8_271] : memref<16x32xf32, #tpu.memory_space<vmem>>, vector<8x8xf32>
    tpu.vector_store %arg24[%c8_270, %c8_271], %496 {strides = array<i32>} : memref<16x32xf32, #tpu.memory_space<vmem>>, vector<8x8xf32>,
    %498 = vector.extract_strided_slice %462 {offsets = [0, 16], sizes = [8, 8], strides = [1, 1]} : vector<8x96xf32> to vector<8x8xf32>
    %499 = vector.extract_strided_slice %462 {offsets = [0, 48], sizes = [8, 8], strides = [1, 1]} : vector<8x96xf32> to vector<8x8xf32>
    %500 = vector.extract_strided_slice %462 {offsets = [0, 80], sizes = [8, 8], strides = [1, 1]} : vector<8x96xf32> to vector<8x8xf32>
    %cst_272 = arith.constant dense<0.000000e+00> : vector<8x8xf32>
    %501 = tpu.matmul %498, %499, %cst_272 {dimension_numbers = #tpu.dot_dimension_numbers<[1], [1], [0], [0], [0, 0, 1, 0], [], []>} : vector<8x8xf32>, vector<8x8xf32>, vector<8x8xf32> -> vector<8x8xf32>
    %502 = vector.broadcast %463 : vector<1x8xf32> to vector<8x8xf32>
    %503 = arith.addf %501, %502 : vector<8x8xf32>
    %cst_273 = arith.constant dense<0xFF800000> : vector<8xf32>
    %504 = vector.multi_reduction <maximumf>, %503, %cst_273 [1] : vector<8x8xf32> to vector<8xf32>
    %505 = vector.shape_cast %504 : vector<8xf32> to vector<8x1xf32>
    %506 = vector.broadcast %505 : vector<8x1xf32> to vector<8x8xf32>
    %507 = arith.subf %503, %506 : vector<8x8xf32>
    %508 = math.exp %507 : vector<8x8xf32>
    %cst_274 = arith.constant dense<0.000000e+00> : vector<8xf32>
    %509 = vector.multi_reduction <add>, %508, %cst_274 [1] : vector<8x8xf32> to vector<8xf32>
    %510 = vector.shape_cast %509 : vector<8xf32> to vector<8x1xf32>
    %511 = vector.broadcast %510 : vector<8x1xf32> to vector<8x8xf32>
    %512 = arith.divf %508, %511 : vector<8x8xf32>
    %cst_275 = arith.constant dense<0.000000e+00> : vector<8x8xf32>
    %513 = tpu.matmul %512, %500, %cst_275 {dimension_numbers = #tpu.dot_dimension_numbers<[1], [0], [0], [1], [0, 0, 1, 1], [], []>} : vector<8x8xf32>, vector<8x8xf32>, vector<8x8xf32> -> vector<8x8xf32>
    %c8_276 = arith.constant 8 : index
    %c16_277 = arith.constant 16 : index
    %514 = vector.load %arg24[%c8_276, %c16_277] : memref<16x32xf32, #tpu.memory_space<vmem>>, vector<8x8xf32>
    tpu.vector_store %arg24[%c8_276, %c16_277], %513 {strides = array<i32>} : memref<16x32xf32, #tpu.memory_space<vmem>>, vector<8x8xf32>,
    %515 = vector.extract_strided_slice %462 {offsets = [0, 24], sizes = [8, 8], strides = [1, 1]} : vector<8x96xf32> to vector<8x8xf32>
    %516 = vector.extract_strided_slice %462 {offsets = [0, 56], sizes = [8, 8], strides = [1, 1]} : vector<8x96xf32> to vector<8x8xf32>
    %517 = vector.extract_strided_slice %462 {offsets = [0, 88], sizes = [8, 8], strides = [1, 1]} : vector<8x96xf32> to vector<8x8xf32>
    %cst_278 = arith.constant dense<0.000000e+00> : vector<8x8xf32>
    %518 = tpu.matmul %515, %516, %cst_278 {dimension_numbers = #tpu.dot_dimension_numbers<[1], [1], [0], [0], [0, 0, 1, 0], [], []>} : vector<8x8xf32>, vector<8x8xf32>, vector<8x8xf32> -> vector<8x8xf32>
    %519 = vector.broadcast %463 : vector<1x8xf32> to vector<8x8xf32>
    %520 = arith.addf %518, %519 : vector<8x8xf32>
    %cst_279 = arith.constant dense<0xFF800000> : vector<8xf32>
    %521 = vector.multi_reduction <maximumf>, %520, %cst_279 [1] : vector<8x8xf32> to vector<8xf32>
    %522 = vector.shape_cast %521 : vector<8xf32> to vector<8x1xf32>
    %523 = vector.broadcast %522 : vector<8x1xf32> to vector<8x8xf32>
    %524 = arith.subf %520, %523 : vector<8x8xf32>
    %525 = math.exp %524 : vector<8x8xf32>
    %cst_280 = arith.constant dense<0.000000e+00> : vector<8xf32>
    %526 = vector.multi_reduction <add>, %525, %cst_280 [1] : vector<8x8xf32> to vector<8xf32>
    %527 = vector.shape_cast %526 : vector<8xf32> to vector<8x1xf32>
    %528 = vector.broadcast %527 : vector<8x1xf32> to vector<8x8xf32>
    %529 = arith.divf %525, %528 : vector<8x8xf32>
    %cst_281 = arith.constant dense<0.000000e+00> : vector<8x8xf32>
    %530 = tpu.matmul %529, %517, %cst_281 {dimension_numbers = #tpu.dot_dimension_numbers<[1], [0], [0], [1], [0, 0, 1, 1], [], []>} : vector<8x8xf32>, vector<8x8xf32>, vector<8x8xf32> -> vector<8x8xf32>
    %c8_282 = arith.constant 8 : index
    %c24_283 = arith.constant 24 : index
    %531 = vector.load %arg24[%c8_282, %c24_283] : memref<16x32xf32, #tpu.memory_space<vmem>>, vector<8x8xf32>
    tpu.vector_store %arg24[%c8_282, %c24_283], %530 {strides = array<i32>} : memref<16x32xf32, #tpu.memory_space<vmem>>, vector<8x8xf32>,
    %c0_284 = arith.constant 0 : index
    %c0_285 = arith.constant 0 : index
    %532 = vector.load %arg24[%c0_284, %c0_285] : memref<16x32xf32, #tpu.memory_space<vmem>>, vector<16x32xf32>
    %c1_286 = arith.constant 1 : index
    %c0_287 = arith.constant 0 : index
    %c0_288 = arith.constant 0 : index
    %533 = vector.load %arg10[%c1_286, %c0_287, %c0_288] : memref<2x32x32xf32, #tpu.memory_space<vmem>>, vector<1x32x32xf32>
    %534 = vector.shape_cast %533 : vector<1x32x32xf32> to vector<32x32xf32>
    %cst_289 = arith.constant dense<0.000000e+00> : vector<16x32xf32>
    %535 = tpu.matmul %532, %534, %cst_289 {dimension_numbers = #tpu.dot_dimension_numbers<[1], [0], [0], [1], [0, 0, 1, 1], [], []>} : vector<16x32xf32>, vector<32x32xf32>, vector<16x32xf32> -> vector<16x32xf32>
    %c1_290 = arith.constant 1 : index
    %c0_291 = arith.constant 0 : index
    %c0_292 = arith.constant 0 : index
    %536 = vector.load %arg11[%c1_290, %c0_291, %c0_292] : memref<2x1x32xf32, #tpu.memory_space<vmem>>, vector<1x1x32xf32>
    %537 = vector.shape_cast %536 : vector<1x1x32xf32> to vector<1x32xf32>
    %538 = vector.broadcast %537 : vector<1x32xf32> to vector<16x32xf32>
    %539 = arith.addf %535, %538 : vector<16x32xf32>
    %540 = arith.addf %539, %384 : vector<16x32xf32>
    %c1_293 = arith.constant 1 : index
    %c0_294 = arith.constant 0 : index
    %c0_295 = arith.constant 0 : index
    %541 = vector.load %arg12[%c1_293, %c0_294, %c0_295] : memref<2x1x32xf32, #tpu.memory_space<vmem>>, vector<1x1x32xf32>
    %542 = vector.shape_cast %541 : vector<1x1x32xf32> to vector<1x32xf32>
    %c1_296 = arith.constant 1 : index
    %c0_297 = arith.constant 0 : index
    %c0_298 = arith.constant 0 : index
    %543 = vector.load %arg13[%c1_296, %c0_297, %c0_298] : memref<2x1x32xf32, #tpu.memory_space<vmem>>, vector<1x1x32xf32>
    %544 = vector.shape_cast %543 : vector<1x1x32xf32> to vector<1x32xf32>
    %cst_299 = arith.constant dense<0.000000e+00> : vector<16xf32>
    %545 = vector.multi_reduction <add>, %540, %cst_299 [1] : vector<16x32xf32> to vector<16xf32>
    %546 = vector.shape_cast %545 : vector<16xf32> to vector<16x1xf32>
    %cst_300 = arith.constant 3.200000e+01 : f32
    %547 = vector.broadcast %cst_300 : f32 to vector<16x1xf32>
    %548 = arith.divf %546, %547 : vector<16x1xf32>
    %549 = vector.broadcast %548 : vector<16x1xf32> to vector<16x32xf32>
    %550 = arith.subf %540, %549 : vector<16x32xf32>
    %551 = arith.mulf %550, %550 : vector<16x32xf32>
    %cst_301 = arith.constant dense<0.000000e+00> : vector<16xf32>
    %552 = vector.multi_reduction <add>, %551, %cst_301 [1] : vector<16x32xf32> to vector<16xf32>
    %553 = vector.shape_cast %552 : vector<16xf32> to vector<16x1xf32>
    %cst_302 = arith.constant 3.200000e+01 : f32
    %554 = vector.broadcast %cst_302 : f32 to vector<16x1xf32>
    %555 = arith.divf %553, %554 : vector<16x1xf32>
    %cst_303 = arith.constant 9.99999996E-13 : f32
    %556 = vector.broadcast %cst_303 : f32 to vector<16x1xf32>
    %557 = arith.addf %555, %556 : vector<16x1xf32>
    %558 = math.rsqrt %557 : vector<16x1xf32>
    %559 = vector.broadcast %558 : vector<16x1xf32> to vector<16x32xf32>
    %560 = arith.mulf %550, %559 : vector<16x32xf32>
    %561 = vector.broadcast %542 : vector<1x32xf32> to vector<16x32xf32>
    %562 = arith.mulf %560, %561 : vector<16x32xf32>
    %563 = vector.broadcast %544 : vector<1x32xf32> to vector<16x32xf32>
    %564 = arith.addf %562, %563 : vector<16x32xf32>
    %c1_304 = arith.constant 1 : index
    %c0_305 = arith.constant 0 : index
    %c0_306 = arith.constant 0 : index
    %565 = vector.load %arg14[%c1_304, %c0_305, %c0_306] : memref<2x32x64xf32, #tpu.memory_space<vmem>>, vector<1x32x64xf32>
    %566 = vector.shape_cast %565 : vector<1x32x64xf32> to vector<32x64xf32>
    %cst_307 = arith.constant dense<0.000000e+00> : vector<16x64xf32>
    %567 = tpu.matmul %564, %566, %cst_307 {dimension_numbers = #tpu.dot_dimension_numbers<[1], [0], [0], [1], [0, 0, 1, 1], [], []>} : vector<16x32xf32>, vector<32x64xf32>, vector<16x64xf32> -> vector<16x64xf32>
    %c1_308 = arith.constant 1 : index
    %c0_309 = arith.constant 0 : index
    %c0_310 = arith.constant 0 : index
    %568 = vector.load %arg15[%c1_308, %c0_309, %c0_310] : memref<2x1x64xf32, #tpu.memory_space<vmem>>, vector<1x1x64xf32>
    %569 = vector.shape_cast %568 : vector<1x1x64xf32> to vector<1x64xf32>
    %570 = vector.broadcast %569 : vector<1x64xf32> to vector<16x64xf32>
    %571 = arith.addf %567, %570 : vector<16x64xf32>
    %cst_311 = arith.constant 5.000000e-01 : f32
    %572 = vector.broadcast %cst_311 : f32 to vector<16x64xf32>
    %573 = arith.mulf %572, %571 : vector<16x64xf32>
    %cst_312 = arith.constant 0.707106769 : f32
    %574 = vector.broadcast %cst_312 : f32 to vector<16x64xf32>
    %575 = arith.mulf %571, %574 : vector<16x64xf32>
    %576 = math.erf %575 : vector<16x64xf32>
    %cst_313 = arith.constant 1.000000e+00 : f32
    %577 = vector.broadcast %cst_313 : f32 to vector<16x64xf32>
    %578 = arith.addf %577, %576 : vector<16x64xf32>
    %579 = arith.mulf %573, %578 : vector<16x64xf32>
    %c1_314 = arith.constant 1 : index
    %c0_315 = arith.constant 0 : index
    %c0_316 = arith.constant 0 : index
    %580 = vector.load %arg16[%c1_314, %c0_315, %c0_316] : memref<2x64x32xf32, #tpu.memory_space<vmem>>, vector<1x64x32xf32>
    %581 = vector.shape_cast %580 : vector<1x64x32xf32> to vector<64x32xf32>
    %cst_317 = arith.constant dense<0.000000e+00> : vector<16x32xf32>
    %582 = tpu.matmul %579, %581, %cst_317 {dimension_numbers = #tpu.dot_dimension_numbers<[1], [0], [0], [1], [0, 0, 1, 1], [], []>} : vector<16x64xf32>, vector<64x32xf32>, vector<16x32xf32> -> vector<16x32xf32>
    %c1_318 = arith.constant 1 : index
    %c0_319 = arith.constant 0 : index
    %c0_320 = arith.constant 0 : index
    %583 = vector.load %arg17[%c1_318, %c0_319, %c0_320] : memref<2x1x32xf32, #tpu.memory_space<vmem>>, vector<1x1x32xf32>
    %584 = vector.shape_cast %583 : vector<1x1x32xf32> to vector<1x32xf32>
    %585 = vector.broadcast %584 : vector<1x32xf32> to vector<16x32xf32>
    %586 = arith.addf %582, %585 : vector<16x32xf32>
    %587 = arith.addf %586, %564 : vector<16x32xf32>
    %c1_321 = arith.constant 1 : index
    %c0_322 = arith.constant 0 : index
    %c0_323 = arith.constant 0 : index
    %588 = vector.load %arg18[%c1_321, %c0_322, %c0_323] : memref<2x1x32xf32, #tpu.memory_space<vmem>>, vector<1x1x32xf32>
    %589 = vector.shape_cast %588 : vector<1x1x32xf32> to vector<1x32xf32>
    %c1_324 = arith.constant 1 : index
    %c0_325 = arith.constant 0 : index
    %c0_326 = arith.constant 0 : index
    %590 = vector.load %arg19[%c1_324, %c0_325, %c0_326] : memref<2x1x32xf32, #tpu.memory_space<vmem>>, vector<1x1x32xf32>
    %591 = vector.shape_cast %590 : vector<1x1x32xf32> to vector<1x32xf32>
    %cst_327 = arith.constant dense<0.000000e+00> : vector<16xf32>
    %592 = vector.multi_reduction <add>, %587, %cst_327 [1] : vector<16x32xf32> to vector<16xf32>
    %593 = vector.shape_cast %592 : vector<16xf32> to vector<16x1xf32>
    %cst_328 = arith.constant 3.200000e+01 : f32
    %594 = vector.broadcast %cst_328 : f32 to vector<16x1xf32>
    %595 = arith.divf %593, %594 : vector<16x1xf32>
    %596 = vector.broadcast %595 : vector<16x1xf32> to vector<16x32xf32>
    %597 = arith.subf %587, %596 : vector<16x32xf32>
    %598 = arith.mulf %597, %597 : vector<16x32xf32>
    %cst_329 = arith.constant dense<0.000000e+00> : vector<16xf32>
    %599 = vector.multi_reduction <add>, %598, %cst_329 [1] : vector<16x32xf32> to vector<16xf32>
    %600 = vector.shape_cast %599 : vector<16xf32> to vector<16x1xf32>
    %cst_330 = arith.constant 3.200000e+01 : f32
    %601 = vector.broadcast %cst_330 : f32 to vector<16x1xf32>
    %602 = arith.divf %600, %601 : vector<16x1xf32>
    %cst_331 = arith.constant 9.99999996E-13 : f32
    %603 = vector.broadcast %cst_331 : f32 to vector<16x1xf32>
    %604 = arith.addf %602, %603 : vector<16x1xf32>
    %605 = math.rsqrt %604 : vector<16x1xf32>
    %606 = vector.broadcast %605 : vector<16x1xf32> to vector<16x32xf32>
    %607 = arith.mulf %597, %606 : vector<16x32xf32>
    %608 = vector.broadcast %589 : vector<1x32xf32> to vector<16x32xf32>
    %609 = arith.mulf %607, %608 : vector<16x32xf32>
    %610 = vector.broadcast %591 : vector<1x32xf32> to vector<16x32xf32>
    %611 = arith.addf %609, %610 : vector<16x32xf32>
    %612 = vector.extract_strided_slice %611 {offsets = [0, 0], sizes = [1, 32], strides = [1, 1]} : vector<16x32xf32> to vector<1x32xf32>
    %c0_332 = arith.constant 0 : index
    %c0_333 = arith.constant 0 : index
    %613 = vector.load %arg25[%c0_332, %c0_333] : memref<2x32xf32, #tpu.memory_space<vmem>>, vector<1x32xf32>
    tpu.vector_store %arg25[%c0_332, %c0_333], %612 {strides = array<i32>} : memref<2x32xf32, #tpu.memory_space<vmem>>, vector<1x32xf32>,
    %614 = vector.extract_strided_slice %611 {offsets = [8, 0], sizes = [1, 32], strides = [1, 1]} : vector<16x32xf32> to vector<1x32xf32>
    %c1_334 = arith.constant 1 : index
    %c0_335 = arith.constant 0 : index
    %615 = vector.load %arg25[%c1_334, %c0_335] : memref<2x32xf32, #tpu.memory_space<vmem>>, vector<1x32xf32>
    tpu.vector_store %arg25[%c1_334, %c0_335], %614 {strides = array<i32>} : memref<2x32xf32, #tpu.memory_space<vmem>>, vector<1x32xf32>,
    %c0_336 = arith.constant 0 : index
    %c0_337 = arith.constant 0 : index
    %616 = vector.load %arg25[%c0_336, %c0_337] : memref<2x32xf32, #tpu.memory_space<vmem>>, vector<2x32xf32>
    %c0_338 = arith.constant 0 : index
    %c0_339 = arith.constant 0 : index
    %617 = vector.load %arg20[%c0_338, %c0_339] : memref<32x32xf32, #tpu.memory_space<vmem>>, vector<32x32xf32>
    %cst_340 = arith.constant dense<0.000000e+00> : vector<2x32xf32>
    %618 = tpu.matmul %616, %617, %cst_340 {dimension_numbers = #tpu.dot_dimension_numbers<[1], [0], [0], [1], [0, 0, 1, 1], [], []>} : vector<2x32xf32>, vector<32x32xf32>, vector<2x32xf32> -> vector<2x32xf32>
    %c0_341 = arith.constant 0 : index
    %c0_342 = arith.constant 0 : index
    %619 = vector.load %arg21[%c0_341, %c0_342] : memref<1x32xf32, #tpu.memory_space<vmem>>, vector<1x32xf32>
    %620 = vector.broadcast %619 : vector<1x32xf32> to vector<2x32xf32>
    %621 = arith.addf %618, %620 : vector<2x32xf32>
    %622 = math.tanh %621 : vector<2x32xf32>
    %c0_343 = arith.constant 0 : index
    %c0_344 = arith.constant 0 : index
    %623 = vector.load %arg22[%c0_343, %c0_344] : memref<2x32xf32, #tpu.memory_space<vmem>>, vector<2x32xf32>
    tpu.vector_store %arg22[%c0_343, %c0_344], %622 {strides = array<i32>} : memref<2x32xf32, #tpu.memory_space<vmem>>, vector<2x32xf32>,
    return
  }
  func.func @transform_0(%arg0: i32, %arg1: memref<2x8xi32, #tpu.memory_space<smem>>) -> (i32, i32) {
    %c0_i32 = arith.constant 0 : i32
    %c0_i32_0 = arith.constant 0 : i32
    %c0_i32_1 = arith.constant 0 : i32
    return %c0_i32, %c0_i32_0 : i32, i32
  }
  func.func @transform_1(%arg0: i32, %arg1: memref<2x8xi32, #tpu.memory_space<smem>>) -> (i32, i32, i32) {
    %c0_i32 = arith.constant 0 : i32
    %c0_i32_0 = arith.constant 0 : i32
    %c0_i32_1 = arith.constant 0 : i32
    %c0_i32_2 = arith.constant 0 : i32
    return %c0_i32, %c0_i32_0, %c0_i32_1 : i32, i32, i32
  }
  func.func @transform_2(%arg0: i32, %arg1: memref<2x8xi32, #tpu.memory_space<smem>>) -> (i32, i32) {
    %c0_i32 = arith.constant 0 : i32
    %c0_i32_0 = arith.constant 0 : i32
    %c0_i32_1 = arith.constant 0 : i32
    return %c0_i32, %c0_i32_0 : i32, i32
  }
  func.func @transform_3(%arg0: i32, %arg1: memref<2x8xi32, #tpu.memory_space<smem>>) -> (i32, i32) {
    %c0_i32 = arith.constant 0 : i32
    %c0_i32_0 = arith.constant 0 : i32
    %c0_i32_1 = arith.constant 0 : i32
    return %c0_i32, %c0_i32_0 : i32, i32
  }
  func.func @transform_4(%arg0: i32, %arg1: memref<2x8xi32, #tpu.memory_space<smem>>) -> (i32, i32) {
    %c0_i32 = arith.constant 0 : i32
    %c0_i32_0 = arith.constant 0 : i32
    %c0_i32_1 = arith.constant 0 : i32
    return %c0_i32, %c0_i32_0 : i32, i32
  }
  func.func @transform_5(%arg0: i32, %arg1: memref<2x8xi32, #tpu.memory_space<smem>>) -> (i32, i32) {
    %c0_i32 = arith.constant 0 : i32
    %c0_i32_0 = arith.constant 0 : i32
    %c0_i32_1 = arith.constant 0 : i32
    return %c0_i32, %c0_i32_0 : i32, i32
  }
  func.func @transform_6(%arg0: i32, %arg1: memref<2x8xi32, #tpu.memory_space<smem>>) -> (i32, i32, i32) {
    %c0_i32 = arith.constant 0 : i32
    %c0_i32_0 = arith.constant 0 : i32
    %c0_i32_1 = arith.constant 0 : i32
    %c0_i32_2 = arith.constant 0 : i32
    return %c0_i32, %c0_i32_0, %c0_i32_1 : i32, i32, i32
  }
  func.func @transform_7(%arg0: i32, %arg1: memref<2x8xi32, #tpu.memory_space<smem>>) -> (i32, i32, i32) {
    %c0_i32 = arith.constant 0 : i32
    %c0_i32_0 = arith.constant 0 : i32
    %c0_i32_1 = arith.constant 0 : i32
    %c0_i32_2 = arith.constant 0 : i32
    return %c0_i32, %c0_i32_0, %c0_i32_1 : i32, i32, i32
  }
  func.func @transform_8(%arg0: i32, %arg1: memref<2x8xi32, #tpu.memory_space<smem>>) -> (i32, i32, i32) {
    %c0_i32 = arith.constant 0 : i32
    %c0_i32_0 = arith.constant 0 : i32
    %c0_i32_1 = arith.constant 0 : i32
    %c0_i32_2 = arith.constant 0 : i32
    return %c0_i32, %c0_i32_0, %c0_i32_1 : i32, i32, i32
  }
  func.func @transform_9(%arg0: i32, %arg1: memref<2x8xi32, #tpu.memory_space<smem>>) -> (i32, i32, i32) {
    %c0_i32 = arith.constant 0 : i32
    %c0_i32_0 = arith.constant 0 : i32
    %c0_i32_1 = arith.constant 0 : i32
    %c0_i32_2 = arith.constant 0 : i32
    return %c0_i32, %c0_i32_0, %c0_i32_1 : i32, i32, i32
  }
  func.func @transform_10(%arg0: i32, %arg1: memref<2x8xi32, #tpu.memory_space<smem>>) -> (i32, i32, i32) {
    %c0_i32 = arith.constant 0 : i32
    %c0_i32_0 = arith.constant 0 : i32
    %c0_i32_1 = arith.constant 0 : i32
    %c0_i32_2 = arith.constant 0 : i32
    return %c0_i32, %c0_i32_0, %c0_i32_1 : i32, i32, i32
  }
  func.func @transform_11(%arg0: i32, %arg1: memref<2x8xi32, #tpu.memory_space<smem>>) -> (i32, i32, i32) {
    %c0_i32 = arith.constant 0 : i32
    %c0_i32_0 = arith.constant 0 : i32
    %c0_i32_1 = arith.constant 0 : i32
    %c0_i32_2 = arith.constant 0 : i32
    return %c0_i32, %c0_i32_0, %c0_i32_1 : i32, i32, i32
  }
  func.func @transform_12(%arg0: i32, %arg1: memref<2x8xi32, #tpu.memory_space<smem>>) -> (i32, i32, i32) {
    %c0_i32 = arith.constant 0 : i32
    %c0_i32_0 = arith.constant 0 : i32
    %c0_i32_1 = arith.constant 0 : i32
    %c0_i32_2 = arith.constant 0 : i32
    return %c0_i32, %c0_i32_0, %c0_i32_1 : i32, i32, i32
  }
  func.func @transform_13(%arg0: i32, %arg1: memref<2x8xi32, #tpu.memory_space<smem>>) -> (i32, i32, i32) {
    %c0_i32 = arith.constant 0 : i32
    %c0_i32_0 = arith.constant 0 : i32
    %c0_i32_1 = arith.constant 0 : i32
    %c0_i32_2 = arith.constant 0 : i32
    return %c0_i32, %c0_i32_0, %c0_i32_1 : i32, i32, i32
  }
  func.func @transform_14(%arg0: i32, %arg1: memref<2x8xi32, #tpu.memory_space<smem>>) -> (i32, i32, i32) {
    %c0_i32 = arith.constant 0 : i32
    %c0_i32_0 = arith.constant 0 : i32
    %c0_i32_1 = arith.constant 0 : i32
    %c0_i32_2 = arith.constant 0 : i32
    return %c0_i32, %c0_i32_0, %c0_i32_1 : i32, i32, i32
  }
  func.func @transform_15(%arg0: i32, %arg1: memref<2x8xi32, #tpu.memory_space<smem>>) -> (i32, i32, i32) {
    %c0_i32 = arith.constant 0 : i32
    %c0_i32_0 = arith.constant 0 : i32
    %c0_i32_1 = arith.constant 0 : i32
    %c0_i32_2 = arith.constant 0 : i32
    return %c0_i32, %c0_i32_0, %c0_i32_1 : i32, i32, i32
  }
  func.func @transform_16(%arg0: i32, %arg1: memref<2x8xi32, #tpu.memory_space<smem>>) -> (i32, i32, i32) {
    %c0_i32 = arith.constant 0 : i32
    %c0_i32_0 = arith.constant 0 : i32
    %c0_i32_1 = arith.constant 0 : i32
    %c0_i32_2 = arith.constant 0 : i32
    return %c0_i32, %c0_i32_0, %c0_i32_1 : i32, i32, i32
  }
  func.func @transform_17(%arg0: i32, %arg1: memref<2x8xi32, #tpu.memory_space<smem>>) -> (i32, i32, i32) {
    %c0_i32 = arith.constant 0 : i32
    %c0_i32_0 = arith.constant 0 : i32
    %c0_i32_1 = arith.constant 0 : i32
    %c0_i32_2 = arith.constant 0 : i32
    return %c0_i32, %c0_i32_0, %c0_i32_1 : i32, i32, i32
  }
  func.func @transform_18(%arg0: i32, %arg1: memref<2x8xi32, #tpu.memory_space<smem>>) -> (i32, i32) {
    %c0_i32 = arith.constant 0 : i32
    %c0_i32_0 = arith.constant 0 : i32
    %c0_i32_1 = arith.constant 0 : i32
    return %c0_i32, %c0_i32_0 : i32, i32
  }
  func.func @transform_19(%arg0: i32, %arg1: memref<2x8xi32, #tpu.memory_space<smem>>) -> (i32, i32) {
    %c0_i32 = arith.constant 0 : i32
    %c0_i32_0 = arith.constant 0 : i32
    %c0_i32_1 = arith.constant 0 : i32
    return %c0_i32, %c0_i32_0 : i32, i32
  }
  func.func @transform_20(%arg0: i32, %arg1: memref<2x8xi32, #tpu.memory_space<smem>>) -> (i32, i32) {
    %c0_i32 = arith.constant 0 : i32
    %c0_i32_0 = arith.constant 0 : i32
    %c0_i32_1 = arith.constant 0 : i32
    return %c0_i32, %c0_i32_0 : i32, i32
  }
}

</mosaic_0001>

<bundles_post_ra>
// kernel: encoder_forward.1
= control target key start
LH: loop header
LB: loop body
LE: loop exit
PB: predicated region body
PF: predicated region fallthrough
CT: control target
= control target key end

     0   :  { %s6317_s0 = inlined_call_operand.vmem [shape: s32[2,8], index: 0, kind: input, shape index: {}]   ;;  %s6318_s1 = inlined_call_operand.vmem [shape: s32[2,8], index: 1, kind: input, shape index: {}]   ;;  %s6319_s2 = inlined_call_operand.vmem [shape: f32[50,1,32], index: 2, kind: input, shape index: {}]   ;;  %s6320_s3 = inlined_call_operand.vmem [shape: f32[16,32], index: 3, kind: input, shape index: {}]   ;;  %s6321_s4 = inlined_call_operand.hbm [shape: f32[2,32], index: 4, kind: input, shape index: {}]   ;;  %s6322_s5 = inlined_call_operand.hbm [shape: f32[1,32], index: 5, kind: input, shape index: {}]   ;;  %s6323_s6 = inlined_call_operand.hbm [shape: f32[1,32], index: 6, kind: input, shape index: {}]   ;;  %s6324_s7 = inlined_call_operand.vmem [shape: f32[2,32,96], index: 7, kind: input, shape index: {}]   ;;  %s6325_s8 = inlined_call_operand.hbm [shape: f32[2,1,96], index: 8, kind: input, shape index: {}]   ;;  %s6326_s9 = inlined_call_operand.vmem [shape: f32[2,32,32], index: 9, kind: input, shape index: {}]   ;;  %s6327_s10 = inlined_call_operand.hbm [shape: f32[2,1,32], index: 10, kind: input, shape index: {}]   ;;  %s6328_s11 = inlined_call_operand.hbm [shape: f32[2,1,32], index: 11, kind: input, shape index: {}]   ;;  %s6329_s12 = inlined_call_operand.hbm [shape: f32[2,1,32], index: 12, kind: input, shape index: {}]   ;;  %s6330_s13 = inlined_call_operand.vmem [shape: f32[2,32,64], index: 13, kind: input, shape index: {}]   ;;  %s6331_s14 = inlined_call_operand.hbm [shape: f32[2,1,64], index: 14, kind: input, shape index: {}]   ;;  %s6332_s15 = inlined_call_operand.vmem [shape: f32[2,64,32], index: 15, kind: input, shape index: {}]   ;;  %s6333_s16 = inlined_call_operand.hbm [shape: f32[2,1,32], index: 16, kind: input, shape index: {}]   ;;  %s6334_s17 = inlined_call_operand.hbm [shape: f32[2,1,32], index: 17, kind: input, shape index: {}]   ;;  %s6335_s18 = inlined_call_operand.hbm [shape: f32[2,1,32], index: 18, kind: input, shape index: {}]   ;;  %s6336_s19 = inlined_call_operand.vmem [shape: f32[32,32], index: 19, kind: input, shape index: {}]   ;;  %s6337_s20 = inlined_call_operand.hbm [shape: f32[1,32], index: 20, kind: input, shape index: {}]   ;;  %s6338_s21 = inlined_call_operand.hbm [shape: f32[2,32], index: 21, kind: output, shape index: {}]  }
   0x1   :  { %6346 = sst [smem:[#allocation37_spill]] %s6317_s0 }
   0x2   :  { %6347 = sst [smem:[#allocation38_spill]] %s6318_s1  ;;  %s6353_s26 = sld [smem:[#allocation37_spill]] }
   0x3   :  { %6348 = sst [smem:[#allocation39_spill]] %s6319_s2 }
   0x4   :  { %6349 = sst [smem:[#allocation40_spill]] %s6320_s3 }
   0x5   :  { %6350 = sst [smem:[#allocation41_spill]] %s6321_s4 }
   0x6   :  { %6351 = sst [smem:[#allocation42_spill]] %s6322_s5 }
   0x7   :  { %6352 = sst [smem:[#allocation43_spill]] %s6332_s15 }
   0x8   :  { %s26_s15 = sshll.u32 %s6353_s26, 4  ;;  %s27_s15 = int_to_ptr.vmem [resolvable:$true] %s26_s15 }
   0x9   :  { %s4929_s27 = scalar_lea.vmem %s27_s15, 32  ;;  %p4934_p1 = scmp.lt.s32.totalorder %s27_s15, %s27_s15 }
   0xa   :  { %p4930_p0 = scmp.ne.s32.totalorder %s27_s15, %s4929_s27  ;;  %p4935_p2 = scmp.lt.s32.totalorder %s4929_s27, %s4929_s27 }
   0xc   :  { %p4936_p3 = por %p4935_p2, %p4934_p1 }
   0xe   :  { %p4937_p4 = pnand %p4936_p3, %p4930_p0 }
  0x10   :  { %4940 = shalt.err (!%p4937_p4)  }
  0x11   :  { %s5245_s3 = smov [#allocation6]  }
  0x12   :  { %29 = dma.vmem_to_smem %s27_s15, 32, %s5245_s3, [#allocation5] }
  0x13   :  { %5227 = dma.done.wait [#allocation5], 32 }
  0x14   :  { %5228 = vsyncadd [#allocation5], 4294967264 }
  0x15   :  { %31 = sfence }
  0x16   :  { %32 = vsyncpa [#allocation8], 0 }
  0x17   :  { %33 = vsyncpa [#allocation11], 0 }
  0x18   :  { %34 = vsyncpa [#allocation14], 0 }
  0x19   :  { %35 = vsyncpa [#allocation17], 0 }
  0x1a   :  { %36 = vsyncpa [#allocation20], 0 }
  0x1b   :  { %37 = vsyncpa [#allocation23], 0 }
  0x1c   :  { %38 = vsyncpa [#allocation26], 0 }
  0x1d   :  { %39 = vsyncpa [#allocation9], 0  ;;  %s5246_s28 = smov [#allocation10]   ;;  %s5247_s0 = smov [#allocation13]  }
  0x1e   :  { %s62_s29 = sshll.u32 %s5246_s28, 4  ;;  %s83_s4 = sshll.u32 %s5247_s0, 4  ;;  %s63_s29 = int_to_ptr.vmem [resolvable:$true] %s62_s29  ;;  %s5390_s4 = int_to_ptr.vmem [resolvable:$true] %s83_s4 }
  0x1f   :  { %s6354_s5 = sld [smem:[#allocation42_spill]] }
  0x25   :  { %s4941_s22 = scalar_lea.hbm %s6354_s5, 16 }
  0x26   :  { %p4942_p5 = scmp.ne.s32.totalorder %s6354_s5, %s4941_s22  ;;  %p4945_p6 = scmp.lt.u32.totalorder %s4941_s22, %s6354_s5 }
  0x28   :  { %p4947_p7 = pnand %p4945_p6, %p4942_p5 }
  0x2a   :  { %4950 = shalt.err (!%p4947_p7)
}
  0x2b   :  { %s4951_s25 = scalar_lea.vmem %s63_s29, 16  ;;  %s4955_s26 = scalar_lea.vmem %s63_s29, 32 }
  0x2c   :  { %p4952_p8 = scmp.ne.s32.totalorder %s63_s29, %s4951_s25  ;;  %p4956_p9 = scmp.lt.s32.totalorder %s63_s29, %s63_s29 }
  0x2d   :  { %p4957_p10 = scmp.lt.s32.totalorder %s4955_s26, %s4951_s25 }
  0x2f   :  { %p4958_p11 = por %p4957_p10, %p4956_p9 }
  0x31   :  { %p4959_p12 = pnand %p4958_p11, %p4952_p8 }
  0x33   :  { %4962 = shalt.err (!%p4959_p12)
}
  0x34   :  { %65 = dma.hbm_to_vmem [thread:$0]  %s6354_s5, 16, %s63_s29, [#allocation11]  }
  0x35   :  { %s4963_s30 = scalar_lea.hbm %s6325_s8, 32 }
  0x36   :  { %p4964_p13 = scmp.ne.s32.totalorder %s6325_s8, %s4963_s30  ;;  %p4967_p0 = scmp.lt.u32.totalorder %s4963_s30, %s6325_s8 }
  0x38   :  { %p4969_p1 = pnand %p4967_p0, %p4964_p13 }
  0x3a   :  { %4972 = shalt.err (!%p4969_p1)
}
  0x3b   :  { %s4973_s24 = scalar_lea.vmem %s5390_s4, 32  ;;  %p4978_p3 = scmp.lt.s32.totalorder %s5390_s4, %s5390_s4 }
  0x3c   :  { %p4974_p2 = scmp.ne.s32.totalorder %s5390_s4, %s4973_s24  ;;  %p4979_p4 = scmp.lt.s32.totalorder %s4973_s24, %s4973_s24 }
  0x3e   :  { %p4980_p5 = por %p4979_p4, %p4978_p3 }
  0x40   :  { %p4981_p6 = pnand %p4980_p5, %p4974_p2 }
  0x42   :  { %4984 = shalt.err (!%p4981_p6)
}
  0x43   :  { %s6344_s29 = smov 16   ;;  %s5249_s5 = smov 1  }
  0x44   :  { %89 = dma.hbm_to_vmem [thread:$0]  %s6325_s8, 32, %s5390_s4, [#allocation14], %s6344_s29, %s6344_s29, %s5249_s5  }
  0x45   :  { %s5250_s26 = smov [#allocation16]   ;;  %s5251_s3 = smov [#allocation19]  }
  0x46   :  { %s109_s27 = sshll.u32 %s5250_s26, 4  ;;  %s135_s28 = sshll.u32 %s5251_s3, 4  ;;  %s110_s27 = int_to_ptr.vmem [resolvable:$true] %s109_s27  ;;  %s5424_s28 = int_to_ptr.vmem [resolvable:$true] %s135_s28 }
  0x47   :  { %s4985_s15 = scalar_lea.hbm %s6328_s11, 32 }
  0x48   :  { %p4986_p7 = scmp.ne.s32.totalorder %s6328_s11, %s4985_s15  ;;  %p4989_p8 = scmp.lt.u32.totalorder %s4985_s15, %s6328_s11 }
  0x4a   :  { %p4991_p9 = pnand %p4989_p8, %p4986_p7 }
  0x4c   :  { %4994 = shalt.err (!%p4991_p9)
}
  0x4d   :  { %s4995_s8 = scalar_lea.vmem %s110_s27, 32  ;;  %p5000_p11 = scmp.lt.s32.totalorder %s110_s27, %s110_s27 }
  0x4e   :  { %p4996_p10 = scmp.ne.s32.totalorder %s110_s27, %s4995_s8  ;;  %p5001_p12 = scmp.lt.s32.totalorder %s4995_s8, %s4995_s8 }
  0x50   :  { %p5002_p13 = por %p5001_p12, %p5000_p11 }
  0x52   :  { %p5003_p0 = pnand %p5002_p13, %p4996_p10 }
  0x54   :  { %5006 = shalt.err (!%p5003_p0)
}
  0x55   :  { %115 = dma.hbm_to_vmem [thread:$0]  %s6328_s11, 32, %s110_s27, [#allocation17], %s6344_s29, %s6344_s29, %s5249_s5  }
  0x56   :  { %s5007_s3 = scalar_lea.hbm %s6331_s14, 32 }
  0x57   :  { %p5008_p1 = scmp.ne.s32.totalorder %s6331_s14, %s5007_s3  ;;  %p5011_p2 = scmp.lt.u32.totalorder %s5007_s3, %s6331_s14 }
  0x59   :  { %p5013_p3 = pnand %p5011_p2, %p5008_p1 }
  0x5b   :  { %5016 = shalt.err (!%p5013_p3)
}
  0x5c   :  { %s5017_s23 = scalar_lea.vmem %s5424_s28, 32  ;;  %p5022_p5 = scmp.lt.s32.totalorder %s5424_s28, %s5424_s28 }
  0x5d   :  { %p5018_p4 = scmp.ne.s32.totalorder %s5424_s28, %s5017_s23  ;;  %p5023_p6 = scmp.lt.s32.totalorder %s5017_s23, %s5017_s23 }
  0x5f   :  { %p5024_p7 = por %p5023_p6, %p5022_p5 }
  0x61   :  { %p5025_p8 = pnand %p5024_p7, %p5018_p4 }
  0x63   :  { %5028 = shalt.err (!%p5025_p8)
}
  0x64   :  { %141 = dma.hbm_to_vmem [thread:$0]  %s6331_s14, 32, %s5424_s28, [#allocation20], %s6344_s29, %s6344_s29, %s5249_s5  }
  0x65   :  { %s5252_s1 = smov [#allocation22]   ;;  %s5253_s8 = smov [#allocation7]  }
  0x66   :  { %s161_s24 = sshll.u32 %s5252_s1, 4  ;;  %s52_s4 = sshll.u32 %s5253_s8, 4  ;;  %s162_s24 = int_to_ptr.vmem [resolvable:$true] %s161_s24  ;;  %s53_s4 = int_to_ptr.vmem [resolvable:$true] %s52_s4 }
  0x67   :  { %s5029_s26 = scalar_lea.hbm %s6334_s17, 32 }
  0x68   :  { %p5030_p9 = scmp.ne.s32.totalorder %s6334_s17, %s5029_s26  ;;  %p5033_p10 = scmp.lt.u32.totalorder %s5029_s26, %s6334_s17 }
  0x6a   :  { %p5035_p11 = pnand %p5033_p10, %p5030_p9 }
  0x6c   :  { %5038 = shalt.err (!%p5035_p11)
}
  0x6d   :  { %s5039_s14 = scalar_lea.vmem %s162_s24, 32  ;;  %p5044_p13 = scmp.lt.s32.totalorder %s162_s24, %s162_s24 }
  0x6e   :  { %p5040_p12 = scmp.ne.s32.totalorder %s162_s24, %s5039_s14  ;;  %p5045_p0 = scmp.lt.s32.totalorder %s5039_s14, %s5039_s14 }
  0x70   :  { %p5046_p1 = por %p5045_p0, %p5044_p13 }
  0x72   :  { %p5047_p2 = pnand %p5046_p1, %p5040_p12 }
  0x74   :  { %5050 = shalt.err (!%p5047_p2)
}
  0x75   :  { %167 = dma.hbm_to_vmem [thread:$0]  %s6334_s17, 32, %s162_s24, [#allocation23], %s6344_s29, %s6344_s29, %s5249_s5  }
  0x76   :  { %s6355_s27 = sld [smem:[#allocation41_spill]] }
  0x7c   :  { %s5051_s1 = scalar_lea.hbm %s6355_s27, 32 }
  0x7d   :  { %p5052_p3 = scmp.ne.s32.totalorder %s6355_s27, %s5051_s1  ;;  %p5055_p4 = scmp.lt.u32.totalorder %s5051_s1, %s6355_s27 }
  0x7f   :  { %p5057_p5 = pnand %p5055_p4, %p5052_p3 }
  0x81   :  { %5060 = shalt.err (!%p5057_p5)
}
  0x82   :  { %s5061_s3 = scalar_lea.vmem %s53_s4, 32  ;;  %p5066_p7 = scmp.lt.s32.totalorder %s53_s4, %s53_s4 }
  0x83   :  { %p5062_p6 = scmp.ne.s32.totalorder %s53_s4, %s5061_s3  ;;  %p5067_p8 = scmp.lt.s32.totalorder %s5061_s3, %s5061_s3 }
  0x85   :  { %p5068_p9 = por %p5067_p8, %p5066_p7 }
  0x87   :  { %p5069_p10 = pnand %p5068_p9, %p5062_p6 }
  0x89   :  { %5072 = shalt.err (!%p5069_p10)
}
  0x8a   :  { %55 = dma.hbm_to_vmem [thread:$0]  %s6355_s27, 32, %s53_s4, [#allocation8]  }
  0x8b   :  { %s5254_s0 = smov [#allocation12]   ;;  %s5255_s15 = smov [#allocation15]  }
  0x8c   :  { %s72_s30 = sshll.u32 %s5254_s0, 4  ;;  %s97_s14 = sshll.u32 %s5255_s15, 4  ;;  %s73_s30 = int_to_ptr.vmem [resolvable:$true] %s72_s30  ;;  %s5488_s14 = int_to_ptr.vmem [resolvable:$true] %s97_s14 }
  0x8d   :  { %s5073_s23 = scalar_lea.hbm %s6323_s6, 16 }
  0x8e   :  { %p5074_p11 = scmp.ne.s32.totalorder %s6323_s6, %s5073_s23  ;;  %p5077_p12 = scmp.lt.u32.totalorder %s5073_s23, %s6323_s6 }
  0x90   :  { %p5079_p13 = pnand %p5077_p12, %p5074_p11 }
  0x92   :  { %5082 = shalt.err (!%p5079_p13)
}
  0x93   :  { %s5083_s4 = scalar_lea.vmem %s73_s30, 16  ;;  %s5087_s27 = scalar_lea.vmem %s73_s30, 32 }
  0x94   :  { %p5084_p0 = scmp.ne.s32.totalorder %s73_s30, %s5083_s4  ;;  %p5088_p1 = scmp.lt.s32.totalorder %s73_s30, %s73_s30 }
  0x95   :  { %p5089_p2 = scmp.lt.s32.totalorder %s5087_s27, %s5083_s4 }
  0x97   :  { %p5090_p3 = por %p5089_p2, %p5088_p1 }
  0x99   :  { %p5091_p4 = pnand %p5090_p3, %p5084_p0 }
  0x9b   :  { %5094 = shalt.err (!%p5091_p4)
}
  0x9c   :  { %75 = dma.hbm_to_vmem [thread:$0]  %s6323_s6, 16, %s73_s30, [#allocation11]  }
  0x9d   :  { %s5095_s24 = scalar_lea.hbm %s6327_s10, 32 }
  0x9e   :  { %p5096_p5 = scmp.ne.s32.totalorder %s6327_s10, %s5095_s24  ;;  %p5099_p6 = scmp.lt.u32.totalorder %s5095_s24, %s6327_s10 }
  0xa0   :  { %p5101_p7 = pnand %p5099_p6, %p5096_p5 }
  0xa2   :  { %5104 = shalt.err (!%p5101_p7)
}
  0xa3   :  { %s5105_s23 = scalar_lea.vmem %s5488_s14, 32  ;;  %p5110_p9 = scmp.lt.s32.totalorder %s5488_s14, %s5488_s14 }
  0xa4   :  { %p5106_p8 = scmp.ne.s32.totalorder %s5488_s14, %s5105_s23  ;;  %p5111_p10 = scmp.lt.s32.totalorder %s5105_s23, %s5105_s23 }
  0xa6   :  { %p5112_p11 = por %p5111_p10, %p5110_p9 }
  0xa8   :  { %p5113_p12 = pnand %p5112_p11, %p5106_p8 }
  0xaa   :  { %5116 = shalt.err (!%p5113_p12)
}
  0xab   :  { %103 = dma.hbm_to_vmem [thread:$0]  %s6327_s10, 32, %s5488_s14, [#allocation14], %s6344_s29, %s6344_s29, %s5249_s5  }
  0xac   :  { %s5256_s11 = smov [#allocation18]   ;;  %s5257_s8 = smov [#allocation21]  }
  0xad   :  { %s121_s1 = sshll.u32 %s5256_s11, 4  ;;  %s149_s2 = sshll.u32 %s5257_s8, 4  ;;  %s122_s1 = int_to_ptr.vmem [resolvable:$true] %s121_s1  ;;  %s5522_s2 = int_to_ptr.vmem [resolvable:$true] %s149_s2 }
  0xae   :  { %s5117_s25 = scalar_lea.hbm %s6329_s12, 32 }
  0xaf   :  { %p5118_p13 = scmp.ne.s32.totalorder %s6329_s12, %s5117_s25  ;;  %p5121_p0 = scmp.lt.u32.totalorder %s5117_s25, %s6329_s12 }
  0xb1   :  { %p5123_p1 = pnand %p5121_p0, %p5118_p13 }
  0xb3   :  { %5126 = shalt.err (!%p5123_p1)
}
  0xb4   :  { %s5127_s10 = scalar_lea.vmem %s122_s1, 32  ;;  %p5132_p3 = scmp.lt.s32.totalorder %s122_s1, %s122_s1 }
  0xb5   :  { %p5128_p2 = scmp.ne.s32.totalorder %s122_s1, %s5127_s10  ;;  %p5133_p4 = scmp.lt.s32.totalorder %s5127_s10, %s5127_s10 }
  0xb7   :  { %p5134_p5 = por %p5133_p4, %p5132_p3 }
  0xb9   :  { %p5135_p6 = pnand %p5134_p5, %p5128_p2 }
  0xbb   :  { %5138 = shalt.err (!%p5135_p6)
}
  0xbc   :  { %127 = dma.hbm_to_vmem [thread:$0]  %s6329_s12, 32, %s122_s1, [#allocation17], %s6344_s29, %s6344_s29, %s5249_s5  }
  0xbd   :  { %s5139_s22 = scalar_lea.hbm %s6333_s16, 32 }
  0xbe   :  { %p5140_p7 = scmp.ne.s32.totalorder %s6333_s16, %s5139_s22  ;;  %p5143_p8 = scmp.lt.u32.totalorder %s5139_s22, %s6333_s16 }
  0xc0   :  { %p5145_p9 = pnand %p5143_p8, %p5140_p7 }
  0xc2   :  { %5148 = shalt.err (!%p5145_p9)
}
  0xc3   :  { %s5149_s8 = scalar_lea.vmem %s5522_s2, 32  ;;  %p5154_p11 = scmp.lt.s32.totalorder %s5522_s2, %s5522_s2 }
  0xc4   :  { %p5150_p10 = scmp.ne.s32.totalorder %s5522_s2, %s5149_s8  ;;  %p5155_p12 = scmp.lt.s32.totalorder %s5149_s8, %s5149_s8 }
  0xc6   :  { %p5156_p13 = por %p5155_p12, %p5154_p11 }
  0xc8   :  { %p5157_p0 = pnand %p5156_p13, %p5150_p10 }
  0xca   :  { %5160 = shalt.err (!%p5157_p0)
}
  0xcb   :  { %155 = dma.hbm_to_vmem [thread:$0]  %s6333_s16, 32, %s5522_s2, [#allocation20], %s6344_s29, %s6344_s29, %s5249_s5  }
  0xcc   :  { %s5258_s4 = smov [#allocation24]   ;;  %s5259_s25 = smov [#allocation25]  }
  0xcd   :  { %s173_s27 = sshll.u32 %s5258_s4, 4  ;;  %s188_s26 = sshll.u32 %s5259_s25, 4  ;;  %s174_s27 = int_to_ptr.vmem [resolvable:$true] %s173_s27  ;;  %s189_s26 = int_to_ptr.vmem [resolvable:$true] %s188_s26 }
  0xce   :  { %s5161_s24 = scalar_lea.hbm %s6335_s18, 32 }
  0xcf   :  { %p5162_p1 = scmp.ne.s32.totalorder %s6335_s18, %s5161_s24  ;;  %p5165_p2 = scmp.lt.u32.totalorder %s5161_s24, %s6335_s18 }
  0xd1   :  { %p5167_p3 = pnand %p5165_p2, %p5162_p1 }
  0xd3   :  { %5170 = shalt.err (!%p5167_p3)
}
  0xd4   :  { %s5171_s16 = scalar_lea.vmem %s174_s27, 32  ;;  %p5176_p5 = scmp.lt.s32.totalorder %s174_s27, %s174_s27 }
  0xd5   :  { %p5172_p4 = scmp.ne.s32.totalorder %s174_s27, %s5171_s16  ;;  %p5177_p6 = scmp.lt.s32.totalorder %s5171_s16, %s5171_s16 }
  0xd7   :  { %p5178_p7 = por %p5177_p6, %p5176_p5 }
  0xd9   :  { %p5179_p8 = pnand %p5178_p7, %p5172_p4 }
  0xdb   :  { %5182 = shalt.err (!%p5179_p8)
}
  0xdc   :  { %179 = dma.hbm_to_vmem [thread:$0]  %s6335_s18, 32, %s174_s27, [#allocation23], %s6344_s29, %s6344_s29, %s5249_s5  }
  0xdd   :  { %s5183_s6 = scalar_lea.hbm %s6337_s20, 16 }
  0xde   :  { %p5184_p9 = scmp.ne.s32.totalorder %s6337_s20, %s5183_s6  ;;  %p5187_p10 = scmp.lt.u32.totalorder %s5183_s6, %s6337_s20 }
  0xe0   :  { %p5189_p11 = pnand %p5187_p10, %p5184_p9 }
  0xe2   :  { %5192 = shalt.err (!%p5189_p11)
}
  0xe3   :  { %s5193_s1 = scalar_lea.vmem %s189_s26, 16  ;;  %s5197_s4 = scalar_lea.vmem %s189_s26, 32 }
  0xe4   :  { %p5194_p12 = scmp.ne.s32.totalorder %s189_s26, %s5193_s1  ;;  %p5198_p13 = scmp.lt.s32.totalorder %s189_s26, %s189_s26 }
  0xe5   :  { %p5199_p0 = scmp.lt.s32.totalorder %s5197_s4, %s5193_s1 }
  0xe7   :  { %p5200_p1 = por %p5199_p0, %p5198_p13 }
  0xe9   :  { %p5201_p2 = pnand %p5200_p1, %p5194_p12 }
  0xeb   :  { %5204 = shalt.err (!%p5201_p2)
}
  0xec   :  { %191 = dma.hbm_to_vmem [thread:$0]  %s6337_s20, 16, %s189_s26, [#allocation26]  }
  0xed   :  { %5229 = dma.done.wait [#allocation8], 32  }
  0xee   :  { %5230 = vsyncadd [#allocation8], 4294967264 }
  0xef   :  { %5231 = dma.done.wait [#allocation11], 32  }
  0xf0   :  { %5232 = vsyncadd [#allocation11], 4294967264 }
  0xf1   :  { %5233 = dma.done.wait [#allocation14], 64  }
  0xf2   :  { %5234 = vsyncadd [#allocation14], 4294967232 }
  0xf3   :  { %5235 = dma.done.wait [#allocation17], 64  }
  0xf4   :  { %5236 = vsyncadd [#allocation17], 4294967232 }
  0xf5   :  { %5237 = dma.done.wait [#allocation20], 64  }
  0xf6   :  { %5238 = vsyncadd [#allocation20], 4294967232 }
  0xf7   :  { %5239 = dma.done.wait [#allocation23], 64  }
  0xf8   :  { %5240 = vsyncadd [#allocation23], 4294967232 }
  0xf9   :  { %5241 = dma.done.wait [#allocation26], 16  }
  0xfa   :  { %5242 = vsyncadd [#allocation26], 4294967280  ;;  %s229_s27 = sld [smem:[#allocation6]]  ;;  %s4198_s25 = sld [smem:[#allocation6 + $0x1]]  ;;  %vm235_vm0 = vcmask 253952   ;;  %vm346_vm1 = vcmask 261120  }
  0xfb   :  { %s4199_s3 = sld [smem:[#allocation6 + $0x2]]  ;;  %s4200_s17 = sld [smem:[#allocation6 + $0x3]]  ;;  %v5600_v0 = vld [vmem:[#allocation7] sm:$0x1]  ;;  %vm5261_vm2 = vmmov 0   ;;  %vm493_vm3 = vcmask 64512  }
  0xfc   :  { %s4201_s24 = sld [smem:[#allocation6 + $0x4]]  ;;  %s5586_s20 = sld [smem:[#allocation6 + $0x5]]  ;;  %vm825_vm4 = vcmask 130112   ;;  %vm996_vm5 = vcmask 195712   ;;  %vm1167_vm6 = vcmask 261312   ;;  %vm2105_vm7 = vcmask 523264  }
  0xfd   :  { %s5588_s26 = sld [smem:[#allocation6 + $0x6]]  ;;  %s5590_s10 = sld [smem:[#allocation6 + $0x7]]  ;;  %vm4159_vm8 = vcmask 254976  }
  0xfe   :  { %s5592_s14 = sld [smem:[#allocation6 + $0x80]]  ;;  %s5594_s0 = sld [smem:[#allocation6 + $0x81]] }
  0xff   :  { %s5596_s15 = sld [smem:[#allocation6 + $0x82]]  ;;  %s5598_s16 = sld [smem:[#allocation6 + $0x83]] }
 0x100   :  { %s6356_s22 = sld [smem:[#allocation39_spill]]  ;;  %s6357_s11 = sld [smem:[#allocation40_spill]] }
 0x101   :  { %s4210_s8 = sld [smem:[#allocation6 + $0x85]]  ;;  %s4212_s29 = sld [smem:[#allocation6 + $0x87]] }
 0x102   :  { %s5267_s5 = smov 112   ;;  %s5270_s6 = smov 56  }
 0x106   :  { %s230_s23 = scalar_lea.vmem %s6356_s22, %s229_s27  ;;  %v232_v1 = vld [vmem:[%s6357_s11] sm:$0x1]  ;;  %s238_s1 = scalar_lea.vmem %s6356_s22, %s4198_s25  ;;  %v240_v2 = vld [vmem:[%s6357_s11 + $0x1] sm:$0x1]  ;;  %v247_v5 = vld [vmem:[%s6357_s11 + $0x2] sm:$0x1] }
 0x107   :  { %v231_v3 = vld [vmem:[%s230_s23] sm:$0x1]  ;;  %s245_s2 = scalar_lea.vmem %s6356_s22, %s4199_s3  ;;  %s252_s25 = scalar_lea.vmem %s6356_s22, %s4200_s17  ;;  %v254_v10 = vld [vmem:[%s6357_s11 + $0x3] sm:$0x1]  ;;  %v261_v14 = vld [vmem:[%s6357_s11 + $0x4] sm:$0x1] }
 0x108   :  { %v239_v4 = vld [vmem:[%s238_s1] sm:$0x1]  ;;  %v233_v6 = vadd.f32 %v232_v1, %v231_v3  ;;  %s259_s3 = scalar_lea.vmem %s6356_s22, %s4201_s24  ;;  %s266_s18 = scalar_lea.vmem %s6356_s22, %s5586_s20  ;;  %v268_v19 = vld [vmem:[%s6357_s11 + $0x5] sm:$0x1]  ;;  %v275_v21 = vld [vmem:[%s6357_s11 + $0x6] sm:$0x1] }
 0x109   :  { %v241_v7 = vadd.f32 %v240_v2, %v239_v4  ;;  %v246_v8 = vld [vmem:[%s245_s2] sm:$0x1]  ;;  %s273_s28 = scalar_lea.vmem %s6356_s22, %s5588_s26  ;;  %s280_s24 = scalar_lea.vmem %s6356_s22, %s5590_s10  ;;  %v282_v27 = vld [vmem:[%s6357_s11 + $0x7] sm:$0x1]  ;;  %v296_v33 = vld [vmem:[%s6357_s11 + $0x1] sm:$0x1] }
 0x10a   :  { %v253_v9 = vld [vmem:[%s252_s25] sm:$0x1]  ;;  %v248_v11 = vadd.f32 %v247_v5, %v246_v8  ;;  %v234_v16 = vadd.f32 %v233_v6, %v5600_v0  ;;  %s287_s10 = scalar_lea.vmem %s6356_s22, %s5592_s14  ;;  %s294_s1 = scalar_lea.vmem %s6356_s22, %s5594_s0  ;;  %v303_v39 = vld [vmem:[%s6357_s11 + $0x2] sm:$0x1]  ;;  %v310_v43 = vld [vmem:[%s6357_s11 + $0x3] sm:$0x1] }
 0x10b   :  { %v255_v12 = vadd.f32 %v254_v10, %v253_v9  ;;  %v260_v13 = vld [vmem:[%s259_s3] sm:$0x1]  ;;  %v242_v17 = vadd.f32 %v241_v7, %v5600_v0  ;;  %s301_s14 = scalar_lea.vmem %s6356_s22, %s5596_s15  ;;  %s308_s0 = scalar_lea.vmem %s6356_s22, %s5598_s16  ;;  %v317_v49 = vld [vmem:[%s6357_s11 + $0x4] sm:$0x1]  ;;  %v324_v50 = vld [vmem:[%s6357_s11 + $0x5] sm:$0x1] }
 0x10c   :  { %v267_v15 = vld [vmem:[%s266_s18] sm:$0x1]  ;;  %v262_v18 = vadd.f32 %v261_v14, %v260_v13  ;;  %v249_v22 = vadd.f32 %v248_v11, %v5600_v0  ;;  %236 = vst.msk [vmem:[#allocation2] sm:$0x1] %vm235_vm0, %v234_v16  ;;  %s4209_s23 = sld [smem:[#allocation6 + $0x84]]  ;;  %s4211_s26 = sld [smem:[#allocation6 + $0x86]] }
 0x10d   :  { %v274_v20 = vld [vmem:[%s273_s28] sm:$0x1]  ;;  %v256_v23 = vadd.f32 %v255_v12, %v5600_v0  ;;  %v269_v24 = vadd.f32 %v268_v19, %v267_v15  ;;  %243 = vst.msk [vmem:[#allocation2 + $0x1] sm:$0x1] %vm235_vm0, %v242_v17  ;;  %v331_v51 = vld [vmem:[%s6357_s11 + $0x6] sm:$0x1]  ;;  %s336_s25 = scalar_lea.vmem %s6356_s22, %s4212_s29 }
 0x10e   :  { %v276_v25 = vadd.f32 %v275_v21, %v274_v20  ;;  %v281_v26 = vld [vmem:[%s280_s24] sm:$0x1]  ;;  %v263_v29 = vadd.f32 %v262_v18, %v5600_v0  ;;  %250 = vst.msk [vmem:[#allocation2 + $0x2] sm:$0x1] %vm235_vm0, %v249_v22  ;;  %v338_v53 = vld [vmem:[%s6357_s11 + $0x7] sm:$0x1] }
 0x10f   :  { %v288_v28 = vld [vmem:[%s287_s10] sm:$0x1]  ;;  %v283_v30 = vadd.f32 %v282_v27, %v281_v26  ;;  %257 = vst.msk [vmem:[#allocation2 + $0x3] sm:$0x1] %vm235_vm0, %v256_v23  ;;  %v270_v34 = vadd.f32 %v269_v24, %v5600_v0  ;;  %v395_v16 = vld [vmem:[%s6324_s7 + $0x8] sm:$0xff]  ;;  %v396_v17 = vld [vmem:[%s6324_s7 + $0x10] sm:$0xff] }
 0x110   :  { %v289_v31 = vld [vmem:[%s6357_s11] sm:$0x1]  ;;  %v277_v35 = vadd.f32 %v276_v25, %v5600_v0  ;;  %264 = vst.msk [vmem:[#allocation2 + $0x4] sm:$0x1] %vm235_vm0, %v263_v29  ;;  %v397_v19 = vld [vmem:[%s6324_s7 + $0x18] sm:$0xff]  ;;  %s5262_s3 = smov 96  }
 0x111   :  { %v295_v32 = vld [vmem:[%s294_s1] sm:$0x1]  ;;  %v290_v36 = vadd.f32 %v289_v31, %v288_v28  ;;  %v284_v41 = vadd.f32 %v283_v30, %v5600_v0  ;;  %271 = vst.msk [vmem:[#allocation2 + $0x5] sm:$0x1] %vm235_vm0, %v270_v34  ;;  %v4721_v20 = vpack.c.bf16 %v397_v19, %v396_v17  ;;  %v4213_v28 = vld [vmem:[#allocation10] ss:$0 sm:$0xff] }
 0x112   :  { %v297_v37 = vadd.f32 %v296_v33, %v295_v32  ;;  %v302_v38 = vld [vmem:[%s301_s14] sm:$0x1]  ;;  %278 = vst.msk [vmem:[#allocation2 + $0x6] sm:$0x1] %vm235_vm0, %v277_v35  ;;  %s315_s4 = scalar_lea.vmem %s6356_s22, %s4209_s23  ;;  %s329_s30 = scalar_lea.vmem %s6356_s22, %s4211_s26  ;;  %v4214_v30 = vld [vmem:[#allocation12] ss:$0 sm:$0xff] }
 0x113   :  { %v309_v40 = vld [vmem:[%s308_s0] sm:$0x1]  ;;  %v304_v42 = vadd.f32 %v303_v39, %v302_v38  ;;  %v291_v44 = vadd.f32 %v290_v36, %v5600_v0  ;;  %285 = vst.msk [vmem:[#allocation2 + $0x7] sm:$0x1] %vm235_vm0, %v284_v41  ;;  %s322_s0 = scalar_lea.vmem %s6356_s22, %s4210_s8  ;;  %v4215_v38 = vld [vmem:[#allocation13] ss:$0 sm:$0xff] }
 0x114   :  { %v298_v45 = vadd.f32 %v297_v37, %v5600_v0  ;;  %v311_v46 = vadd.f32 %v310_v43, %v309_v40  ;;  %v316_v52 = vld [vmem:[%s315_s4] sm:$0x1]  ;;  %v5260_v37 = vmov 0.0   ;;  %s5263_s1 = smov 88   ;;  %s5264_s4 = smov 80  }
 0x115   :  { %v305_v47 = vadd.f32 %v304_v42, %v5600_v0  ;;  %292 = vst.msk [vmem:[#allocation2 + $0x8] sm:$0x1] %vm235_vm0, %v291_v44  ;;  %v318_v54 = vadd.f32 %v317_v49, %v316_v52  ;;  %v323_v55 = vld [vmem:[%s322_s0] sm:$0x1]  ;;  %4453 = vmatprep.subr.mxu1 %v5260_v37  ;;  %4455 = vmatprep.mubr.msk.f32.mxu1 %vm5261_vm2, %v5260_v37  ;;  %s5265_s18 = smov 72   ;;  %s5266_s17 = smov 120  }
 0x116   :  { %299 = vst.msk [vmem:[#allocation2 + $0x9] sm:$0x1] %vm235_vm0, %v298_v45  ;;  %v312_v48 = vadd.f32 %v311_v46, %v5600_v0  ;;  %v330_v56 = vld [vmem:[%s329_s30] sm:$0x1]  ;;  %v325_v58 = vadd.f32 %v324_v50, %v323_v55  ;;  %s5268_s14 = smov 104   ;;  %s6358_s0 = sld [smem:[#allocation38_spill]] }
 0x117   :  { %306 = vst.msk [vmem:[#allocation2 + $0xa] sm:$0x1] %vm235_vm0, %v305_v47  ;;  %v332_v59 = vadd.f32 %v331_v51, %v330_v56  ;;  %v337_v60 = vld [vmem:[%s336_s25] sm:$0x1]  ;;  %v319_v62 = vadd.f32 %v318_v54, %v5600_v0  ;;  %s5269_s28 = smov 64   ;;  %s5271_s30 = smov 40  }
 0x118   :  { %313 = vst.msk [vmem:[#allocation2 + $0xb] sm:$0x1] %vm235_vm0, %v312_v48  ;;  %v339_v63 = vadd.f32 %v338_v53, %v337_v60  ;;  %v326_v1 = vadd.f32 %v325_v58, %v5600_v0  ;;  %v394_v15 = vld [vmem:[%s6324_s7] sm:$0xff]  ;;  %v486_v48 = vlaneseq  ;;  %s5272_s24 = smov 48   ;;  %s5273_s15 = smov 8  }
 0x119   :  { %v333_v2 = vadd.f32 %v332_v59, %v5600_v0  ;;  %320 = vst.msk [vmem:[#allocation2 + $0xc] sm:$0x1] %vm235_vm0, %v319_v62  ;;  %v4717_v18 = vpack.c.bf16 %v395_v16, %v394_v15  ;;  %s6359_s16 = smov 16   ;;  %s5274_s20 = smov 24  }
 0x11a   :  { %v342_v57 = vld [vmem:[#allocation2] sm:$0xff]  ;;  %v340_v3 = vadd.f32 %v339_v63, %v5600_v0  ;;  %327 = vst.msk [vmem:[#allocation2 + $0xd] sm:$0x1] %vm235_vm0, %v326_v1  ;;  %v5798_v50 = vshrl.u32 %v486_v48, 7  ;;  %s6360_s29 = sld [smem:[#allocation43_spill]] }
 0x11b   :  { %v347_v61 = vsel %vm346_vm1, %v342_v57, 0.0  ;;  %334 = vst.msk [vmem:[#allocation2 + $0xe] sm:$0x1] %vm235_vm0, %v333_v2  ;;  %4718 = vmatprep.subr.bf16.mxu0 %v4717_v18 }
 0x11c   :  { %348 = vadd.xlane.f32.xlu0 %v347_v61  ;;  %341 = vst.msk [vmem:[#allocation2 + $0xf] sm:$0x1] %vm235_vm0, %v340_v3  ;;  %4720 = vmatpush3.bf16.msra.mxu0 %v4717_v18  ;;  %v390_v46 = vld [vmem:[%s6358_s0] sm:$0x3]  ;;  %v488_v52 = vsub.s32 0, %v5798_v50  ;;  %v1171_v17 = vsub.s32 1, %v5798_v50 }
 0x11d   :  { %4722 = vmatprep.subr.bf16.mxu0 %v4721_v20  ;;  %v391_v47 = vcvt.s32.f32 %v390_v46 }
 0x11f   :  { %v392_v49 = vsub.f32 1.0, %v391_v47 }
 0x120   :  { %4724 = vmatpush3.bf16.msra.mxu0 %v4721_v20 }
 0x121   :  { %4473 = vmatprep.subr.mxu0 %v5260_v37  ;;  %v5800_v51 = vmul.f32 -10000.0, %v392_v49 }
 0x123   :  { %v343_v4 = vld [vmem:[#allocation2 + $0x8] sm:$0xff]  ;;  %v5804_v53 = vrot.slane %v5800_v51, %v488_v52 }
 0x124   :  { %v350_v5 = vsel %vm346_vm1, %v343_v4, 0.0 }
 0x125   :  { %351 = vadd.xlane.f32.xlu0 %v350_v5 }
 0x1a9   :  { %v349_v6 = vpop.xlane.xlu0 %348 }
 0x1aa   :  { %v354_v7 = vmul.f32 0.03125, %v349_v6 }
 0x1ac   :  { %v356_v8 = vsub.f32 %v342_v57, %v354_v7 }
 0x1ae   :  { %v358_v9 = vmul.f32 %v356_v8, %v356_v8 }
 0x1b0   :  { %v360_v10 = vsel %vm346_vm1, %v358_v9, 0.0 }
 0x1b1   :  { %361 = vadd.xlane.f32.xlu1 %v360_v10 }
 0x1b2   :  { %v352_v11 = vpop.xlane.xlu0 %351 }
 0x1b3   :  { %v355_v12 = vmul.f32 0.03125, %v352_v11 }
 0x1b5   :  { %v357_v0 = vsub.f32 %v343_v4, %v355_v12 }
 0x1b7   :  { %v359_v13 = vmul.f32 %v357_v0, %v357_v0 }
 0x1b9   :  { %v363_v14 = vsel %vm346_vm1, %v359_v13, 0.0 }
 0x1ba   :  { %364 = vadd.xlane.f32.xlu1 %v363_v14 }
 0x23e   :  { %v362_v21 = vpop.xlane.xlu1 %361 }
 0x23f   :  { %v366_v22 = vmul.f32 0.03125, %v362_v21 }
 0x241   :  { %v368_v23 = vadd.f32 1e-12, %v366_v22  ;;  %v5863_v22 = vrot.slane %v5800_v51, %v1171_v17 }
 0x243   :  { %4835 = vrsqrt.f32 %v368_v23 }
 0x247   :  { %v365_v24 = vpop.xlane.xlu1 %364 }
 0x248   :  { %v367_v25 = vmul.f32 0.03125, %v365_v24 }
 0x24a   :  { %v369_v27 = vadd.f32 1e-12, %v367_v25 }
 0x24c   :  { %4837 = vrsqrt.f32 %v369_v27 }
 0x24d   :  { %v4836_v26 = vpop.eup %4835 }
 0x24e   :  { %v372_v29 = vmul.f32 %v4836_v26, %v356_v8 }
 0x250   :  { %v380_v31 = vmul.f32 %v4213_v28, %v372_v29 }
 0x252   :  { %v5753_v32 = vadd.f32 %v4214_v30, %v380_v31 }
 0x254   :  { %4450 = vmatprep.mubr.msk.f32.mxu0 %vm346_vm1, %v5753_v32 }
 0x256   :  { %v4838_v33 = vpop.eup %4837 }
 0x257   :  { %v373_v34 = vmul.f32 %v4838_v33, %v357_v0 }
 0x259   :  { %v381_v35 = vmul.f32 %v4213_v28, %v373_v34 }
 0x25b   :  { %v5757_v36 = vadd.f32 %v4214_v30, %v381_v35 }
 0x25d   :  { %4451 = vmatmul.mubr.msk.f32.vlgmr.msra.gmra.mrb[0].mxu0 %vm346_vm1, %v5757_v36 }
 0x25e   :  { %4475 = vmatprep.mubr.msk.f32.mxu0 %vm5261_vm2, %v5260_v37 }
 0x330   :  { %v4452_v39 = vpop.f32.mrb[0].mxu0 }
 0x331   :  { %v477_v40 = vpop.f32.mrb[1].mxu0  ;;  %v5777_v42 = vadd.f32 %v4452_v39, %v4215_v38 }
 0x332   :  { %v5767_v41 = vadd.f32 %v4215_v38, %v477_v40 }
 0x334   :  { %491 = vrot.lane.b32.xlu0 %v5767_v41, %s5262_s3 }
 0x338   :  { %658 = vrot.lane.b32.xlu0 %v5767_v41, %s5263_s1 }
 0x33c   :  { %829 = vrot.lane.b32.xlu0 %v5767_v41, %s5264_s4 }
 0x340   :  { %1000 = vrot.lane.b32.xlu0 %v5767_v41, %s5265_s18 }
 0x344   :  { %1174 = vrot.lane.b32.xlu0 %v5777_v42, %s5262_s3 }
 0x348   :  { %1338 = vrot.lane.b32.xlu0 %v5777_v42, %s5266_s17 }
 0x34c   :  { %1508 = vrot.lane.b32.xlu0 %v5777_v42, %s5267_s5 }
 0x350   :  { %1678 = vrot.lane.b32.xlu0 %v5777_v42, %s5268_s14 }
 0x3a6   :  { %v492_v43 = vpop.permute.xlu0 %491 }
 0x3a7   :  { %4454 = vmatpush3.xpose.msk.msra.mxu1 %vm493_vm3, %v492_v43 }
 0x3a8   :  { %4458 = vmatprep.subr.mxu1 %v5260_v37 }
 0x3aa   :  { %4456 = vmatmul.mubr.msk.f32.vlgmr.msra.gmra.mrb[0].mxu1 %vm493_vm3, %v5767_v41  ;;  %v659_v44 = vpop.permute.xlu0 %658 }
 0x3ab   :  { %4460 = vmatprep.mubr.msk.f32.mxu1 %vm5261_vm2, %v5260_v37 }
 0x3ae   :  { %v830_v45 = vpop.permute.xlu0 %829 }
 0x3af   :  { %4474 = vmatpush3.xpose.msk.msra.mxu0 %vm493_vm3, %v830_v45 }
 0x3b0   :  { %4483 = vmatprep.subr.mxu0 %v5260_v37 }
 0x3b2   :  { %v1001_v2 = vpop.permute.xlu0 %1000 }
 0x3b6   :  { %v1175_v5 = vpop.permute.xlu0 %1174 }
 0x3ba   :  { %v1339_v8 = vpop.permute.xlu0 %1338 }
 0x3be   :  { %v1509_v12 = vpop.permute.xlu0 %1508 }
 0x3c2   :  { %v1679_v13 = vpop.permute.xlu0 %1678 }
 0x47d   :  { %v564_v54 = vpop.f32.mrb[0].mxu1 }
 0x47e   :  { %v565_v55 = vadd.f32 %v564_v54, %v5804_v53  ;;  %v4457_v56 = vpop.f32.mrb[1].mxu1 }
 0x480   :  { %v568_v57 = vsel %vm493_vm3, %v565_v55, -inf }
 0x481   :  { %569 = vmax.xlane.f32.xlu1 %v568_v57 }
 0x492   :  { %579 = vrot.lane.b32.xlu1 %v5767_v41, %s5269_s28 }
 0x496   :  { %656 = vrot.lane.b32.xlu1 %v5767_v41, %s5266_s17 }
 0x50e   :  { %v570_v58 = vpop.xlane.xlu1 %569 }
 0x50f   :  { %v571_v59 = vsub.f32 %v565_v55, %v570_v58 }
 0x511   :  { %v572_v60 = vmul.f32 1.442695, %v571_v59 }
 0x512   :  { %v580_v61 = vpop.permute.xlu1 %579 }
 0x513   :  { %4839 = vpow2.f32 %v572_v60  ;;  %4459 = vmatpush3.msra.mxu1 %v580_v61 }
 0x514   :  { %4463 = vmatprep.subr.mxu1 %v5260_v37 }
 0x516   :  { %v657_v1 = vpop.permute.xlu1 %656 }
 0x51d   :  { %v4840_v62 = vpop.eup %4839 }
 0x51e   :  { %v574_v63 = vsel %vm493_vm3, %v4840_v62, 0.0 }
 0x51f   :  { %575 = vadd.xlane.f32.xlu1 %v574_v63 }
 0x530   :  { %827 = vrot.lane.b32.xlu1 %v5767_v41, %s5267_s5 }
 0x534   :  { %998 = vrot.lane.b32.xlu1 %v5767_v41, %s5268_s14 }
 0x538   :  { %1340 = vrot.lane.b32.xlu1 %v5777_v42, %s5263_s1 }
 0x53c   :  { %1510 = vrot.lane.b32.xlu1 %v5777_v42, %s5264_s4 }
 0x540   :  { %1680 = vrot.lane.b32.xlu1 %v5777_v42, %s5265_s18 }
 0x5ac   :  { %v576_v3 = vpop.xlane.xlu1 %575 }
 0x5ad   :  { %4841 = vrcp.f32 %v576_v3 }
 0x5b0   :  { %v828_v4 = vpop.permute.xlu1 %827 }
 0x5b1   :  { %4476 = vmatmul.mubr.msk.f32.vlgmr.msra.gmra.mrb[2].mxu0 %vm493_vm3, %v828_v4 }
 0x5b2   :  { %4484 = vmatpush3.xpose.msk.msra.mxu0 %vm493_vm3, %v1001_v2  ;;  %4485 = vmatprep.mubr.msk.f32.mxu0 %vm5261_vm2, %v5260_v37 }
 0x5b3   :  { %4493 = vmatprep.subr.mxu0 %v5260_v37 }
 0x5b4   :  { %v999_v6 = vpop.permute.xlu1 %998 }
 0x5b5   :  { %4486 = vmatmul.mubr.msk.f32.vlgmr.msra.gmra.mrb[4].mxu0 %vm493_vm3, %v999_v6 }
 0x5b6   :  { %4494 = vmatpush3.xpose.msk.msra.mxu0 %vm493_vm3, %v1175_v5  ;;  %4495 = vmatprep.mubr.msk.f32.mxu0 %vm5261_vm2, %v5260_v37 }
 0x5b7   :  { %v4842_v7 = vpop.eup %4841  ;;  %4503 = vmatprep.subr.mxu0 %v5260_v37 }
 0x5b8   :  { %v578_v9 = vmul.f32 %v4842_v7, %v4840_v62  ;;  %v1341_v10 = vpop.permute.xlu1 %1340 }
 0x5b9   :  { %4496 = vmatmul.mubr.msk.f32.vlgmr.msra.gmra.mrb[6].mxu0 %vm493_vm3, %v5777_v42 }
 0x5ba   :  { %4504 = vmatpush3.xpose.msk.msra.mxu0 %vm493_vm3, %v1341_v10  ;;  %4461 = vmatmul.mubr.msk.f32.vlgmr.msra.gmra.mrb[2].mxu1 %vm493_vm3, %v578_v9 }
 0x5bb   :  { %4464 = vmatpush3.xpose.msk.msra.mxu1 %vm493_vm3, %v659_v44  ;;  %4505 = vmatprep.mubr.msk.f32.mxu0 %vm5261_vm2, %v5260_v37 }
 0x5bc   :  { %v1511_v11 = vpop.permute.xlu1 %1510  ;;  %4513 = vmatprep.subr.mxu0 %v5260_v37  ;;  %4465 = vmatprep.mubr.msk.f32.mxu1 %vm5261_vm2, %v5260_v37 }
 0x5bd   :  { %4506 = vmatmul.mubr.msk.f32.vlgmr.msra.gmra.mrb[8].mxu0 %vm493_vm3, %v1339_v8  ;;  %4468 = vmatprep.subr.mxu1 %v5260_v37 }
 0x5be   :  { %4514 = vmatpush3.xpose.msk.msra.mxu0 %vm493_vm3, %v1511_v11  ;;  %4466 = vmatmul.mubr.msk.f32.vlgmr.msra.gmra.mrb[4].mxu1 %vm493_vm3, %v657_v1 }
 0x5bf   :  { %4515 = vmatprep.mubr.msk.f32.mxu0 %vm5261_vm2, %v5260_v37  ;;  %4523 = vmatprep.subr.mxu0 %v5260_v37 }
 0x5c0   :  { %v1681_v0 = vpop.permute.xlu1 %1680  ;;  %4470 = vmatprep.mubr.msk.f32.mxu1 %vm5261_vm2, %v5260_v37 }
 0x5c1   :  { %4516 = vmatmul.mubr.msk.f32.vlgmr.msra.gmra.mrb[10].mxu0 %vm493_vm3, %v1509_v12 }
 0x5c2   :  { %4524 = vmatpush3.xpose.msk.msra.mxu0 %vm493_vm3, %v1681_v0  ;;  %4525 = vmatprep.mubr.msk.f32.mxu0 %vm5261_vm2, %v5260_v37 }
 0x5c5   :  { %4526 = vmatmul.mubr.msk.f32.vlgmr.msra.gmra.mrb[12].mxu0 %vm493_vm3, %v1679_v13 }
 0x684   :  { %v901_v14 = vpop.f32.mrb[2].mxu0 }
 0x685   :  { %v902_v15 = vadd.f32 %v901_v14, %v5804_v53  ;;  %v4477_v16 = vpop.f32.mrb[3].mxu0 }
 0x687   :  { %v905_v18 = vsel %vm493_vm3, %v902_v15, -inf }
 0x688   :  { %906 = vmax.xlane.f32.xlu0 %v905_v18  ;;  %v1072_v19 = vpop.f32.mrb[4].mxu0 }
 0x689   :  { %v1073_v20 = vadd.f32 %v1072_v19, %v5804_v53  ;;  %v4487_v21 = vpop.f32.mrb[5].mxu0 }
 0x68b   :  { %v1076_v23 = vsel %vm493_vm3, %v1073_v20, -inf }
 0x68c   :  { %1077 = vmax.xlane.f32.xlu0 %v1076_v23  ;;  %v1246_v24 = vpop.f32.mrb[6].mxu0 }
 0x68d   :  { %v1247_v25 = vadd.f32 %v1246_v24, %v5863_v22  ;;  %v651_v26 = vpop.f32.mrb[2].mxu1  ;;  %v4497_v27 = vpop.f32.mrb[7].mxu0 }
 0x68e   :  { %655 = vst.msk [vmem:[#allocation3] sm:$0xff] %vm493_vm3, %v651_v26  ;;  %v4462_v28 = vpop.f32.mrb[3].mxu1 }
 0x68f   :  { %v1250_v29 = vsel %vm493_vm3, %v1247_v25, -inf }
 0x690   :  { %1251 = vmax.xlane.f32.xlu0 %v1250_v29  ;;  %v1412_v30 = vpop.f32.mrb[8].mxu0 }
 0x691   :  { %v730_v31 = vpop.f32.mrb[4].mxu1  ;;  %v4507_v33 = vpop.f32.mrb[9].mxu0  ;;  %v1413_v38 = vadd.f32 %v1412_v30, %v5863_v22 }
 0x692   :  { %v731_v34 = vadd.f32 %v730_v31, %v5804_v53  ;;  %v4467_v35 = vpop.f32.mrb[5].mxu1 }
 0x693   :  { %v1416_v47 = vsel %vm493_vm3, %v1413_v38, -inf }
 0x694   :  { %v1582_v39 = vpop.f32.mrb[10].mxu0  ;;  %v734_v40 = vsel %vm493_vm3, %v731_v34, -inf }
 0x695   :  { %v1583_v43 = vadd.f32 %v1582_v39, %v5863_v22  ;;  %735 = vmax.xlane.f32.xlu1 %v734_v40  ;;  %v4517_v44 = vpop.f32.mrb[11].mxu0 }
 0x697   :  { %v1586_v45 = vsel %vm493_vm3, %v1583_v43, -inf }
 0x698   :  { %1587 = vmax.xlane.f32.xlu0 %v1586_v45  ;;  %v1752_v46 = vpop.f32.mrb[12].mxu0 }
 0x699   :  { %v1753_v48 = vadd.f32 %v1752_v46, %v5863_v22  ;;  %1417 = vmax.xlane.f32.xlu1 %v1416_v47  ;;  %v4527_v49 = vpop.f32.mrb[13].mxu0 }
 0x69b   :  { %v1756_v50 = vsel %vm493_vm3, %v1753_v48, -inf }
 0x69d   :  { %1757 = vmax.xlane.f32.xlu1 %v1756_v50 }
 0x715   :  { %v907_v51 = vpop.xlane.xlu0 %906 }
 0x716   :  { %v908_v52 = vsub.f32 %v902_v15, %v907_v51 }
 0x718   :  { %v909_v54 = vmul.f32 1.442695, %v908_v52 }
 0x719   :  { %v1078_v55 = vpop.xlane.xlu0 %1077 }
 0x71a   :  { %4843 = vpow2.f32 %v909_v54  ;;  %v1079_v56 = vsub.f32 %v1073_v20, %v1078_v55 }
 0x71c   :  { %v1080_v57 = vmul.f32 1.442695, %v1079_v56 }
 0x71d   :  { %v1252_v58 = vpop.xlane.xlu0 %1251 }
 0x71e   :  { %4845 = vpow2.f32 %v1080_v57  ;;  %v1253_v59 = vsub.f32 %v1247_v25, %v1252_v58 }
 0x720   :  { %v1254_v60 = vmul.f32 1.442695, %v1253_v59 }
 0x722   :  { %4847 = vpow2.f32 %v1254_v60  ;;  %v736_v61 = vpop.xlane.xlu1 %735 }
 0x723   :  { %v737_v7 = vsub.f32 %v731_v34, %v736_v61 }
 0x724   :  { %v5877_v62 = vpop.eup %4843 }
 0x725   :  { %v1588_v63 = vpop.xlane.xlu0 %1587  ;;  %v911_v1 = vsel %vm493_vm3, %v5877_v62, 0.0  ;;  %v738_v0 = vmul.f32 1.442695, %v737_v7 }
 0x726   :  { %v1589_v2 = vsub.f32 %v1583_v43, %v1588_v63  ;;  %v1418_v3 = vpop.xlane.xlu1 %1417  ;;  %912 = vadd.xlane.f32.xlu1 %v911_v1  ;;  %v1851_v63 = vld [vmem:[%s6326_s9 + $0x8] sm:$0xff] }
 0x727   :  { %v1419_v4 = vsub.f32 %v1413_v38, %v1418_v3  ;;  %v1852_v3 = vld [vmem:[%s6326_s9 + $0x10] sm:$0xff] }
 0x728   :  { %v5881_v5 = vpop.eup %4845  ;;  %v1590_v6 = vmul.f32 1.442695, %v1589_v2 }
 0x729   :  { %v1420_v8 = vmul.f32 1.442695, %v1419_v4  ;;  %v1082_v9 = vsel %vm493_vm3, %v5881_v5, 0.0  ;;  %v1853_v4 = vld [vmem:[%s6326_s9 + $0x18] sm:$0xff] }
 0x72a   :  { %4849 = vpow2.f32 %v1590_v6  ;;  %v1758_v10 = vpop.xlane.xlu1 %1757  ;;  %1083 = vadd.xlane.f32.xlu0 %v1082_v9  ;;  %v4729_v6 = vpack.c.bf16 %v1853_v4, %v1852_v3  ;;  %v2092_v4 = vld [vmem:[%s6360_s29 + $0x10] sm:$0xff] }
 0x72b   :  { %4851 = vpow2.f32 %v1420_v8  ;;  %v1759_v11 = vsub.f32 %v1753_v48, %v1758_v10 }
 0x72c   :  { %v5885_v12 = vpop.eup %4847 }
 0x72d   :  { %v1760_v13 = vmul.f32 1.442695, %v1759_v11  ;;  %v1256_v14 = vsel %vm493_vm3, %v5885_v12, 0.0 }
 0x72e   :  { %1257 = vadd.xlane.f32.xlu1 %v1256_v14 }
 0x72f   :  { %4853 = vpow2.f32 %v1760_v13 }
 0x730   :  { %4855 = vpow2.f32 %v738_v0 }
 0x734   :  { %v5889_v15 = vpop.eup %4849 }
 0x735   :  { %v5891_v16 = vpop.eup %4851  ;;  %v1592_v17 = vsel %vm493_vm3, %v5889_v15, 0.0 }
 0x736   :  { %1593 = vadd.xlane.f32.xlu1 %v1592_v17  ;;  %v1422_v18 = vsel %vm493_vm3, %v5891_v16, 0.0 }
 0x737   :  { %1423 = vadd.xlane.f32.xlu0 %v1422_v18 }
 0x739   :  { %v5897_v19 = vpop.eup %4853 }
 0x73a   :  { %v1762_v20 = vsel %vm493_vm3, %v5897_v19, 0.0  ;;  %v4856_v21 = vpop.eup %4855 }
 0x73b   :  { %1763 = vadd.xlane.f32.xlu0 %v1762_v20  ;;  %v740_v23 = vsel %vm493_vm3, %v4856_v21, 0.0  ;;  %v4242_v20 = vld [vmem:[#allocation15] ss:$0 sm:$0xff] }
 0x73f   :  { %741 = vadd.xlane.f32.xlu0 %v740_v23 }
 0x747   :  { %745 = vrot.lane.b32.xlu1 %v5767_v41, %s5270_s6 }
 0x74b   :  { %1087 = vrot.lane.b32.xlu1 %v5767_v41, %s5271_s30 }
 0x74f   :  { %1261 = vrot.lane.b32.xlu1 %v5777_v42, %s5269_s28 }
 0x753   :  { %1427 = vrot.lane.b32.xlu1 %v5777_v42, %s5270_s6 }
 0x755   :  { %916 = vrot.lane.b32.xlu0 %v5767_v41, %s5272_s24 }
 0x757   :  { %1767 = vrot.lane.b32.xlu1 %v5777_v42, %s5271_s30 }
 0x759   :  { %1597 = vrot.lane.b32.xlu0 %v5777_v42, %s5272_s24 }
 0x7b3   :  { %v913_v24 = vpop.xlane.xlu1 %912 }
 0x7b7   :  { %v1084_v26 = vpop.xlane.xlu0 %1083 }
 0x7bb   :  { %v1258_v25 = vpop.xlane.xlu1 %1257 }
 0x7c3   :  { %v1594_v27 = vpop.xlane.xlu1 %1593 }
 0x7c4   :  { %v1424_v28 = vpop.xlane.xlu0 %1423 }
 0x7c7   :  { %v746_v29 = vpop.permute.xlu1 %745 }
 0x7c8   :  { %4469 = vmatpush3.msra.mxu1 %v746_v29  ;;  %v1764_v30 = vpop.xlane.xlu0 %1763 }
 0x7c9   :  { %4478 = vmatprep.subr.mxu1 %v5260_v37 }
 0x7cb   :  { %v1088_v35 = vpop.permute.xlu1 %1087 }
 0x7cc   :  { %v742_v31 = vpop.xlane.xlu0 %741 }
 0x7cd   :  { %4857 = vrcp.f32 %v742_v31 }
 0x7ce   :  { %4859 = vrcp.f32 %v913_v24 }
 0x7cf   :  { %4861 = vrcp.f32 %v1084_v26  ;;  %v1262_v43 = vpop.permute.xlu1 %1261 }
 0x7d0   :  { %4863 = vrcp.f32 %v1258_v25  ;;  %v917_v42 = vpop.permute.xlu0 %916 }
 0x7d1   :  { %4865 = vrcp.f32 %v1424_v28 }
 0x7d2   :  { %4867 = vrcp.f32 %v1594_v27 }
 0x7d3   :  { %4869 = vrcp.f32 %v1764_v30  ;;  %v1428_v47 = vpop.permute.xlu1 %1427 }
 0x7d4   :  { %v1598_v50 = vpop.permute.xlu0 %1597 }
 0x7d7   :  { %v4858_v41 = vpop.eup %4857  ;;  %v1768_v54 = vpop.permute.xlu1 %1767 }
 0x7d8   :  { %v744_v33 = vmul.f32 %v4858_v41, %v4856_v21  ;;  %v4860_v34 = vpop.eup %4859 }
 0x7d9   :  { %v915_v38 = vmul.f32 %v4860_v34, %v5877_v62  ;;  %v4862_v39 = vpop.eup %4861  ;;  %v1850_v62 = vld [vmem:[%s6326_s9] sm:$0xff] }
 0x7da   :  { %4471 = vmatmul.mubr.msk.f32.vlgmr.msra.gmra.mrb[6].mxu1 %vm493_vm3, %v744_v33  ;;  %v1086_v40 = vmul.f32 %v4862_v39, %v5881_v5  ;;  %v4864_v44 = vpop.eup %4863  ;;  %v4725_v1 = vpack.c.bf16 %v1851_v63, %v1850_v62 }
 0x7db   :  { %4479 = vmatpush3.msra.mxu1 %v917_v42  ;;  %4480 = vmatprep.mubr.msk.f32.mxu1 %vm5261_vm2, %v5260_v37  ;;  %v1260_v45 = vmul.f32 %v4864_v44, %v5885_v12  ;;  %v4866_v46 = vpop.eup %4865  ;;  %v1990_v44 = vld [vmem:[%s6330_s13 + $0x10] sm:$0xff] }
 0x7dc   :  { %4488 = vmatprep.subr.mxu1 %v5260_v37  ;;  %v1426_v48 = vmul.f32 %v4866_v46, %v5891_v16  ;;  %v4868_v49 = vpop.eup %4867  ;;  %4726 = vmatprep.subr.bf16.mxu0 %v4725_v1 }
 0x7dd   :  { %v1596_v51 = vmul.f32 %v4868_v49, %v5889_v15  ;;  %v4870_v52 = vpop.eup %4869  ;;  %4728 = vmatpush3.bf16.msra.mxu0 %v4725_v1  ;;  %v2090_v1 = vld [vmem:[%s6360_s29] sm:$0xff] }
 0x7de   :  { %4481 = vmatmul.mubr.msk.f32.vlgmr.msra.gmra.mrb[8].mxu1 %vm493_vm3, %v915_v38  ;;  %v1766_v55 = vmul.f32 %v4870_v52, %v5897_v19  ;;  %4730 = vmatprep.subr.bf16.mxu0 %v4729_v6 }
 0x7df   :  { %4489 = vmatpush3.msra.mxu1 %v1088_v35  ;;  %4490 = vmatprep.mubr.msk.f32.mxu1 %vm5261_vm2, %v5260_v37 }
 0x7e0   :  { %4498 = vmatprep.subr.mxu1 %v5260_v37 }
 0x7e1   :  { %4732 = vmatpush3.bf16.msra.mxu0 %v4729_v6 }
 0x7e2   :  { %4491 = vmatmul.mubr.msk.f32.vlgmr.msra.gmra.mrb[10].mxu1 %vm493_vm3, %v1086_v40  ;;  %v1989_v40 = vld [vmem:[%s6330_s13 + $0x8] sm:$0xff] }
 0x7e3   :  { %4499 = vmatpush3.msra.mxu1 %v1262_v43  ;;  %4500 = vmatprep.mubr.msk.f32.mxu1 %vm5261_vm2, %v5260_v37 }
 0x7e4   :  { %4508 = vmatprep.subr.mxu1 %v5260_v37 }
 0x7e6   :  { %4501 = vmatmul.mubr.msk.f32.vlgmr.msra.gmra.mrb[12].mxu1 %vm493_vm3, %v1260_v45  ;;  %v1991_v45 = vld [vmem:[%s6330_s13 + $0x18] sm:$0xff] }
 0x7e7   :  { %4509 = vmatpush3.msra.mxu1 %v1428_v47  ;;  %4510 = vmatprep.mubr.msk.f32.mxu1 %vm5261_vm2, %v5260_v37  ;;  %v4737_v46 = vpack.c.bf16 %v1991_v45, %v1990_v44 }
 0x7e8   :  { %4518 = vmatprep.subr.mxu1 %v5260_v37 }
 0x7ea   :  { %4511 = vmatmul.mubr.msk.f32.vlgmr.msra.gmra.mrb[14].mxu1 %vm493_vm3, %v1426_v48 }
 0x7eb   :  { %4519 = vmatpush3.msra.mxu1 %v1598_v50  ;;  %4520 = vmatprep.mubr.msk.f32.mxu1 %vm5261_vm2, %v5260_v37 }
 0x7ec   :  { %4528 = vmatprep.subr.mxu1 %v5260_v37 }
 0x7ee   :  { %4521 = vmatmul.mubr.msk.f32.vlgmr.msra.gmra.mrb[16].mxu1 %vm493_vm3, %v1596_v51 }
 0x7ef   :  { %4529 = vmatpush3.msra.mxu1 %v1768_v54  ;;  %4530 = vmatprep.mubr.msk.f32.mxu1 %vm5261_vm2, %v5260_v37 }
 0x7f2   :  { %4531 = vmatmul.mubr.msk.f32.vlgmr.msra.gmra.mrb[18].mxu1 %vm493_vm3, %v1766_v55  ;;  %v4245_v55 = vld [vmem:[#allocation16] ss:$0 sm:$0xff] }
 0x8ad   :  { %v817_v56 = vpop.f32.mrb[6].mxu1 }
 0x8ae   :  { %822 = vrot.lane.b32.xlu0 %v817_v56, %s5273_s15  ;;  %v4472_v57 = vpop.f32.mrb[7].mxu1 }
 0x8af   :  { %v4246_v57 = vld [vmem:[#allocation18] ss:$0 sm:$0xff] }
 0x8b1   :  { %v988_v58 = vpop.f32.mrb[8].mxu1 }
 0x8b2   :  { %993 = vrot.lane.b32.xlu1 %v988_v58, %s6359_s16  ;;  %v4482_v59 = vpop.f32.mrb[9].mxu1 }
 0x8b5   :  { %v1159_v60 = vpop.f32.mrb[10].mxu1 }
 0x8b6   :  { %1164 = vrot.lane.b32.xlu1 %v1159_v60, %s5274_s20  ;;  %v4492_v61 = vpop.f32.mrb[11].mxu1 }
 0x8b9   :  { %v1333_v2 = vpop.f32.mrb[12].mxu1 }
 0x8ba   :  { %1337 = vst.msk [vmem:[#allocation3 + $0x8] sm:$0xff] %vm493_vm3, %v1333_v2  ;;  %v4502_v5 = vpop.f32.mrb[13].mxu1  ;;  %v2091_v2 = vld [vmem:[%s6360_s29 + $0x8] sm:$0xff] }
 0x8bb   :  { %v4741_v3 = vpack.c.bf16 %v2091_v2, %v2090_v1  ;;  %v2093_v5 = vld [vmem:[%s6360_s29 + $0x18] sm:$0xff] }
 0x8bc   :  { %v4745_v6 = vpack.c.bf16 %v2093_v5, %v2092_v4 }
 0x8bd   :  { %v1499_v7 = vpop.f32.mrb[14].mxu1  ;;  %4742 = vmatprep.subr.bf16.mxu0 %v4741_v3 }
 0x8be   :  { %1504 = vrot.lane.b32.xlu0 %v1499_v7, %s5273_s15  ;;  %v4512_v8 = vpop.f32.mrb[15].mxu1  ;;  %v2094_v7 = vld [vmem:[%s6360_s29 + $0x20] sm:$0xff] }
 0x8bf   :  { %v2095_v8 = vld [vmem:[%s6360_s29 + $0x28] sm:$0xff] }
 0x8c1   :  { %v1669_v9 = vpop.f32.mrb[16].mxu1 }
 0x8c2   :  { %1674 = vrot.lane.b32.xlu0 %v1669_v9, %s6359_s16  ;;  %v4522_v10 = vpop.f32.mrb[17].mxu1  ;;  %v4749_v9 = vpack.c.bf16 %v2095_v8, %v2094_v7  ;;  %v4259_v8 = vld [vmem:[#allocation13 + $0x1] ss:$0 sm:$0xff] }
 0x8c3   :  { %v2096_v10 = vld [vmem:[%s6360_s29 + $0x30] sm:$0xff] }
 0x8c5   :  { %v1839_v11 = vpop.f32.mrb[18].mxu1 }
 0x8c6   :  { %1844 = vrot.lane.b32.xlu1 %v1839_v11, %s5274_s20  ;;  %v4532_v12 = vpop.f32.mrb[19].mxu1  ;;  %v2097_v11 = vld [vmem:[%s6360_s29 + $0x38] sm:$0xff] }
 0x8c7   :  { %v4753_v12 = vpack.c.bf16 %v2097_v11, %v2096_v10 }
 0x920   :  { %v823_v0 = vpop.permute.xlu0 %822 }
 0x921   :  { %826 = vst.msk [vmem:[#allocation3] sm:$0xff] %vm825_vm4, %v823_v0  ;;  %v4247_v0 = vld [vmem:[#allocation19] ss:$0 sm:$0xff] }
 0x924   :  { %v994_v13 = vpop.permute.xlu1 %993 }
 0x925   :  { %997 = vst.msk [vmem:[#allocation3] sm:$0xff] %vm996_vm5, %v994_v13 }
 0x928   :  { %v1165_v14 = vpop.permute.xlu1 %1164 }
 0x929   :  { %1168 = vst.msk [vmem:[#allocation3] sm:$0xff] %vm1167_vm6, %v1165_v14 }
 0x930   :  { %v1505_v15 = vpop.permute.xlu0 %1504  ;;  %v1848_v16 = vld [vmem:[#allocation3] sm:$0xff] }
 0x931   :  { %1507 = vst.msk [vmem:[#allocation3 + $0x8] sm:$0xff] %vm825_vm4, %v1505_v15  ;;  %4541 = vmatprep.mubr.msk.f32.mxu0 %vm346_vm1, %v1848_v16 }
 0x934   :  { %v1675_v17 = vpop.permute.xlu0 %1674 }
 0x935   :  { %1677 = vst.msk [vmem:[#allocation3 + $0x8] sm:$0xff] %vm996_vm5, %v1675_v17 }
 0x938   :  { %v1845_v18 = vpop.permute.xlu1 %1844 }
 0x939   :  { %1847 = vst.msk [vmem:[#allocation3 + $0x8] sm:$0xff] %vm1167_vm6, %v1845_v18 }
 0x940   :  { %v1849_v19 = vld [vmem:[#allocation3 + $0x8] sm:$0xff] }
 0x941   :  { %4542 = vmatmul.mubr.msk.f32.vlgmr.msra.gmra.mrb[14].mxu0 %vm346_vm1, %v1849_v19 }
 0x942   :  { %4744 = vmatpush3.bf16.msra.mxu0 %v4741_v3  ;;  %v4254_v3 = vld [vmem:[#allocation24] ss:$0 sm:$0xff] }
 0x943   :  { %4746 = vmatprep.subr.bf16.mxu0 %v4745_v6 }
 0x946   :  { %4748 = vmatpush3.bf16.msra.mxu0 %v4745_v6 }
 0x947   :  { %4750 = vmatprep.subr.bf16.mxu0 %v4749_v9 }
 0x94a   :  { %4752 = vmatpush3.bf16.msra.mxu0 %v4749_v9 }
 0x94b   :  { %4754 = vmatprep.subr.bf16.mxu0 %v4753_v12 }
 0x94e   :  { %4756 = vmatpush3.bf16.msra.mxu0 %v4753_v12 }
 0x94f   :  { %4595 = vmatprep.subr.mxu0 %v5260_v37 }
 0xa14   :  { %v4543_v21 = vpop.f32.mrb[14].mxu0 }
 0xa15   :  { %v1939_v23 = vadd.f32 %v4543_v21, %v4242_v20  ;;  %v1933_v24 = vpop.f32.mrb[15].mxu0 }
 0xa16   :  { %v1934_v25 = vadd.f32 %v4242_v20, %v1933_v24 }
 0xa17   :  { %v1943_v26 = vadd.f32 %v1939_v23, %v5757_v36 }
 0xa18   :  { %v1942_v27 = vadd.f32 %v1934_v25, %v5753_v32  ;;  %v1988_v32 = vld [vmem:[%s6330_s13] sm:$0xff] }
 0xa19   :  { %v1949_v28 = vsel %vm346_vm1, %v1943_v26, 0.0  ;;  %v4733_v43 = vpack.c.bf16 %v1989_v40, %v1988_v32 }
 0xa1a   :  { %1950 = vadd.xlane.f32.xlu1 %v1949_v28  ;;  %v1946_v29 = vsel %vm346_vm1, %v1942_v27, 0.0  ;;  %v4250_v28 = vld [vmem:[#allocation21] ss:$0 sm:$0xff] }
 0xa1b   :  { %1947 = vadd.xlane.f32.xlu0 %v1946_v29  ;;  %4734 = vmatprep.subr.bf16.mxu1 %v4733_v43 }
 0xa1c   :  { %4736 = vmatpush3.bf16.msra.mxu1 %v4733_v43 }
 0xa1d   :  { %4738 = vmatprep.subr.bf16.mxu1 %v4737_v46 }
 0xa20   :  { %4740 = vmatpush3.bf16.msra.mxu1 %v4737_v46 }
 0xaa7   :  { %v1951_v30 = vpop.xlane.xlu1 %1950 }
 0xaa8   :  { %v1953_v31 = vmul.f32 0.03125, %v1951_v30  ;;  %v1948_v41 = vpop.xlane.xlu0 %1947 }
 0xaa9   :  { %v1952_v33 = vmul.f32 0.03125, %v1948_v41 }
 0xaaa   :  { %v1955_v34 = vsub.f32 %v1943_v26, %v1953_v31 }
 0xaab   :  { %v1954_v35 = vsub.f32 %v1942_v27, %v1952_v33 }
 0xaac   :  { %v1957_v39 = vmul.f32 %v1955_v34, %v1955_v34 }
 0xaad   :  { %v1956_v42 = vmul.f32 %v1954_v35, %v1954_v35 }
 0xaae   :  { %v1961_v36 = vsel %vm346_vm1, %v1957_v39, 0.0 }
 0xaaf   :  { %v1958_v38 = vsel %vm346_vm1, %v1956_v42, 0.0 }
 0xab0   :  { %1959 = vadd.xlane.f32.xlu0 %v1958_v38 }
 0xab4   :  { %1962 = vadd.xlane.f32.xlu0 %v1961_v36 }
 0xb3d   :  { %v1960_v47 = vpop.xlane.xlu0 %1959 }
 0xb3e   :  { %v1964_v48 = vmul.f32 0.03125, %v1960_v47 }
 0xb40   :  { %v1966_v49 = vadd.f32 1e-12, %v1964_v48  ;;  %v4255_v48 = vld [vmem:[%s6324_s7 + $0x20] sm:$0xff] }
 0xb41   :  { %v1963_v50 = vpop.xlane.xlu0 %1962 }
 0xb42   :  { %4871 = vrsqrt.f32 %v1966_v49  ;;  %v1965_v51 = vmul.f32 0.03125, %v1963_v50  ;;  %v4256_v49 = vld [vmem:[%s6324_s7 + $0x28] sm:$0xff] }
 0xb43   :  { %v4757_v50 = vpack.c.bf16 %v4256_v49, %v4255_v48 }
 0xb44   :  { %v1967_v52 = vadd.f32 1e-12, %v1965_v51  ;;  %v4257_v51 = vld [vmem:[%s6324_s7 + $0x30] sm:$0xff] }
 0xb45   :  { %4758 = vmatprep.subr.bf16.mxu1 %v4757_v50 }
 0xb46   :  { %4873 = vrsqrt.f32 %v1967_v52  ;;  %v4258_v52 = vld [vmem:[%s6324_s7 + $0x38] sm:$0xff] }
 0xb4c   :  { %v4872_v54 = vpop.eup %4871 }
 0xb4d   :  { %v1970_v56 = vmul.f32 %v4872_v54, %v1954_v35  ;;  %v4761_v54 = vpack.c.bf16 %v4258_v52, %v4257_v51 }
 0xb4f   :  { %v1978_v58 = vmul.f32 %v4245_v55, %v1970_v56 }
 0xb50   :  { %v4874_v59 = vpop.eup %4873 }
 0xb51   :  { %v1971_v60 = vmul.f32 %v4874_v59, %v1955_v34  ;;  %v1986_v61 = vadd.f32 %v4246_v57, %v1978_v58 }
 0xb53   :  { %v1979_v62 = vmul.f32 %v4245_v55, %v1971_v60  ;;  %4552 = vmatprep.mubr.msk.f32.mxu1 %vm346_vm1, %v1986_v61 }
 0xb55   :  { %v1987_v63 = vadd.f32 %v4246_v57, %v1979_v62  ;;  %v4253_v62 = vld [vmem:[#allocation22] ss:$0 sm:$0xff] }
 0xb57   :  { %4553 = vmatmul.mubr.msk.f32.vlgmr.msra.gmra.mrb[20].mxu1 %vm346_vm1, %v1987_v63 }
 0xb58   :  { %4760 = vmatpush3.bf16.msra.mxu1 %v4757_v50 }
 0xb59   :  { %4762 = vmatprep.subr.bf16.mxu1 %v4761_v54 }
 0xb5c   :  { %4764 = vmatpush3.bf16.msra.mxu1 %v4761_v54 }
 0xb5d   :  { %4585 = vmatprep.subr.mxu1 %v5260_v37 }
 0xc2a   :  { %v4554_v13 = vpop.f32.mrb[20].mxu1 }
 0xc2b   :  { %v2077_v14 = vadd.f32 %v4554_v13, %v4247_v0  ;;  %v2071_v15 = vpop.f32.mrb[21].mxu1 }
 0xc2c   :  { %v2072_v16 = vadd.f32 %v4247_v0, %v2071_v15 }
 0xc2d   :  { %v2083_v17 = vmul.f32 0.70710677, %v2077_v14  ;;  %v2081_v25 = vmul.f32 0.5, %v2077_v14 }
 0xc2e   :  { %v2082_v18 = vmul.f32 0.70710677, %v2072_v16  ;;  %v2080_v23 = vmul.f32 0.5, %v2072_v16 }
 0xc2f   :  { %4875 = verf.f32 %v2083_v17 }
 0xc30   :  { %4877 = verf.f32 %v2082_v18 }
 0xc39   :  { %v4876_v19 = vpop.eup %4875 }
 0xc3a   :  { %v4878_v20 = vpop.eup %4877  ;;  %v2087_v21 = vadd.f32 1.0, %v4876_v19 }
 0xc3b   :  { %v2086_v24 = vadd.f32 1.0, %v4878_v20 }
 0xc3c   :  { %v2089_v27 = vmul.f32 %v2087_v21, %v2081_v25 }
 0xc3d   :  { %v2088_v26 = vmul.f32 %v2086_v24, %v2080_v23 }
 0xc3f   :  { %4571 = vmatprep.mubr.msk.f32.mxu0 %vm2105_vm7, %v2088_v26 }
 0xc40   :  { %4572 = vmatmul.mubr.msk.f32.vlgmr.msra.gmra.mrb[16].mxu0 %vm2105_vm7, %v2089_v27 }
 0xc41   :  { %4597 = vmatprep.mubr.msk.f32.mxu0 %vm5261_vm2, %v5260_v37 }
 0xd13   :  { %v4573_v29 = vpop.f32.mrb[16].mxu0 }
 0xd14   :  { %v2184_v30 = vadd.f32 %v4573_v29, %v4250_v28  ;;  %v2178_v31 = vpop.f32.mrb[17].mxu0 }
 0xd15   :  { %v2179_v41 = vadd.f32 %v4250_v28, %v2178_v31 }
 0xd16   :  { %v2188_v33 = vadd.f32 %v2184_v30, %v1987_v63 }
 0xd17   :  { %v2187_v34 = vadd.f32 %v2179_v41, %v1986_v61 }
 0xd18   :  { %v2194_v35 = vsel %vm346_vm1, %v2188_v33, 0.0 }
 0xd19   :  { %2195 = vadd.xlane.f32.xlu1 %v2194_v35  ;;  %v2191_v42 = vsel %vm346_vm1, %v2187_v34, 0.0 }
 0xd1a   :  { %2192 = vadd.xlane.f32.xlu0 %v2191_v42 }
 0xda6   :  { %v2196_v38 = vpop.xlane.xlu1 %2195 }
 0xda7   :  { %v2198_v39 = vmul.f32 0.03125, %v2196_v38  ;;  %v2193_v36 = vpop.xlane.xlu0 %2192 }
 0xda8   :  { %v2197_v32 = vmul.f32 0.03125, %v2193_v36 }
 0xda9   :  { %v2200_v40 = vsub.f32 %v2188_v33, %v2198_v39 }
 0xdaa   :  { %v2199_v43 = vsub.f32 %v2187_v34, %v2197_v32 }
 0xdab   :  { %v2202_v44 = vmul.f32 %v2200_v40, %v2200_v40 }
 0xdac   :  { %v2201_v45 = vmul.f32 %v2199_v43, %v2199_v43 }
 0xdad   :  { %v2206_v46 = vsel %vm346_vm1, %v2202_v44, 0.0 }
 0xdae   :  { %2207 = vadd.xlane.f32.xlu1 %v2206_v46  ;;  %v2203_v47 = vsel %vm346_vm1, %v2201_v45, 0.0 }
 0xdaf   :  { %2204 = vadd.xlane.f32.xlu0 %v2203_v47 }
 0xe3b   :  { %v2208_v55 = vpop.xlane.xlu1 %2207 }
 0xe3c   :  { %v2210_v56 = vmul.f32 0.03125, %v2208_v55  ;;  %v2205_v57 = vpop.xlane.xlu0 %2204 }
 0xe3d   :  { %v2209_v58 = vmul.f32 0.03125, %v2205_v57 }
 0xe3e   :  { %v2212_v59 = vadd.f32 1e-12, %v2210_v56 }
 0xe3f   :  { %v2211_v60 = vadd.f32 1e-12, %v2209_v58 }
 0xe40   :  { %4879 = vrsqrt.f32 %v2212_v59 }
 0xe41   :  { %4881 = vrsqrt.f32 %v2211_v60 }
 0xe4a   :  { %v4880_v61 = vpop.eup %4879 }
 0xe4b   :  { %v4882_v63 = vpop.eup %4881  ;;  %v2216_v1 = vmul.f32 %v4880_v61, %v2200_v40 }
 0xe4c   :  { %v2215_v2 = vmul.f32 %v4882_v63, %v2199_v43 }
 0xe4d   :  { %v2224_v4 = vmul.f32 %v4253_v62, %v2216_v1 }
 0xe4e   :  { %v2223_v5 = vmul.f32 %v4253_v62, %v2215_v2 }
 0xe4f   :  { %v6042_v7 = vadd.f32 %v4254_v3, %v2224_v4 }
 0xe50   :  { %v6040_v6 = vadd.f32 %v4254_v3, %v2223_v5 }
 0xe52   :  { %4582 = vmatprep.mubr.msk.f32.mxu1 %vm346_vm1, %v6040_v6 }
 0xe53   :  { %4583 = vmatmul.mubr.msk.f32.vlgmr.msra.gmra.mrb[22].mxu1 %vm346_vm1, %v6042_v7 }
 0xe54   :  { %4587 = vmatprep.mubr.msk.f32.mxu1 %vm5261_vm2, %v5260_v37 }
 0xf26   :  { %v4584_v9 = vpop.f32.mrb[22].mxu1 }
 0xf27   :  { %v2318_v10 = vpop.f32.mrb[23].mxu1  ;;  %v6064_v12 = vadd.f32 %v4584_v9, %v4259_v8 }
 0xf28   :  { %v6050_v11 = vadd.f32 %v4259_v8, %v2318_v10 }
 0xf2a   :  { %2494 = vrot.lane.b32.xlu1 %v6050_v11, %s5263_s1  ;;  %2328 = vrot.lane.b32.xlu0 %v6050_v11, %s5262_s3 }
 0xf2e   :  { %2492 = vrot.lane.b32.xlu1 %v6050_v11, %s5266_s17  ;;  %2662 = vrot.lane.b32.xlu0 %v6050_v11, %s5267_s5 }
 0xf32   :  { %2664 = vrot.lane.b32.xlu1 %v6050_v11, %s5264_s4  ;;  %2832 = vrot.lane.b32.xlu0 %v6050_v11, %s5268_s14 }
 0xf36   :  { %2834 = vrot.lane.b32.xlu1 %v6050_v11, %s5265_s18  ;;  %3169 = vrot.lane.b32.xlu0 %v6064_v12, %s5263_s1 }
 0xf3a   :  { %3003 = vrot.lane.b32.xlu1 %v6064_v12, %s5262_s3  ;;  %3339 = vrot.lane.b32.xlu0 %v6064_v12, %s5264_s4 }
 0xf3e   :  { %3167 = vrot.lane.b32.xlu1 %v6064_v12, %s5266_s17  ;;  %3509 = vrot.lane.b32.xlu0 %v6064_v12, %s5265_s18 }
 0xf42   :  { %3337 = vrot.lane.b32.xlu1 %v6064_v12, %s5267_s5 }
 0xf46   :  { %3507 = vrot.lane.b32.xlu1 %v6064_v12, %s5268_s14 }
 0xf9c   :  { %v2495_v0 = vpop.permute.xlu1 %2494  ;;  %v2329_v13 = vpop.permute.xlu0 %2328 }
 0xf9d   :  { %4586 = vmatpush3.xpose.msk.msra.mxu1 %vm493_vm3, %v2329_v13  ;;  %4596 = vmatpush3.xpose.msk.msra.mxu0 %vm493_vm3, %v2495_v0 }
 0xf9e   :  { %4605 = vmatprep.subr.mxu0 %v5260_v37  ;;  %4590 = vmatprep.subr.mxu1 %v5260_v37 }
 0xfa0   :  { %v2493_v14 = vpop.permute.xlu1 %2492  ;;  %4588 = vmatmul.mubr.msk.f32.vlgmr.msra.gmra.mrb[24].mxu1 %vm493_vm3, %v6050_v11  ;;  %v2663_v15 = vpop.permute.xlu0 %2662 }
 0xfa1   :  { %4598 = vmatmul.mubr.msk.f32.vlgmr.msra.gmra.mrb[18].mxu0 %vm493_vm3, %v2493_v14  ;;  %4592 = vmatprep.mubr.msk.f32.mxu1 %vm5261_vm2, %v5260_v37 }
 0xfa2   :  { %4607 = vmatprep.mubr.msk.f32.mxu0 %vm5261_vm2, %v5260_v37 }
 0xfa4   :  { %v2665_v16 = vpop.permute.xlu1 %2664  ;;  %v2833_v17 = vpop.permute.xlu0 %2832 }
 0xfa5   :  { %4606 = vmatpush3.xpose.msk.msra.mxu0 %vm493_vm3, %v2665_v16 }
 0xfa6   :  { %4615 = vmatprep.subr.mxu0 %v5260_v37 }
 0xfa8   :  { %v2835_v18 = vpop.permute.xlu1 %2834  ;;  %4608 = vmatmul.mubr.msk.f32.vlgmr.msra.gmra.mrb[20].mxu0 %vm493_vm3, %v2663_v15  ;;  %v3170_v19 = vpop.permute.xlu0 %3169 }
 0xfa9   :  { %4616 = vmatpush3.xpose.msk.msra.mxu0 %vm493_vm3, %v2835_v18  ;;  %4617 = vmatprep.mubr.msk.f32.mxu0 %vm5261_vm2, %v5260_v37 }
 0xfaa   :  { %4625 = vmatprep.subr.mxu0 %v5260_v37 }
 0xfac   :  { %v3004_v20 = vpop.permute.xlu1 %3003  ;;  %4618 = vmatmul.mubr.msk.f32.vlgmr.msra.gmra.mrb[22].mxu0 %vm493_vm3, %v2833_v17  ;;  %v3340_v23 = vpop.permute.xlu0 %3339 }
 0xfad   :  { %4626 = vmatpush3.xpose.msk.msra.mxu0 %vm493_vm3, %v3004_v20  ;;  %4627 = vmatprep.mubr.msk.f32.mxu0 %vm5261_vm2, %v5260_v37 }
 0xfae   :  { %4635 = vmatprep.subr.mxu0 %v5260_v37 }
 0xfb0   :  { %v3168_v21 = vpop.permute.xlu1 %3167  ;;  %4628 = vmatmul.mubr.msk.f32.vlgmr.msra.gmra.mrb[24].mxu0 %vm493_vm3, %v6064_v12  ;;  %v3510_v25 = vpop.permute.xlu0 %3509 }
 0xfb1   :  { %4636 = vmatpush3.xpose.msk.msra.mxu0 %vm493_vm3, %v3170_v19  ;;  %4637 = vmatprep.mubr.msk.f32.mxu0 %vm5261_vm2, %v5260_v37 }
 0xfb2   :  { %4645 = vmatprep.subr.mxu0 %v5260_v37 }
 0xfb4   :  { %4638 = vmatmul.mubr.msk.f32.vlgmr.msra.gmra.mrb[26].mxu0 %vm493_vm3, %v3168_v21  ;;  %v3338_v24 = vpop.permute.xlu1 %3337 }
 0xfb5   :  { %4646 = vmatpush3.xpose.msk.msra.mxu0 %vm493_vm3, %v3340_v23  ;;  %4647 = vmatprep.mubr.msk.f32.mxu0 %vm5261_vm2, %v5260_v37 }
 0xfb6   :  { %4655 = vmatprep.subr.mxu0 %v5260_v37 }
 0xfb8   :  { %4648 = vmatmul.mubr.msk.f32.vlgmr.msra.gmra.mrb[28].mxu0 %vm493_vm3, %v3338_v24  ;;  %v3508_v26 = vpop.permute.xlu1 %3507 }
 0xfb9   :  { %4656 = vmatpush3.xpose.msk.msra.mxu0 %vm493_vm3, %v3510_v25  ;;  %4657 = vmatprep.mubr.msk.f32.mxu0 %vm5261_vm2, %v5260_v37 }
 0xfbc   :  { %4658 = vmatmul.mubr.msk.f32.vlgmr.msra.gmra.mrb[30].mxu0 %vm493_vm3, %v3508_v26 }
0x1073   :  { %v2400_v27 = vpop.f32.mrb[24].mxu1 }
0x1074   :  { %v2401_v28 = vadd.f32 %v2400_v27, %v5804_v53  ;;  %v4589_v29 = vpop.f32.mrb[25].mxu1  ;;  %v2566_v30 = vpop.f32.mrb[18].mxu0 }
0x1075   :  { %v2567_v31 = vadd.f32 %v2566_v30, %v5804_v53  ;;  %v4599_v41 = vpop.f32.mrb[19].mxu0 }
0x1076   :  { %v2404_v33 = vsel %vm493_vm3, %v2401_v28, -inf }
0x1077   :  { %2405 = vmax.xlane.f32.xlu0 %v2404_v33  ;;  %v2570_v34 = vsel %vm493_vm3, %v2567_v31, -inf }
0x1078   :  { %2571 = vmax.xlane.f32.xlu1 %v2570_v34 }
0x107b   :  { %v2736_v35 = vpop.f32.mrb[20].mxu0 }
0x107c   :  { %v6126_v42 = vadd.f32 %v2736_v35, %v5804_v53  ;;  %v4609_v38 = vpop.f32.mrb[21].mxu0 }
0x107e   :  { %v2740_v39 = vsel %vm493_vm3, %v6126_v42, -inf }
0x107f   :  { %2741 = vmax.xlane.f32.xlu0 %v2740_v39  ;;  %v2906_v36 = vpop.f32.mrb[22].mxu0 }
0x1080   :  { %v2907_v32 = vadd.f32 %v2906_v36, %v5804_v53  ;;  %v4619_v40 = vpop.f32.mrb[23].mxu0 }
0x1082   :  { %v2910_v43 = vsel %vm493_vm3, %v2907_v32, -inf }
0x1083   :  { %2911 = vmax.xlane.f32.xlu0 %v2910_v43  ;;  %v3075_v44 = vpop.f32.mrb[24].mxu0 }
0x1084   :  { %v3076_v45 = vadd.f32 %v3075_v44, %v5863_v22  ;;  %v4629_v46 = vpop.f32.mrb[25].mxu0 }
0x1086   :  { %v3079_v47 = vsel %vm493_vm3, %v3076_v45, -inf }
0x1087   :  { %3080 = vmax.xlane.f32.xlu0 %v3079_v47  ;;  %v3241_v48 = vpop.f32.mrb[26].mxu0 }
0x1088   :  { %v3242_v49 = vadd.f32 %v3241_v48, %v5863_v22  ;;  %v4639_v50 = vpop.f32.mrb[27].mxu0 }
0x108a   :  { %v3245_v51 = vsel %vm493_vm3, %v3242_v49, -inf }
0x108b   :  { %3246 = vmax.xlane.f32.xlu1 %v3245_v51  ;;  %v3411_v52 = vpop.f32.mrb[28].mxu0 }
0x108c   :  { %v3412_v53 = vadd.f32 %v3411_v52, %v5863_v22  ;;  %v4649_v54 = vpop.f32.mrb[29].mxu0 }
0x108e   :  { %v3415_v55 = vsel %vm493_vm3, %v3412_v53, -inf }
0x108f   :  { %3416 = vmax.xlane.f32.xlu0 %v3415_v55  ;;  %v3581_v56 = vpop.f32.mrb[30].mxu0 }
0x1090   :  { %v4659_v57 = vpop.f32.mrb[31].mxu0  ;;  %v3582_v58 = vadd.f32 %v3581_v56, %v5863_v22 }
0x1092   :  { %v3585_v59 = vsel %vm493_vm3, %v3582_v58, -inf }
0x109c   :  { %2415 = vrot.lane.b32.xlu1 %v6050_v11, %s5269_s28 }
0x10c0   :  { %3586 = vmax.xlane.f32.xlu1 %v3585_v59 }
0x10d1   :  { %2751 = vrot.lane.b32.xlu1 %v6050_v11, %s5272_s24 }
0x10d5   :  { %2921 = vrot.lane.b32.xlu1 %v6050_v11, %s5271_s30 }
0x10d9   :  { %3090 = vrot.lane.b32.xlu1 %v6064_v12, %s5269_s28 }
0x1104   :  { %v2406_v60 = vpop.xlane.xlu0 %2405 }
0x1105   :  { %v2407_v61 = vsub.f32 %v2401_v28, %v2406_v60  ;;  %v2572_v62 = vpop.xlane.xlu1 %2571 }
0x1106   :  { %v2573_v63 = vsub.f32 %v2567_v31, %v2572_v62 }
0x1107   :  { %v2408_v1 = vmul.f32 1.442695, %v2407_v61 }
0x1108   :  { %v2574_v2 = vmul.f32 1.442695, %v2573_v63 }
0x1109   :  { %4883 = vpow2.f32 %v2408_v1 }
0x110a   :  { %4885 = vpow2.f32 %v2574_v2 }
0x110c   :  { %v2742_v22 = vpop.xlane.xlu0 %2741 }
0x110d   :  { %v2743_v17 = vsub.f32 %v6126_v42, %v2742_v22 }
0x110f   :  { %v2744_v19 = vmul.f32 1.442695, %v2743_v17 }
0x1110   :  { %v2912_v3 = vpop.xlane.xlu0 %2911 }
0x1111   :  { %v2913_v4 = vsub.f32 %v2907_v32, %v2912_v3 }
0x1113   :  { %v4884_v5 = vpop.eup %4883  ;;  %v2914_v8 = vmul.f32 1.442695, %v2913_v4 }
0x1114   :  { %v6148_v9 = vpop.eup %4885  ;;  %v2410_v10 = vsel %vm493_vm3, %v4884_v5, 0.0  ;;  %v3081_v18 = vpop.xlane.xlu0 %3080 }
0x1115   :  { %4887 = vpow2.f32 %v2914_v8  ;;  %2411 = vadd.xlane.f32.xlu0 %v2410_v10  ;;  %v2576_v0 = vsel %vm493_vm3, %v6148_v9, 0.0  ;;  %v3082_v20 = vsub.f32 %v3076_v45, %v3081_v18  ;;  %v4286_v18 = vld [vmem:[%s6326_s9 + $0x20] sm:$0xff] }
0x1116   :  { %2577 = vadd.xlane.f32.xlu1 %v2576_v0  ;;  %4889 = vpow2.f32 %v2744_v19  ;;  %v4287_v19 = vld [vmem:[%s6326_s9 + $0x28] sm:$0xff] }
0x1117   :  { %v3083_v23 = vmul.f32 1.442695, %v3082_v20  ;;  %v4765_v20 = vpack.c.bf16 %v4287_v19, %v4286_v18  ;;  %v4302_v18 = vld [vmem:[%s6360_s29 + $0x40] sm:$0xff]  ;;  %v4303_v19 = vld [vmem:[%s6360_s29 + $0x48] sm:$0xff] }
0x1118   :  { %v3247_v13 = vpop.xlane.xlu1 %3246 }
0x1119   :  { %4891 = vpow2.f32 %v3083_v23  ;;  %v3248_v25 = vsub.f32 %v3242_v49, %v3247_v13  ;;  %v4288_v23 = vld [vmem:[%s6326_s9 + $0x30] sm:$0xff]  ;;  %4766 = vmatprep.subr.bf16.mxu0 %v4765_v20 }
0x111a   :  { %4768 = vmatpush3.bf16.msra.mxu0 %v4765_v20  ;;  %v4781_v20 = vpack.c.bf16 %v4303_v19, %v4302_v18 }
0x111b   :  { %v3249_v27 = vmul.f32 1.442695, %v3248_v25 }
0x111c   :  { %v2416_v14 = vpop.permute.xlu1 %2415  ;;  %v3417_v21 = vpop.xlane.xlu0 %3416 }
0x111d   :  { %4591 = vmatpush3.msra.mxu1 %v2416_v14  ;;  %v3418_v24 = vsub.f32 %v3412_v53, %v3417_v21 }
0x111e   :  { %4600 = vmatprep.subr.mxu1 %v5260_v37 }
0x111f   :  { %v6154_v15 = vpop.eup %4887  ;;  %v3419_v26 = vmul.f32 1.442695, %v3418_v24  ;;  %v4289_v24 = vld [vmem:[%s6326_s9 + $0x38] sm:$0xff] }
0x1120   :  { %v2916_v16 = vsel %vm493_vm3, %v6154_v15, 0.0  ;;  %v4890_v28 = vpop.eup %4889 }
0x1121   :  { %2917 = vadd.xlane.f32.xlu1 %v2916_v16  ;;  %4893 = vpow2.f32 %v3419_v26  ;;  %v4769_v26 = vpack.c.bf16 %v4289_v24, %v4288_v23  ;;  %v4305_v23 = vld [vmem:[%s6360_s29 + $0x58] sm:$0xff]  ;;  %v4306_v24 = vld [vmem:[%s6360_s29 + $0x60] sm:$0xff] }
0x1122   :  { %4895 = vpow2.f32 %v3249_v27 }
0x1123   :  { %v4892_v29 = vpop.eup %4891  ;;  %4770 = vmatprep.subr.bf16.mxu0 %v4769_v26 }
0x1124   :  { %v3085_v31 = vsel %vm493_vm3, %v4892_v29, 0.0  ;;  %4772 = vmatpush3.bf16.msra.mxu0 %v4769_v26 }
0x1125   :  { %4782 = vmatprep.subr.bf16.mxu0 %v4781_v20 }
0x112b   :  { %2581 = vrot.lane.b32.xlu0 %v6050_v11, %s5270_s6  ;;  %v2746_v11 = vsel %vm493_vm3, %v4890_v28, 0.0  ;;  %v6165_v41 = vpop.eup %4893 }
0x112c   :  { %v3421_v35 = vsel %vm493_vm3, %v6165_v41, 0.0  ;;  %v4896_v42 = vpop.eup %4895 }
0x112d   :  { %v3251_v38 = vsel %vm493_vm3, %v4896_v42, 0.0 }
0x1132   :  { %3256 = vrot.lane.b32.xlu1 %v6064_v12, %s5270_s6 }
0x114a   :  { %2747 = vadd.xlane.f32.xlu0 %v2746_v11 }
0x114d   :  { %v3587_v30 = vpop.xlane.xlu1 %3586 }
0x114e   :  { %v3588_v33 = vsub.f32 %v3582_v58, %v3587_v30  ;;  %3086 = vadd.xlane.f32.xlu0 %v3085_v31 }
0x1150   :  { %v3589_v34 = vmul.f32 1.442695, %v3588_v33 }
0x1151   :  { %v2752_v32 = vpop.permute.xlu1 %2751 }
0x1152   :  { %4897 = vpow2.f32 %v3589_v34  ;;  %3422 = vadd.xlane.f32.xlu0 %v3421_v35 }
0x1155   :  { %v2922_v40 = vpop.permute.xlu1 %2921 }
0x1156   :  { %3252 = vadd.xlane.f32.xlu1 %v3251_v38 }
0x1159   :  { %v3091_v43 = vpop.permute.xlu1 %3090 }
0x115c   :  { %v6170_v39 = vpop.eup %4897 }
0x115d   :  { %v3591_v36 = vsel %vm493_vm3, %v6170_v39, 0.0 }
0x115e   :  { %3592 = vadd.xlane.f32.xlu0 %v3591_v36 }
0x1167   :  { %3596 = vrot.lane.b32.xlu1 %v6064_v12, %s5271_s30 }
0x1174   :  { %3426 = vrot.lane.b32.xlu0 %v6064_v12, %s5272_s24 }
0x11a2   :  { %v2412_v44 = vpop.xlane.xlu0 %2411 }
0x11a3   :  { %4899 = vrcp.f32 %v2412_v44  ;;  %v2578_v45 = vpop.xlane.xlu1 %2577 }
0x11a4   :  { %4901 = vrcp.f32 %v2578_v45 }
0x11a6   :  { %v2582_v49 = vpop.permute.xlu0 %2581 }
0x11ad   :  { %v4900_v46 = vpop.eup %4899 }
0x11ae   :  { %v2414_v47 = vmul.f32 %v4900_v46, %v4884_v5  ;;  %v4902_v48 = vpop.eup %4901  ;;  %v2918_v12 = vpop.xlane.xlu1 %2917 }
0x11af   :  { %v2580_v50 = vmul.f32 %v4902_v48, %v6148_v9 }
0x11b0   :  { %4593 = vmatmul.mubr.msk.f32.vlgmr.msra.gmra.mrb[26].mxu1 %vm493_vm3, %v2414_v47 }
0x11b1   :  { %4601 = vmatpush3.msra.mxu1 %v2582_v49  ;;  %4602 = vmatprep.mubr.msk.f32.mxu1 %vm5261_vm2, %v5260_v37 }
0x11b2   :  { %4610 = vmatprep.subr.mxu1 %v5260_v37  ;;  %v3257_v53 = vpop.permute.xlu1 %3256 }
0x11b4   :  { %4603 = vmatmul.mubr.msk.f32.vlgmr.msra.gmra.mrb[28].mxu1 %vm493_vm3, %v2580_v50 }
0x11b5   :  { %4611 = vmatpush3.msra.mxu1 %v2752_v32  ;;  %4612 = vmatprep.mubr.msk.f32.mxu1 %vm5261_vm2, %v5260_v37  ;;  %v4290_v32 = vld [vmem:[#allocation15 + $0x1] ss:$0 sm:$0xff] }
0x11b6   :  { %4620 = vmatprep.subr.mxu1 %v5260_v37 }
0x11d7   :  { %v2748_v51 = vpop.xlane.xlu0 %2747 }
0x11d8   :  { %4903 = vrcp.f32 %v2748_v51 }
0x11d9   :  { %4905 = vrcp.f32 %v2918_v12 }
0x11db   :  { %v3087_v52 = vpop.xlane.xlu0 %3086 }
0x11dc   :  { %4907 = vrcp.f32 %v3087_v52 }
0x11df   :  { %v3423_v56 = vpop.xlane.xlu0 %3422 }
0x11e2   :  { %v4904_v54 = vpop.eup %4903 }
0x11e3   :  { %v2750_v55 = vmul.f32 %v4904_v54, %v4890_v28  ;;  %v3253_v57 = vpop.xlane.xlu1 %3252  ;;  %v4906_v58 = vpop.eup %4905 }
0x11e4   :  { %4909 = vrcp.f32 %v3253_v57  ;;  %v2920_v59 = vmul.f32 %v4906_v58, %v6154_v15  ;;  %v4296_v58 = vld [vmem:[%s6330_s13 + $0x28] sm:$0xff] }
0x11e5   :  { %4613 = vmatmul.mubr.msk.f32.vlgmr.msra.gmra.mrb[30].mxu1 %vm493_vm3, %v2750_v55  ;;  %4911 = vrcp.f32 %v3423_v56 }
0x11e6   :  { %4621 = vmatpush3.msra.mxu1 %v2922_v40  ;;  %4622 = vmatprep.mubr.msk.f32.mxu1 %vm5261_vm2, %v5260_v37  ;;  %v4908_v60 = vpop.eup %4907 }
0x11e7   :  { %4630 = vmatprep.subr.mxu1 %v5260_v37  ;;  %v3089_v61 = vmul.f32 %v4908_v60, %v4892_v29  ;;  %v3597_v4 = vpop.permute.xlu1 %3596  ;;  %v4297_v60 = vld [vmem:[%s6330_s13 + $0x30] sm:$0xff] }
0x11e9   :  { %4623 = vmatmul.mubr.msk.f32.vlgmr.msra.gmra.mrb[32].mxu1 %vm493_vm3, %v2920_v59 }
0x11ea   :  { %4631 = vmatpush3.msra.mxu1 %v3091_v43  ;;  %4632 = vmatprep.mubr.msk.f32.mxu1 %vm5261_vm2, %v5260_v37 }
0x11eb   :  { %v3593_v62 = vpop.xlane.xlu0 %3592  ;;  %4640 = vmatprep.subr.mxu1 %v5260_v37 }
0x11ec   :  { %4913 = vrcp.f32 %v3593_v62 }
0x11ed   :  { %4633 = vmatmul.mubr.msk.f32.vlgmr.msra.gmra.mrb[34].mxu1 %vm493_vm3, %v3089_v61  ;;  %v4298_v61 = vld [vmem:[%s6330_s13 + $0x38] sm:$0xff] }
0x11ee   :  { %v4910_v63 = vpop.eup %4909  ;;  %4641 = vmatpush3.msra.mxu1 %v3257_v53  ;;  %4642 = vmatprep.mubr.msk.f32.mxu1 %vm5261_vm2, %v5260_v37  ;;  %v4777_v62 = vpack.c.bf16 %v4298_v61, %v4297_v60  ;;  %v4074_v61 = vld [vmem:[%s6336_s19] sm:$0xff] }
0x11ef   :  { %v3255_v1 = vmul.f32 %v4910_v63, %v4896_v42  ;;  %v3427_v2 = vpop.permute.xlu0 %3426  ;;  %4650 = vmatprep.subr.mxu1 %v5260_v37  ;;  %v4912_v22 = vpop.eup %4911 }
0x11f0   :  { %v3425_v3 = vmul.f32 %v4912_v22, %v6165_v41 }
0x11f1   :  { %4643 = vmatmul.mubr.msk.f32.vlgmr.msra.gmra.mrb[36].mxu1 %vm493_vm3, %v3255_v1 }
0x11f2   :  { %4651 = vmatpush3.msra.mxu1 %v3427_v2  ;;  %4652 = vmatprep.mubr.msk.f32.mxu1 %vm5261_vm2, %v5260_v37 }
0x11f3   :  { %4660 = vmatprep.subr.mxu1 %v5260_v37 }
0x11f5   :  { %4653 = vmatmul.mubr.msk.f32.vlgmr.msra.gmra.mrb[38].mxu1 %vm493_vm3, %v3425_v3 }
0x11f6   :  { %v4914_v5 = vpop.eup %4913  ;;  %4661 = vmatpush3.msra.mxu1 %v3597_v4  ;;  %4662 = vmatprep.mubr.msk.f32.mxu1 %vm5261_vm2, %v5260_v37 }
0x11f7   :  { %v3595_v8 = vmul.f32 %v4914_v5, %v6170_v39 }
0x11f9   :  { %4663 = vmatmul.mubr.msk.f32.vlgmr.msra.gmra.mrb[40].mxu1 %vm493_vm3, %v3595_v8  ;;  %v4293_v8 = vld [vmem:[#allocation16 + $0x1] ss:$0 sm:$0xff] }
0x1283   :  { %v2487_v9 = vpop.f32.mrb[26].mxu1 }
0x1284   :  { %2491 = vst.msk [vmem:[#allocation3] sm:$0xff] %vm493_vm3, %v2487_v9  ;;  %v4594_v10 = vpop.f32.mrb[27].mxu1 }
0x1285   :  { %v4294_v10 = vld [vmem:[#allocation18 + $0x1] ss:$0 sm:$0xff] }
0x1287   :  { %v2653_v0 = vpop.f32.mrb[28].mxu1 }
0x1288   :  { %2658 = vrot.lane.b32.xlu0 %v2653_v0, %s5273_s15  ;;  %v4604_v13 = vpop.f32.mrb[29].mxu1 }
0x12b8   :  { %v2823_v14 = vpop.f32.mrb[30].mxu1 }
0x12b9   :  { %2828 = vrot.lane.b32.xlu1 %v2823_v14, %s6359_s16  ;;  %v4614_v15 = vpop.f32.mrb[31].mxu1 }
0x12bc   :  { %v2993_v16 = vpop.f32.mrb[32].mxu1 }
0x12bd   :  { %2998 = vrot.lane.b32.xlu1 %v2993_v16, %s5274_s20  ;;  %v4624_v17 = vpop.f32.mrb[33].mxu1 }
0x12c0   :  { %v3162_v21 = vpop.f32.mrb[34].mxu1 }
0x12c1   :  { %3166 = vst.msk [vmem:[#allocation3 + $0x8] sm:$0xff] %vm493_vm3, %v3162_v21  ;;  %v4634_v25 = vpop.f32.mrb[35].mxu1  ;;  %v4304_v21 = vld [vmem:[%s6360_s29 + $0x50] sm:$0xff] }
0x12c2   :  { %v4307_v25 = vld [vmem:[%s6360_s29 + $0x68] sm:$0xff] }
0x12c3   :  { %v4789_v26 = vpack.c.bf16 %v4307_v25, %v4306_v24  ;;  %v4315_v24 = vld [vmem:[#allocation25] ss:$0 sm:$0xff] }
0x12c4   :  { %v3328_v27 = vpop.f32.mrb[36].mxu1 }
0x12c5   :  { %3333 = vrot.lane.b32.xlu0 %v3328_v27, %s5273_s15  ;;  %v4644_v28 = vpop.f32.mrb[37].mxu1  ;;  %v4308_v27 = vld [vmem:[%s6360_s29 + $0x70] sm:$0xff] }
0x12c6   :  { %v4309_v28 = vld [vmem:[%s6360_s29 + $0x78] sm:$0xff] }
0x12c8   :  { %v3498_v11 = vpop.f32.mrb[38].mxu1 }
0x12c9   :  { %3503 = vrot.lane.b32.xlu0 %v3498_v11, %s6359_s16  ;;  %v4654_v29 = vpop.f32.mrb[39].mxu1  ;;  %v4793_v11 = vpack.c.bf16 %v4309_v28, %v4308_v27 }
0x12ca   :  { %v4299_v29 = vld [vmem:[#allocation19 + $0x1] ss:$0 sm:$0xff] }
0x12cc   :  { %v3668_v30 = vpop.f32.mrb[40].mxu1 }
0x12cd   :  { %3673 = vrot.lane.b32.xlu1 %v3668_v30, %s5274_s20  ;;  %v4664_v31 = vpop.f32.mrb[41].mxu1 }
0x12fa   :  { %v2659_v41 = vpop.permute.xlu0 %2658 }
0x12fb   :  { %2661 = vst.msk [vmem:[#allocation3] sm:$0xff] %vm825_vm4, %v2659_v41 }
0x132b   :  { %v2829_v33 = vpop.permute.xlu1 %2828 }
0x132c   :  { %2831 = vst.msk [vmem:[#allocation3] sm:$0xff] %vm996_vm5, %v2829_v33 }
0x132f   :  { %v2999_v34 = vpop.permute.xlu1 %2998 }
0x1330   :  { %3001 = vst.msk [vmem:[#allocation3] sm:$0xff] %vm1167_vm6, %v2999_v34 }
0x1337   :  { %v3334_v35 = vpop.permute.xlu0 %3333  ;;  %v3677_v42 = vld [vmem:[#allocation3] sm:$0xff] }
0x1338   :  { %3336 = vst.msk [vmem:[#allocation3 + $0x8] sm:$0xff] %vm825_vm4, %v3334_v35  ;;  %4673 = vmatprep.mubr.msk.f32.mxu0 %vm346_vm1, %v3677_v42 }
0x133b   :  { %v3504_v38 = vpop.permute.xlu0 %3503 }
0x133c   :  { %3506 = vst.msk [vmem:[#allocation3 + $0x8] sm:$0xff] %vm996_vm5, %v3504_v38 }
0x133f   :  { %v3674_v39 = vpop.permute.xlu1 %3673 }
0x1340   :  { %3676 = vst.msk [vmem:[#allocation3 + $0x8] sm:$0xff] %vm1167_vm6, %v3674_v39 }
0x1347   :  { %v3678_v36 = vld [vmem:[#allocation3 + $0x8] sm:$0xff] }
0x1348   :  { %4674 = vmatmul.mubr.msk.f32.vlgmr.msra.gmra.mrb[32].mxu0 %vm346_vm1, %v3678_v36 }
0x1349   :  { %4784 = vmatpush3.bf16.msra.mxu0 %v4781_v20 }
0x141b   :  { %v4675_v40 = vpop.f32.mrb[32].mxu0 }
0x141c   :  { %v3770_v43 = vadd.f32 %v4675_v40, %v4290_v32  ;;  %v3764_v44 = vpop.f32.mrb[33].mxu0 }
0x141d   :  { %v3765_v45 = vadd.f32 %v4290_v32, %v3764_v44 }
0x141e   :  { %v3774_v46 = vadd.f32 %v3770_v43, %v6042_v7 }
0x141f   :  { %v3773_v47 = vadd.f32 %v3765_v45, %v6040_v6  ;;  %v4295_v6 = vld [vmem:[%s6330_s13 + $0x20] sm:$0xff]  ;;  %v4310_v45 = vld [vmem:[#allocation21 + $0x1] ss:$0 sm:$0xff] }
0x1420   :  { %v3782_v48 = vsel %vm346_vm1, %v3774_v46, 0.0  ;;  %v4773_v59 = vpack.c.bf16 %v4296_v58, %v4295_v6 }
0x1421   :  { %3783 = vadd.xlane.f32.xlu1 %v3782_v48  ;;  %v3779_v49 = vsel %vm346_vm1, %v3773_v47, 0.0 }
0x1422   :  { %3780 = vadd.xlane.f32.xlu0 %v3779_v49  ;;  %4774 = vmatprep.subr.bf16.mxu1 %v4773_v59 }
0x1423   :  { %4776 = vmatpush3.bf16.msra.mxu1 %v4773_v59 }
0x1424   :  { %4778 = vmatprep.subr.bf16.mxu1 %v4777_v62 }
0x1427   :  { %4780 = vmatpush3.bf16.msra.mxu1 %v4777_v62  ;;  %v4075_v62 = vld [vmem:[%s6336_s19 + $0x8] sm:$0xff] }
0x14ae   :  { %v3784_v50 = vpop.xlane.xlu1 %3783 }
0x14af   :  { %v3786_v12 = vmul.f32 0.03125, %v3784_v50  ;;  %v3781_v51 = vpop.xlane.xlu0 %3780 }
0x14b0   :  { %v3785_v52 = vmul.f32 0.03125, %v3781_v51 }
0x14b1   :  { %v3788_v53 = vsub.f32 %v3774_v46, %v3786_v12 }
0x14b2   :  { %v3787_v54 = vsub.f32 %v3773_v47, %v3785_v52 }
0x14b3   :  { %v3790_v57 = vmul.f32 %v3788_v53, %v3788_v53 }
0x14b4   :  { %v3789_v55 = vmul.f32 %v3787_v54, %v3787_v54 }
0x14b5   :  { %v3794_v7 = vsel %vm346_vm1, %v3790_v57, 0.0 }
0x14b6   :  { %v3791_v56 = vsel %vm346_vm1, %v3789_v55, 0.0 }
0x14b7   :  { %3792 = vadd.xlane.f32.xlu0 %v3791_v56 }
0x14bb   :  { %3795 = vadd.xlane.f32.xlu0 %v3794_v7 }
0x1544   :  { %v3793_v63 = vpop.xlane.xlu0 %3792 }
0x1545   :  { %v3797_v1 = vmul.f32 0.03125, %v3793_v63  ;;  %v4798_v63 = vpack.c.bf16 %v4075_v62, %v4074_v61 }
0x1547   :  { %v3799_v2 = vadd.f32 1e-12, %v3797_v1  ;;  %v4076_v1 = vld [vmem:[%s6336_s19 + $0x10] sm:$0xff] }
0x1548   :  { %v3796_v22 = vpop.xlane.xlu0 %3795 }
0x1549   :  { %4915 = vrsqrt.f32 %v3799_v2  ;;  %v3798_v3 = vmul.f32 0.03125, %v3796_v22  ;;  %v4077_v2 = vld [vmem:[%s6336_s19 + $0x18] sm:$0xff]  ;;  %v5275_v22 = vmov 0.0|0.0   ;;  %s5276_s19 = smov [#allocation27]  }
0x154a   :  { %4797 = vmatprep.subr.bf16.mxu1 %v5275_v22  ;;  %s4167_s30 = sshll.u32 %s5276_s19, 4  ;;  %s4168_s30 = int_to_ptr.vmem [resolvable:$true] %s4167_s30 }
0x154b   :  { %v3800_v4 = vadd.f32 1e-12, %v3798_v3  ;;  %v4801_v3 = vpack.c.bf16 %v4077_v2, %v4076_v1  ;;  %s5205_s24 = scalar_lea.vmem %s4168_s30, 32  ;;  %p5210_p4 = scmp.lt.s32.totalorder %s4168_s30, %s4168_s30 }
0x154c   :  { %p5206_p3 = scmp.ne.s32.totalorder %s4168_s30, %s5205_s24  ;;  %p5211_p5 = scmp.lt.s32.totalorder %s5205_s24, %s5205_s24 }
0x154d   :  { %4917 = vrsqrt.f32 %v3800_v4 }
0x154e   :  { %p5212_p6 = por %p5211_p5, %p5210_p4 }
0x1550   :  { %p5213_p7 = pnand %p5212_p6, %p5206_p3 }
0x1553   :  { %v4916_v5 = vpop.eup %4915 }
0x1554   :  { %v3803_v9 = vmul.f32 %v4916_v5, %v3787_v54 }
0x1556   :  { %v3811_v0 = vmul.f32 %v4293_v8, %v3803_v9 }
0x1557   :  { %v4918_v13 = vpop.eup %4917 }
0x1558   :  { %v3804_v14 = vmul.f32 %v4918_v13, %v3788_v53  ;;  %v3819_v15 = vadd.f32 %v4294_v10, %v3811_v0 }
0x155a   :  { %v3812_v16 = vmul.f32 %v4293_v8, %v3804_v14  ;;  %4684 = vmatprep.mubr.msk.f32.mxu1 %vm346_vm1, %v3819_v15  ;;  %v4313_v14 = vld [vmem:[#allocation22 + $0x1] ss:$0 sm:$0xff] }
0x155c   :  { %v3820_v17 = vadd.f32 %v4294_v10, %v3812_v16 }
0x155e   :  { %4685 = vmatmul.mubr.msk.f32.vlgmr.msra.gmra.mrb[42].mxu1 %vm346_vm1, %v3820_v17 }
0x155f   :  { %4714 = vmatprep.mubr.msk.f32.mxu1 %vm5261_vm2, %v5260_v37  ;;  %v4785_v37 = vpack.c.bf16 %v4305_v23, %v4304_v21  ;;  %4799 = vmatpush3.bf16.msra.mxu1 %v4798_v63 }
0x1560   :  { %4800 = vmatprep.subr.bf16.mxu1 %v5275_v22 }
0x1561   :  { %4786 = vmatprep.subr.bf16.mxu0 %v4785_v37 }
0x1562   :  { %4788 = vmatpush3.bf16.msra.mxu0 %v4785_v37 }
0x1563   :  { %4790 = vmatprep.subr.bf16.mxu0 %v4789_v26  ;;  %4802 = vmatpush3.bf16.msra.mxu1 %v4801_v3 }
0x1566   :  { %4792 = vmatpush3.bf16.msra.mxu0 %v4789_v26 }
0x1567   :  { %4794 = vmatprep.subr.bf16.mxu0 %v4793_v11 }
0x156a   :  { %4796 = vmatpush3.bf16.msra.mxu0 %v4793_v11 }
0x1631   :  { %v4686_v30 = vpop.f32.mrb[42].mxu1 }
0x1632   :  { %v3912_v31 = vadd.f32 %v4686_v30, %v4299_v29  ;;  %v3906_v41 = vpop.f32.mrb[43].mxu1 }
0x1633   :  { %v3907_v33 = vadd.f32 %v4299_v29, %v3906_v41 }
0x1634   :  { %v3918_v34 = vmul.f32 0.70710677, %v3912_v31  ;;  %v3916_v40 = vmul.f32 0.5, %v3912_v31 }
0x1635   :  { %v3917_v35 = vmul.f32 0.70710677, %v3907_v33  ;;  %v3915_v36 = vmul.f32 0.5, %v3907_v33 }
0x1636   :  { %4919 = verf.f32 %v3918_v34 }
0x1637   :  { %4921 = verf.f32 %v3917_v35 }
0x1640   :  { %v4920_v42 = vpop.eup %4919 }
0x1641   :  { %v4922_v38 = vpop.eup %4921  ;;  %v3922_v39 = vadd.f32 1.0, %v4920_v42 }
0x1642   :  { %v3921_v32 = vadd.f32 1.0, %v4922_v38 }
0x1643   :  { %v3924_v44 = vmul.f32 %v3922_v39, %v3916_v40 }
0x1644   :  { %v3923_v43 = vmul.f32 %v3921_v32, %v3915_v36 }
0x1646   :  { %4703 = vmatprep.mubr.msk.f32.mxu0 %vm2105_vm7, %v3923_v43 }
0x1647   :  { %4704 = vmatmul.mubr.msk.f32.vlgmr.msra.gmra.mrb[34].mxu0 %vm2105_vm7, %v3924_v44 }
0x171a   :  { %v4705_v46 = vpop.f32.mrb[34].mxu0 }
0x171b   :  { %v4020_v47 = vadd.f32 %v4705_v46, %v4310_v45  ;;  %v4014_v48 = vpop.f32.mrb[35].mxu0 }
0x171c   :  { %v4015_v49 = vadd.f32 %v4310_v45, %v4014_v48 }
0x171d   :  { %v4024_v50 = vadd.f32 %v4020_v47, %v3820_v17  ;;  %v4314_v17 = vld [vmem:[#allocation24 + $0x1] ss:$0 sm:$0xff] }
0x171e   :  { %v4023_v12 = vadd.f32 %v4015_v49, %v3819_v15 }
0x171f   :  { %v4032_v51 = vsel %vm346_vm1, %v4024_v50, 0.0 }
0x1720   :  { %4033 = vadd.xlane.f32.xlu1 %v4032_v51  ;;  %v4029_v52 = vsel %vm346_vm1, %v4023_v12, 0.0 }
0x1721   :  { %4030 = vadd.xlane.f32.xlu0 %v4029_v52 }
0x17ad   :  { %v4034_v53 = vpop.xlane.xlu1 %4033 }
0x17ae   :  { %v4036_v54 = vmul.f32 0.03125, %v4034_v53  ;;  %v4031_v55 = vpop.xlane.xlu0 %4030 }
0x17af   :  { %v4035_v56 = vmul.f32 0.03125, %v4031_v55 }
0x17b0   :  { %v4038_v57 = vsub.f32 %v4024_v50, %v4036_v54 }
0x17b1   :  { %v4037_v7 = vsub.f32 %v4023_v12, %v4035_v56 }
0x17b2   :  { %v4040_v6 = vmul.f32 %v4038_v57, %v4038_v57 }
0x17b3   :  { %v4039_v58 = vmul.f32 %v4037_v7, %v4037_v7 }
0x17b4   :  { %v4044_v59 = vsel %vm346_vm1, %v4040_v6, 0.0 }
0x17b5   :  { %4045 = vadd.xlane.f32.xlu1 %v4044_v59  ;;  %v4041_v60 = vsel %vm346_vm1, %v4039_v58, 0.0 }
0x17b6   :  { %4042 = vadd.xlane.f32.xlu0 %v4041_v60 }
0x1842   :  { %v4046_v4 = vpop.xlane.xlu1 %4045 }
0x1843   :  { %v4048_v5 = vmul.f32 0.03125, %v4046_v4  ;;  %v4043_v8 = vpop.xlane.xlu0 %4042 }
0x1844   :  { %v4047_v9 = vmul.f32 0.03125, %v4043_v8 }
0x1845   :  { %v4050_v10 = vadd.f32 1e-12, %v4048_v5 }
0x1846   :  { %v4049_v0 = vadd.f32 1e-12, %v4047_v9 }
0x1847   :  { %4923 = vrsqrt.f32 %v4050_v10 }
0x1848   :  { %4925 = vrsqrt.f32 %v4049_v0 }
0x1851   :  { %v4924_v13 = vpop.eup %4923 }
0x1852   :  { %v4926_v15 = vpop.eup %4925  ;;  %v4054_v16 = vmul.f32 %v4924_v13, %v4038_v57 }
0x1853   :  { %v4053_v18 = vmul.f32 %v4926_v15, %v4037_v7 }
0x1854   :  { %v4062_v19 = vmul.f32 %v4313_v14, %v4054_v16 }
0x1855   :  { %v4061_v20 = vmul.f32 %v4313_v14, %v4053_v18 }
0x1856   :  { %v4070_v21 = vadd.f32 %v4314_v17, %v4062_v19 }
0x1857   :  { %v4069_v23 = vadd.f32 %v4314_v17, %v4061_v20 }
0x1858   :  { %4072 = vst.msk [vmem:[#allocation4 + $0x1] sm:$0x1] %vm235_vm0, %v4070_v21 }
0x1859   :  { %4071 = vst.msk [vmem:[#allocation4] sm:$0x1] %vm235_vm0, %v4069_v23 }
0x1860   :  { %v4073_v37 = vld [vmem:[#allocation4] sm:$0x3] }
0x1861   :  { %4715 = vmatmul.mubr.msk.f32.vlgmr.msra.gmra.mrb[44].mxu1 %vm346_vm1, %v4073_v37 }
0x1934   :  { %v4154_v25 = vpop.f32.mrb[44].mxu1 }
0x1935   :  { %v4155_v26 = vadd.f32 %v4315_v24, %v4154_v25  ;;  %v4716_v27 = vpop.f32.mrb[45].mxu1 }
0x1937   :  { %4927 = vtanh.f32 %v4155_v26 }
0x1941   :  { %v4928_v28 = vpop.eup %4927 }
0x1942   :  { %4160 = vst.msk [vmem:[#allocation27] sm:$0x3] %vm4159_vm8, %v4928_v28 }
0x1943   :  { %5216 = shalt.err (!%p5213_p7)
}
0x1944   :  { %s5217_s20 = scalar_lea.hbm %s6338_s21, 32 }
0x1945   :  { %p5218_p8 = scmp.ne.s32.totalorder %s6338_s21, %s5217_s20  ;;  %p5221_p9 = scmp.lt.u32.totalorder %s5217_s20, %s6338_s21 }
0x1947   :  { %p5223_p10 = pnand %p5221_p9, %p5218_p8 }
0x1949   :  { %5226 = shalt.err (!%p5223_p10)
}
0x194a   :  { %4170 = dma.vmem_to_hbm [thread:$0]  %s4168_s30, 32, %s6338_s21, [#allocation9]  }
0x194b   :  { %5243 = dma.done.wait [#allocation9], 32  }
0x194c   :  { %5244 = vsyncadd [#allocation9], 4294967264 }
0x194d   :  { %4174 = vsyncpa [#allocation8], 1 }
0x194e   :  { %4175 = vsyncpa [#allocation11], 1 }
0x194f   :  { %4176 = vsyncpa [#allocation14], 1 }
0x1950   :  { %4177 = vsyncpa [#allocation17], 1 }
0x1951   :  { %4178 = vsyncpa [#allocation20], 1 }
0x1952   :  { %4179 = vsyncpa [#allocation23], 1 }
0x1953   :  { %4180 = vsyncpa [#allocation26], 1 }
0x1954   :  { %4181 = vsyncpa [#allocation9], 1 }

</bundles_post_ra>
